<compile_context>
chip_gen: v5e
topology: v5e:2x2
jax: 0.10.0
libtpu: 0.0.40
codegen_flags: <defaults>
</compile_context>

<pallas_src>
import functools

import numpy as np
import jax
import jax.numpy as jnp
from jax.experimental import pallas as pl
from jax.experimental.pallas import tpu as pltpu


_BINOMIAL = {
    1: [1.0],
    2: [1.0, 1.0],
    3: [1.0, 2.0, 1.0],
    4: [1.0, 3.0, 3.0, 1.0],
    5: [1.0, 4.0, 6.0, 4.0, 1.0],
    6: [1.0, 5.0, 10.0, 10.0, 5.0, 1.0],
    7: [1.0, 6.0, 15.0, 20.0, 15.0, 6.0, 1.0],
}


def make_blur_filter(filt_size):
    """Deterministic BlurPool filter: normalized 3D binomial (torch buffer)."""
    a = np.asarray(_BINOMIAL[filt_size], dtype=np.float64)
    f3 = a[:, None, None] * a[None, :, None] * a[None, None, :]
    return f3 / f3.sum()  # (fs, fs, fs) float64


def _blurpool3d_kernel(*refs, filt_size, kd_block, n_halo, halo_rows,
                       out_ho, out_wo, w_d, w_h, w_w):
    # refs = (x_main, halo_0..halo_{n_halo-1}, o_ref, t_ref, u_ref)
    #   x_main: (Kd*8, Hh, Wh, L) bf16/f32 -- rows are (half-depth, phase) pairs,
    #           row = local_half_depth*8 + pd*4 + ph*2 + pw.
    #   halo_j: the (Kd+j)-th half-depth plane (4 rows when fs==3, else 8).
    #   o_ref : (Kd, Ho, Wo, L)
    #   t_ref : (4, Hh, Wh, L) f32  -- depth-pass output, indexed by ph*2+pw.
    #   u_ref : (2, Ho, Wh, L) f32  -- height-pass output, indexed by pw.
    x_main = refs[0]
    halos = refs[1:1 + n_halo]
    o_ref = refs[1 + n_halo]
    t_ref = refs[2 + n_halo]
    u_ref = refs[3 + n_halo]
    fs = filt_size

    def load_phase(plane, p):
        # plane: local half-depth index; p = pd*4 + ph*2 + pw.
        if plane < kd_block:
            return x_main[plane * 8 + p]
        h = halos[plane - kd_block]
        # fs==3 halos carry only the pd==0 rows (0..3); the only tap that can
        # land in the halo then is kd==2 (pd==0), for which the global phase
        # index equals the local row index, so plain `p` is correct either way.
        return h[p]

    for od in range(kd_block):
        # ---- depth pass: 1-D blur along D into t_ref[ph*2+pw] ------------
        for ph in range(2):
            for pw in range(2):
                acc = None
                for kd in range(fs):
                    pd, dd = kd % 2, kd // 2
                    slab = load_phase(od + dd, pd * 4 + ph * 2 + pw)
                    slab = slab.astype(jnp.float32)        # widen once per slab
                    w = w_d[kd]
                    term = slab if w == 1.0 else w * slab
                    acc = term if acc is None else acc + term
                t_ref[ph * 2 + pw] = acc
        # ---- height pass: 1-D blur along H into u_ref[pw] ----------------
        for pw in range(2):
            acc = None
            for kh in range(fs):
                phh, dh = kh % 2, kh // 2
                sl = t_ref[phh * 2 + pw, pl.ds(dh, out_ho), :, :]
                w = w_h[kh]
                term = sl if w == 1.0 else w * sl
                acc = term if acc is None else acc + term
            u_ref[pw] = acc
        # ---- width pass: 1-D blur along W, emit one output depth plane ----
        acc = None
        for kw in range(fs):
            pww, dw = kw % 2, kw // 2
            sl = u_ref[pww, :, pl.ds(dw, out_wo), :]
            w = w_w[kw]
            term = sl if w == 1.0 else w * sl
            acc = term if acc is None else acc + term
        o_ref[od] = acc.astype(o_ref.dtype)


def blurpool3d(x, *, filt_size=3, stride=2, pad_off=0, pad_type="reflect"):
    """BlurPool3D forward: pad + depthwise (fs,fs,fs) binomial blur, stride 2."""
    assert stride == 2, "this kernel implements the module default stride=2"
    N, C, D, H, W = x.shape
    p_lo = (filt_size - 1) // 2 + pad_off
    p_hi = int(np.ceil((filt_size - 1) / 2.0)) + pad_off
    mode = {"reflect": "reflect", "replicate": "edge", "zero": "constant"}[pad_type]

    if filt_size == 1:
        # torch module quirk: only dims 2 and 3 (D, H) are strided, W untouched.
        if pad_off == 0:
            return x[:, :, ::stride, ::stride]
        pads = ((0, 0), (0, 0), (p_lo, p_hi), (p_lo, p_hi), (p_lo, p_hi))
        return jnp.pad(x, pads, mode=mode)[:, :, ::stride, ::stride]

    NC = N * C
    Dp, Hp, Wp = D + p_lo + p_hi, H + p_lo + p_hi, W + p_lo + p_hi
    Do = (Dp - filt_size) // stride + 1
    Ho = (Hp - filt_size) // stride + 1
    Wo = (Wp - filt_size) // stride + 1
    ed, eh, ew = Dp % 2, Hp % 2, Wp % 2           # even-parity tail (never read)
    Dh, Hh, Wh = (Dp + ed) // 2, (Hp + eh) // 2, (Wp + ew) // 2

    # ---- HBM pass 1: ONE merged pad in NCDHW (blur pad + parity tail) -------
    merged = (mode != "reflect") or (p_hi + ed < D and p_hi + eh < H and p_hi + ew < W)
    if merged:
        xpad = jnp.pad(x, ((0, 0), (0, 0), (p_lo, p_hi + ed),
                           (p_lo, p_hi + eh), (p_lo, p_hi + ew)), mode=mode)
    else:  # tiny-dim reflect fallback: two pad passes
        xpad = jnp.pad(x, ((0, 0), (0, 0), (p_lo, p_hi),
                           (p_lo, p_hi), (p_lo, p_hi)), mode=mode)
        xpad = jnp.pad(xpad, ((0, 0), (0, 0), (0, ed), (0, eh), (0, ew)))

    # ---- HBM pass 2: ONE relayout to depth-major phase-decomposed layout ----
    #   row = dh*8 + pd*4 + ph*2 + pw, channels-last fused N*C on lanes.
    # TODO(synk): fold the stride-2 W decomposition into the kernel with
    # strided sublane loads to save this pass entirely.
    xp = xpad.reshape(N, C, Dh, 2, Hh, 2, Wh, 2)
    xp = xp.transpose(2, 3, 5, 7, 4, 6, 0, 1).reshape(Dh * 8, Hh, Wh, NC)

    # Lane padding of the fused N*C axis: lane-dense output stores are the
    # single biggest layout lever; padded lanes never contaminate real ones.
    LANE = 128
    if NC % LANE == 0:
        NC_p = NC
    elif NC >= 32:
        NC_p = ((NC + LANE - 1) // LANE) * LANE
        # TODO(synk): fold this pad into the relayout transpose to save a pass.
        xp = jnp.pad(xp, ((0, 0), (0, 0), (0, 0), (0, NC_p - NC)))
    else:
        NC_p = NC            # tiny channel count: accept a partial lane block

    # ---- tile-size selection with a generation-aware VMEM budget ------------
    try:
        vmem_cap = int(pltpu.get_tpu_info().vmem_capacity_bytes)
    except Exception:
        vmem_cap = 64 * 1024 * 1024
    budget = min(vmem_cap // 2, 80 * 1024 * 1024)   # 32 MiB on v7x, 64 MiB v5e/v6e

    itemsize = jnp.dtype(x.dtype).itemsize
    n_halo = (filt_size - 1) // 2
    halo_rows = 4 if filt_size == 3 else 8
    plane = Hh * Wh

    def need_bytes(lanes, kd):
        in_blk = 2 * kd * 8 * plane * lanes * itemsize             # main, x2 buffers
        halo = 2 * n_halo * halo_rows * plane * lanes * itemsize   # halos, x2 buffers
        out_blk = 2 * kd * Ho * Wo * lanes * itemsize              # output, x2 buffers
        scratch = (4 * plane + 2 * Ho * Wh) * lanes * 4            # f32 D/H stages
        temps = 3 * plane * lanes * 4                              # pass accumulators
        return in_blk + halo + out_blk + scratch + temps

    if NC_p >= LANE and NC_p % LANE == 0:
        lane_cands = [c for c in (512, 384, 256, 128) if c <= NC_p and NC_p % c == 0]
    else:
        lane_cands = [NC_p]

    kd_limit = max(1, min(Do, 8))
    best = None                                     # (Kd, L): prefer large Kd, then L
    for lanes in lane_cands:
        cap = kd_limit
        if NC_p // lanes == 1 and Do >= 2:
            cap = min(cap, -(-Do // 2))             # keep >=2 depth blocks (megacore)
        pick = None
        for kd in range(cap, 0, -1):
            if Do % kd == 0 and need_bytes(lanes, kd) <= budget:
                pick = kd
                break
        if pick is not None and (best is None or (pick, lanes) > best):
            best = (pick, lanes)
    if best is None:
        # Nothing fits the budget: smallest block, let the compiler have more.
        # TODO(synk): also tile H when even a single-plane block is too large.
        best = (1, lane_cands[-1])
    Kd, L = best
    nc_blocks = NC_p // L
    d_blocks = Do // Kd
    need = need_bytes(L, Kd)
    vmem_limit = max(int(need * 1.3), 48 * 1024 * 1024)
    vmem_limit = int(min(vmem_limit, (vmem_cap * 9) // 10))

    # ---- stage weights: a (x) a (x) a with the normalization folded into W --
    a = np.asarray(_BINOMIAL[filt_size], dtype=np.float64)
    s = float(a.sum())
    w_d = tuple(float(v) for v in a)               # weight-1 taps skip the mul
    w_h = tuple(float(v) for v in a)
    w_w = tuple(float(v) / (s ** 3) for v in a)

    # ---- BlockSpecs: main depth block + tiny halo blocks of the same array --
    row_blk = Kd * 8
    in_specs = [pl.BlockSpec((row_blk, Hh, Wh, L), lambda nc, db: (db, 0, 0, nc))]
    halo_scale = 2 if halo_rows == 4 else 1

    def _halo_map(j):
        def m(nc, db):
            plane_idx = jnp.minimum(db * Kd + Kd + j, Dh - 1)
            return (plane_idx * halo_scale, 0, 0, nc)
        return m

    for j in range(n_halo):
        in_specs.append(pl.BlockSpec((halo_rows, Hh, Wh, L), _halo_map(j)))

    kernel = functools.partial(
        _blurpool3d_kernel, filt_size=filt_size, kd_block=Kd, n_halo=n_halo,
        halo_rows=halo_rows, out_ho=Ho, out_wo=Wo, w_d=w_d, w_h=w_h, w_w=w_w)

    out = pl.pallas_call(
        kernel,
        out_shape=jax.ShapeDtypeStruct((Do, Ho, Wo, NC_p), x.dtype),
        grid=(nc_blocks, d_blocks),
        in_specs=in_specs,
        out_specs=pl.BlockSpec((Kd, Ho, Wo, L), lambda nc, db: (db, 0, 0, nc)),
        scratch_shapes=[pltpu.VMEM((4, Hh, Wh, L), jnp.float32),
                        pltpu.VMEM((2, Ho, Wh, L), jnp.float32)],
        compiler_params=pltpu.CompilerParams(
            dimension_semantics=("parallel", "parallel"),
            vmem_limit_bytes=vmem_limit),
    )(*([xp] * (1 + n_halo)))

    # TODO(synk): optionally emit channels-last output so the consumer can fuse
    # away this final (1/8-scale) transpose.
    out = out[..., :NC].reshape(Do, Ho, Wo, N, C)
    return jnp.transpose(out, (3, 4, 0, 1, 2))


if __name__ == "__main__":
    key = jax.random.PRNGKey(0)
    # N*C = 128 -> one dense 128-lane channel block; depth is tiled on the grid.
    N, C, D, H, W = 2, 64, 8, 16, 16
    x = jax.random.normal(key, (N, C, D, H, W), dtype=jnp.float32).astype(jnp.bfloat16)

    fwd = jax.jit(blurpool3d)
    out = jax.block_until_ready(fwd(x))
    assert out.shape == (N, C, (D - 1) // 2 + 1, (H - 1) // 2 + 1, (W - 1) // 2 + 1), out.shape
    assert out.dtype == x.dtype

    # Pure-JAX reference: depthwise conv3d on the reflect-padded input (f32).
    f3 = make_blur_filter(3).astype(np.float32)
    w_ref = jnp.broadcast_to(jnp.asarray(f3)[None, None], (C, 1, 3, 3, 3))
    xpad = jnp.pad(x.astype(jnp.float32),
                   ((0, 0), (0, 0), (1, 1), (1, 1), (1, 1)), mode="reflect")
    ref = jax.lax.conv_general_dilated(
        xpad, w_ref, window_strides=(2, 2, 2), padding="VALID",
        dimension_numbers=("NCDHW", "OIDHW", "NCDHW"),
        feature_group_count=C)
    np.testing.assert_allclose(np.asarray(out, dtype=np.float32),
                               np.asarray(ref), atol=2e-2, rtol=2e-2)
    print("KERNEL_OK")
</pallas_src>

<mosaic_0001>
module attributes {stable_mosaic.version = 11 : i64} {
  func.func @_blurpool3d_kernel(%arg0: i32, %arg1: i32, %arg2: memref<16x9x9x128xbf16, #tpu.memory_space<vmem>>, %arg3: memref<4x9x9x128xbf16, #tpu.memory_space<vmem>>, %arg4: memref<2x8x8x128xbf16, #tpu.memory_space<vmem>>, %arg5: memref<4x9x9x128xf32, #tpu.memory_space<vmem>>, %arg6: memref<2x8x9x128xf32, #tpu.memory_space<vmem>>) attributes {dimension_semantics = [#tpu.dimension_semantics<parallel>, #tpu.dimension_semantics<parallel>], iteration_bounds = array<i64: 1, 2>, scalar_prefetch = 0 : i64, scratch_operands = 2 : i64, tpu.core_type = #tpu.core_type<tc>, window_params = [{transform_indices = @transform_0, window_bounds = array<i64: 16, 9, 9, 128>}, {transform_indices = @transform_1, window_bounds = array<i64: 4, 9, 9, 128>}, {transform_indices = @transform_2, window_bounds = array<i64: 2, 8, 8, 128>}]} {
    %c0 = arith.constant 0 : index
    %c0_0 = arith.constant 0 : index
    %c0_1 = arith.constant 0 : index
    %c0_2 = arith.constant 0 : index
    %0 = vector.load %arg2[%c0, %c0_0, %c0_1, %c0_2] : memref<16x9x9x128xbf16, #tpu.memory_space<vmem>>, vector<1x9x9x128xbf16>
    %1 = vector.shape_cast %0 : vector<1x9x9x128xbf16> to vector<9x9x128xbf16>
    %2 = arith.extf %1 : vector<9x9x128xbf16> to vector<9x9x128xf32>
    %c4 = arith.constant 4 : index
    %c0_3 = arith.constant 0 : index
    %c0_4 = arith.constant 0 : index
    %c0_5 = arith.constant 0 : index
    %3 = vector.load %arg2[%c4, %c0_3, %c0_4, %c0_5] : memref<16x9x9x128xbf16, #tpu.memory_space<vmem>>, vector<1x9x9x128xbf16>
    %4 = vector.shape_cast %3 : vector<1x9x9x128xbf16> to vector<9x9x128xbf16>
    %5 = arith.extf %4 : vector<9x9x128xbf16> to vector<9x9x128xf32>
    %cst = arith.constant 2.000000e+00 : f32
    %6 = vector.broadcast %cst : f32 to vector<9x9x128xf32>
    %7 = arith.mulf %6, %5 : vector<9x9x128xf32>
    %8 = arith.addf %2, %7 : vector<9x9x128xf32>
    %c8 = arith.constant 8 : index
    %c0_6 = arith.constant 0 : index
    %c0_7 = arith.constant 0 : index
    %c0_8 = arith.constant 0 : index
    %9 = vector.load %arg2[%c8, %c0_6, %c0_7, %c0_8] : memref<16x9x9x128xbf16, #tpu.memory_space<vmem>>, vector<1x9x9x128xbf16>
    %10 = vector.shape_cast %9 : vector<1x9x9x128xbf16> to vector<9x9x128xbf16>
    %11 = arith.extf %10 : vector<9x9x128xbf16> to vector<9x9x128xf32>
    %12 = arith.addf %8, %11 : vector<9x9x128xf32>
    %c0_9 = arith.constant 0 : index
    %c0_10 = arith.constant 0 : index
    %c0_11 = arith.constant 0 : index
    %c0_12 = arith.constant 0 : index
    %13 = vector.load %arg5[%c0_9, %c0_10, %c0_11, %c0_12] : memref<4x9x9x128xf32, #tpu.memory_space<vmem>>, vector<1x9x9x128xf32>
    %14 = vector.shape_cast %13 : vector<1x9x9x128xf32> to vector<9x9x128xf32>
    %15 = vector.shape_cast %12 : vector<9x9x128xf32> to vector<1x9x9x128xf32>
    tpu.vector_store %arg5[%c0_9, %c0_10, %c0_11, %c0_12], %15 {strides = array<i32>} : memref<4x9x9x128xf32, #tpu.memory_space<vmem>>, vector<1x9x9x128xf32>,
    %c1 = arith.constant 1 : index
    %c0_13 = arith.constant 0 : index
    %c0_14 = arith.constant 0 : index
    %c0_15 = arith.constant 0 : index
    %16 = vector.load %arg2[%c1, %c0_13, %c0_14, %c0_15] : memref<16x9x9x128xbf16, #tpu.memory_space<vmem>>, vector<1x9x9x128xbf16>
    %17 = vector.shape_cast %16 : vector<1x9x9x128xbf16> to vector<9x9x128xbf16>
    %18 = arith.extf %17 : vector<9x9x128xbf16> to vector<9x9x128xf32>
    %c5 = arith.constant 5 : index
    %c0_16 = arith.constant 0 : index
    %c0_17 = arith.constant 0 : index
    %c0_18 = arith.constant 0 : index
    %19 = vector.load %arg2[%c5, %c0_16, %c0_17, %c0_18] : memref<16x9x9x128xbf16, #tpu.memory_space<vmem>>, vector<1x9x9x128xbf16>
    %20 = vector.shape_cast %19 : vector<1x9x9x128xbf16> to vector<9x9x128xbf16>
    %21 = arith.extf %20 : vector<9x9x128xbf16> to vector<9x9x128xf32>
    %cst_19 = arith.constant 2.000000e+00 : f32
    %22 = vector.broadcast %cst_19 : f32 to vector<9x9x128xf32>
    %23 = arith.mulf %22, %21 : vector<9x9x128xf32>
    %24 = arith.addf %18, %23 : vector<9x9x128xf32>
    %c9 = arith.constant 9 : index
    %c0_20 = arith.constant 0 : index
    %c0_21 = arith.constant 0 : index
    %c0_22 = arith.constant 0 : index
    %25 = vector.load %arg2[%c9, %c0_20, %c0_21, %c0_22] : memref<16x9x9x128xbf16, #tpu.memory_space<vmem>>, vector<1x9x9x128xbf16>
    %26 = vector.shape_cast %25 : vector<1x9x9x128xbf16> to vector<9x9x128xbf16>
    %27 = arith.extf %26 : vector<9x9x128xbf16> to vector<9x9x128xf32>
    %28 = arith.addf %24, %27 : vector<9x9x128xf32>
    %c1_23 = arith.constant 1 : index
    %c0_24 = arith.constant 0 : index
    %c0_25 = arith.constant 0 : index
    %c0_26 = arith.constant 0 : index
    %29 = vector.load %arg5[%c1_23, %c0_24, %c0_25, %c0_26] : memref<4x9x9x128xf32, #tpu.memory_space<vmem>>, vector<1x9x9x128xf32>
    %30 = vector.shape_cast %29 : vector<1x9x9x128xf32> to vector<9x9x128xf32>
    %31 = vector.shape_cast %28 : vector<9x9x128xf32> to vector<1x9x9x128xf32>
    tpu.vector_store %arg5[%c1_23, %c0_24, %c0_25, %c0_26], %31 {strides = array<i32>} : memref<4x9x9x128xf32, #tpu.memory_space<vmem>>, vector<1x9x9x128xf32>,
    %c2 = arith.constant 2 : index
    %c0_27 = arith.constant 0 : index
    %c0_28 = arith.constant 0 : index
    %c0_29 = arith.constant 0 : index
    %32 = vector.load %arg2[%c2, %c0_27, %c0_28, %c0_29] : memref<16x9x9x128xbf16, #tpu.memory_space<vmem>>, vector<1x9x9x128xbf16>
    %33 = vector.shape_cast %32 : vector<1x9x9x128xbf16> to vector<9x9x128xbf16>
    %34 = arith.extf %33 : vector<9x9x128xbf16> to vector<9x9x128xf32>
    %c6 = arith.constant 6 : index
    %c0_30 = arith.constant 0 : index
    %c0_31 = arith.constant 0 : index
    %c0_32 = arith.constant 0 : index
    %35 = vector.load %arg2[%c6, %c0_30, %c0_31, %c0_32] : memref<16x9x9x128xbf16, #tpu.memory_space<vmem>>, vector<1x9x9x128xbf16>
    %36 = vector.shape_cast %35 : vector<1x9x9x128xbf16> to vector<9x9x128xbf16>
    %37 = arith.extf %36 : vector<9x9x128xbf16> to vector<9x9x128xf32>
    %cst_33 = arith.constant 2.000000e+00 : f32
    %38 = vector.broadcast %cst_33 : f32 to vector<9x9x128xf32>
    %39 = arith.mulf %38, %37 : vector<9x9x128xf32>
    %40 = arith.addf %34, %39 : vector<9x9x128xf32>
    %c10 = arith.constant 10 : index
    %c0_34 = arith.constant 0 : index
    %c0_35 = arith.constant 0 : index
    %c0_36 = arith.constant 0 : index
    %41 = vector.load %arg2[%c10, %c0_34, %c0_35, %c0_36] : memref<16x9x9x128xbf16, #tpu.memory_space<vmem>>, vector<1x9x9x128xbf16>
    %42 = vector.shape_cast %41 : vector<1x9x9x128xbf16> to vector<9x9x128xbf16>
    %43 = arith.extf %42 : vector<9x9x128xbf16> to vector<9x9x128xf32>
    %44 = arith.addf %40, %43 : vector<9x9x128xf32>
    %c2_37 = arith.constant 2 : index
    %c0_38 = arith.constant 0 : index
    %c0_39 = arith.constant 0 : index
    %c0_40 = arith.constant 0 : index
    %45 = vector.load %arg5[%c2_37, %c0_38, %c0_39, %c0_40] : memref<4x9x9x128xf32, #tpu.memory_space<vmem>>, vector<1x9x9x128xf32>
    %46 = vector.shape_cast %45 : vector<1x9x9x128xf32> to vector<9x9x128xf32>
    %47 = vector.shape_cast %44 : vector<9x9x128xf32> to vector<1x9x9x128xf32>
    tpu.vector_store %arg5[%c2_37, %c0_38, %c0_39, %c0_40], %47 {strides = array<i32>} : memref<4x9x9x128xf32, #tpu.memory_space<vmem>>, vector<1x9x9x128xf32>,
    %c3 = arith.constant 3 : index
    %c0_41 = arith.constant 0 : index
    %c0_42 = arith.constant 0 : index
    %c0_43 = arith.constant 0 : index
    %48 = vector.load %arg2[%c3, %c0_41, %c0_42, %c0_43] : memref<16x9x9x128xbf16, #tpu.memory_space<vmem>>, vector<1x9x9x128xbf16>
    %49 = vector.shape_cast %48 : vector<1x9x9x128xbf16> to vector<9x9x128xbf16>
    %50 = arith.extf %49 : vector<9x9x128xbf16> to vector<9x9x128xf32>
    %c7 = arith.constant 7 : index
    %c0_44 = arith.constant 0 : index
    %c0_45 = arith.constant 0 : index
    %c0_46 = arith.constant 0 : index
    %51 = vector.load %arg2[%c7, %c0_44, %c0_45, %c0_46] : memref<16x9x9x128xbf16, #tpu.memory_space<vmem>>, vector<1x9x9x128xbf16>
    %52 = vector.shape_cast %51 : vector<1x9x9x128xbf16> to vector<9x9x128xbf16>
    %53 = arith.extf %52 : vector<9x9x128xbf16> to vector<9x9x128xf32>
    %cst_47 = arith.constant 2.000000e+00 : f32
    %54 = vector.broadcast %cst_47 : f32 to vector<9x9x128xf32>
    %55 = arith.mulf %54, %53 : vector<9x9x128xf32>
    %56 = arith.addf %50, %55 : vector<9x9x128xf32>
    %c11 = arith.constant 11 : index
    %c0_48 = arith.constant 0 : index
    %c0_49 = arith.constant 0 : index
    %c0_50 = arith.constant 0 : index
    %57 = vector.load %arg2[%c11, %c0_48, %c0_49, %c0_50] : memref<16x9x9x128xbf16, #tpu.memory_space<vmem>>, vector<1x9x9x128xbf16>
    %58 = vector.shape_cast %57 : vector<1x9x9x128xbf16> to vector<9x9x128xbf16>
    %59 = arith.extf %58 : vector<9x9x128xbf16> to vector<9x9x128xf32>
    %60 = arith.addf %56, %59 : vector<9x9x128xf32>
    %c3_51 = arith.constant 3 : index
    %c0_52 = arith.constant 0 : index
    %c0_53 = arith.constant 0 : index
    %c0_54 = arith.constant 0 : index
    %61 = vector.load %arg5[%c3_51, %c0_52, %c0_53, %c0_54] : memref<4x9x9x128xf32, #tpu.memory_space<vmem>>, vector<1x9x9x128xf32>
    %62 = vector.shape_cast %61 : vector<1x9x9x128xf32> to vector<9x9x128xf32>
    %63 = vector.shape_cast %60 : vector<9x9x128xf32> to vector<1x9x9x128xf32>
    tpu.vector_store %arg5[%c3_51, %c0_52, %c0_53, %c0_54], %63 {strides = array<i32>} : memref<4x9x9x128xf32, #tpu.memory_space<vmem>>, vector<1x9x9x128xf32>,
    %c0_55 = arith.constant 0 : index
    %c0_56 = arith.constant 0 : index
    %c0_57 = arith.constant 0 : index
    %c0_58 = arith.constant 0 : index
    %64 = vector.load %arg5[%c0_55, %c0_56, %c0_57, %c0_58] : memref<4x9x9x128xf32, #tpu.memory_space<vmem>>, vector<1x8x9x128xf32>
    %65 = vector.shape_cast %64 : vector<1x8x9x128xf32> to vector<8x9x128xf32>
    %c2_59 = arith.constant 2 : index
    %c0_60 = arith.constant 0 : index
    %c0_61 = arith.constant 0 : index
    %c0_62 = arith.constant 0 : index
    %66 = vector.load %arg5[%c2_59, %c0_60, %c0_61, %c0_62] : memref<4x9x9x128xf32, #tpu.memory_space<vmem>>, vector<1x8x9x128xf32>
    %67 = vector.shape_cast %66 : vector<1x8x9x128xf32> to vector<8x9x128xf32>
    %cst_63 = arith.constant 2.000000e+00 : f32
    %68 = vector.broadcast %cst_63 : f32 to vector<8x9x128xf32>
    %69 = arith.mulf %68, %67 : vector<8x9x128xf32>
    %70 = arith.addf %65, %69 : vector<8x9x128xf32>
    %c0_64 = arith.constant 0 : index
    %c1_65 = arith.constant 1 : index
    %c0_66 = arith.constant 0 : index
    %c0_67 = arith.constant 0 : index
    %71 = vector.load %arg5[%c0_64, %c1_65, %c0_66, %c0_67] : memref<4x9x9x128xf32, #tpu.memory_space<vmem>>, vector<1x8x9x128xf32>
    %72 = vector.shape_cast %71 : vector<1x8x9x128xf32> to vector<8x9x128xf32>
    %73 = arith.addf %70, %72 : vector<8x9x128xf32>
    %c0_68 = arith.constant 0 : index
    %c0_69 = arith.constant 0 : index
    %c0_70 = arith.constant 0 : index
    %c0_71 = arith.constant 0 : index
    %74 = vector.load %arg6[%c0_68, %c0_69, %c0_70, %c0_71] : memref<2x8x9x128xf32, #tpu.memory_space<vmem>>, vector<1x8x9x128xf32>
    %75 = vector.shape_cast %74 : vector<1x8x9x128xf32> to vector<8x9x128xf32>
    %76 = vector.shape_cast %73 : vector<8x9x128xf32> to vector<1x8x9x128xf32>
    tpu.vector_store %arg6[%c0_68, %c0_69, %c0_70, %c0_71], %76 {strides = array<i32>} : memref<2x8x9x128xf32, #tpu.memory_space<vmem>>, vector<1x8x9x128xf32>,
    %c1_72 = arith.constant 1 : index
    %c0_73 = arith.constant 0 : index
    %c0_74 = arith.constant 0 : index
    %c0_75 = arith.constant 0 : index
    %77 = vector.load %arg5[%c1_72, %c0_73, %c0_74, %c0_75] : memref<4x9x9x128xf32, #tpu.memory_space<vmem>>, vector<1x8x9x128xf32>
    %78 = vector.shape_cast %77 : vector<1x8x9x128xf32> to vector<8x9x128xf32>
    %c3_76 = arith.constant 3 : index
    %c0_77 = arith.constant 0 : index
    %c0_78 = arith.constant 0 : index
    %c0_79 = arith.constant 0 : index
    %79 = vector.load %arg5[%c3_76, %c0_77, %c0_78, %c0_79] : memref<4x9x9x128xf32, #tpu.memory_space<vmem>>, vector<1x8x9x128xf32>
    %80 = vector.shape_cast %79 : vector<1x8x9x128xf32> to vector<8x9x128xf32>
    %cst_80 = arith.constant 2.000000e+00 : f32
    %81 = vector.broadcast %cst_80 : f32 to vector<8x9x128xf32>
    %82 = arith.mulf %81, %80 : vector<8x9x128xf32>
    %83 = arith.addf %78, %82 : vector<8x9x128xf32>
    %c1_81 = arith.constant 1 : index
    %c1_82 = arith.constant 1 : index
    %c0_83 = arith.constant 0 : index
    %c0_84 = arith.constant 0 : index
    %84 = vector.load %arg5[%c1_81, %c1_82, %c0_83, %c0_84] : memref<4x9x9x128xf32, #tpu.memory_space<vmem>>, vector<1x8x9x128xf32>
    %85 = vector.shape_cast %84 : vector<1x8x9x128xf32> to vector<8x9x128xf32>
    %86 = arith.addf %83, %85 : vector<8x9x128xf32>
    %c1_85 = arith.constant 1 : index
    %c0_86 = arith.constant 0 : index
    %c0_87 = arith.constant 0 : index
    %c0_88 = arith.constant 0 : index
    %87 = vector.load %arg6[%c1_85, %c0_86, %c0_87, %c0_88] : memref<2x8x9x128xf32, #tpu.memory_space<vmem>>, vector<1x8x9x128xf32>
    %88 = vector.shape_cast %87 : vector<1x8x9x128xf32> to vector<8x9x128xf32>
    %89 = vector.shape_cast %86 : vector<8x9x128xf32> to vector<1x8x9x128xf32>
    tpu.vector_store %arg6[%c1_85, %c0_86, %c0_87, %c0_88], %89 {strides = array<i32>} : memref<2x8x9x128xf32, #tpu.memory_space<vmem>>, vector<1x8x9x128xf32>,
    %c0_89 = arith.constant 0 : index
    %c0_90 = arith.constant 0 : index
    %c0_91 = arith.constant 0 : index
    %c0_92 = arith.constant 0 : index
    %90 = vector.load %arg6[%c0_89, %c0_90, %c0_91, %c0_92] : memref<2x8x9x128xf32, #tpu.memory_space<vmem>>, vector<1x8x8x128xf32>
    %91 = vector.shape_cast %90 : vector<1x8x8x128xf32> to vector<8x8x128xf32>
    %cst_93 = arith.constant 1.562500e-02 : f32
    %92 = vector.broadcast %cst_93 : f32 to vector<8x8x128xf32>
    %93 = arith.mulf %92, %91 : vector<8x8x128xf32>
    %c1_94 = arith.constant 1 : index
    %c0_95 = arith.constant 0 : index
    %c0_96 = arith.constant 0 : index
    %c0_97 = arith.constant 0 : index
    %94 = vector.load %arg6[%c1_94, %c0_95, %c0_96, %c0_97] : memref<2x8x9x128xf32, #tpu.memory_space<vmem>>, vector<1x8x8x128xf32>
    %95 = vector.shape_cast %94 : vector<1x8x8x128xf32> to vector<8x8x128xf32>
    %cst_98 = arith.constant 3.125000e-02 : f32
    %96 = vector.broadcast %cst_98 : f32 to vector<8x8x128xf32>
    %97 = arith.mulf %96, %95 : vector<8x8x128xf32>
    %98 = arith.addf %93, %97 : vector<8x8x128xf32>
    %c0_99 = arith.constant 0 : index
    %c0_100 = arith.constant 0 : index
    %c1_101 = arith.constant 1 : index
    %c0_102 = arith.constant 0 : index
    %99 = vector.load %arg6[%c0_99, %c0_100, %c1_101, %c0_102] : memref<2x8x9x128xf32, #tpu.memory_space<vmem>>, vector<1x8x8x128xf32>
    %100 = vector.shape_cast %99 : vector<1x8x8x128xf32> to vector<8x8x128xf32>
    %cst_103 = arith.constant 1.562500e-02 : f32
    %101 = vector.broadcast %cst_103 : f32 to vector<8x8x128xf32>
    %102 = arith.mulf %101, %100 : vector<8x8x128xf32>
    %103 = arith.addf %98, %102 : vector<8x8x128xf32>
    %104 = arith.truncf %103 : vector<8x8x128xf32> to vector<8x8x128xbf16>
    %c0_104 = arith.constant 0 : index
    %c0_105 = arith.constant 0 : index
    %c0_106 = arith.constant 0 : index
    %c0_107 = arith.constant 0 : index
    %105 = vector.load %arg4[%c0_104, %c0_105, %c0_106, %c0_107] : memref<2x8x8x128xbf16, #tpu.memory_space<vmem>>, vector<1x8x8x128xbf16>
    %106 = vector.shape_cast %105 : vector<1x8x8x128xbf16> to vector<8x8x128xbf16>
    %107 = vector.shape_cast %104 : vector<8x8x128xbf16> to vector<1x8x8x128xbf16>
    tpu.vector_store %arg4[%c0_104, %c0_105, %c0_106, %c0_107], %107 {strides = array<i32>} : memref<2x8x8x128xbf16, #tpu.memory_space<vmem>>, vector<1x8x8x128xbf16>,
    %c8_108 = arith.constant 8 : index
    %c0_109 = arith.constant 0 : index
    %c0_110 = arith.constant 0 : index
    %c0_111 = arith.constant 0 : index
    %108 = vector.load %arg2[%c8_108, %c0_109, %c0_110, %c0_111] : memref<16x9x9x128xbf16, #tpu.memory_space<vmem>>, vector<1x9x9x128xbf16>
    %109 = vector.shape_cast %108 : vector<1x9x9x128xbf16> to vector<9x9x128xbf16>
    %110 = arith.extf %109 : vector<9x9x128xbf16> to vector<9x9x128xf32>
    %c12 = arith.constant 12 : index
    %c0_112 = arith.constant 0 : index
    %c0_113 = arith.constant 0 : index
    %c0_114 = arith.constant 0 : index
    %111 = vector.load %arg2[%c12, %c0_112, %c0_113, %c0_114] : memref<16x9x9x128xbf16, #tpu.memory_space<vmem>>, vector<1x9x9x128xbf16>
    %112 = vector.shape_cast %111 : vector<1x9x9x128xbf16> to vector<9x9x128xbf16>
    %113 = arith.extf %112 : vector<9x9x128xbf16> to vector<9x9x128xf32>
    %cst_115 = arith.constant 2.000000e+00 : f32
    %114 = vector.broadcast %cst_115 : f32 to vector<9x9x128xf32>
    %115 = arith.mulf %114, %113 : vector<9x9x128xf32>
    %116 = arith.addf %110, %115 : vector<9x9x128xf32>
    %c0_116 = arith.constant 0 : index
    %c0_117 = arith.constant 0 : index
    %c0_118 = arith.constant 0 : index
    %c0_119 = arith.constant 0 : index
    %117 = vector.load %arg3[%c0_116, %c0_117, %c0_118, %c0_119] : memref<4x9x9x128xbf16, #tpu.memory_space<vmem>>, vector<1x9x9x128xbf16>
    %118 = vector.shape_cast %117 : vector<1x9x9x128xbf16> to vector<9x9x128xbf16>
    %119 = arith.extf %118 : vector<9x9x128xbf16> to vector<9x9x128xf32>
    %120 = arith.addf %116, %119 : vector<9x9x128xf32>
    %c0_120 = arith.constant 0 : index
    %c0_121 = arith.constant 0 : index
    %c0_122 = arith.constant 0 : index
    %c0_123 = arith.constant 0 : index
    %121 = vector.load %arg5[%c0_120, %c0_121, %c0_122, %c0_123] : memref<4x9x9x128xf32, #tpu.memory_space<vmem>>, vector<1x9x9x128xf32>
    %122 = vector.shape_cast %121 : vector<1x9x9x128xf32> to vector<9x9x128xf32>
    %123 = vector.shape_cast %120 : vector<9x9x128xf32> to vector<1x9x9x128xf32>
    tpu.vector_store %arg5[%c0_120, %c0_121, %c0_122, %c0_123], %123 {strides = array<i32>} : memref<4x9x9x128xf32, #tpu.memory_space<vmem>>, vector<1x9x9x128xf32>,
    %c9_124 = arith.constant 9 : index
    %c0_125 = arith.constant 0 : index
    %c0_126 = arith.constant 0 : index
    %c0_127 = arith.constant 0 : index
    %124 = vector.load %arg2[%c9_124, %c0_125, %c0_126, %c0_127] : memref<16x9x9x128xbf16, #tpu.memory_space<vmem>>, vector<1x9x9x128xbf16>
    %125 = vector.shape_cast %124 : vector<1x9x9x128xbf16> to vector<9x9x128xbf16>
    %126 = arith.extf %125 : vector<9x9x128xbf16> to vector<9x9x128xf32>
    %c13 = arith.constant 13 : index
    %c0_128 = arith.constant 0 : index
    %c0_129 = arith.constant 0 : index
    %c0_130 = arith.constant 0 : index
    %127 = vector.load %arg2[%c13, %c0_128, %c0_129, %c0_130] : memref<16x9x9x128xbf16, #tpu.memory_space<vmem>>, vector<1x9x9x128xbf16>
    %128 = vector.shape_cast %127 : vector<1x9x9x128xbf16> to vector<9x9x128xbf16>
    %129 = arith.extf %128 : vector<9x9x128xbf16> to vector<9x9x128xf32>
    %cst_131 = arith.constant 2.000000e+00 : f32
    %130 = vector.broadcast %cst_131 : f32 to vector<9x9x128xf32>
    %131 = arith.mulf %130, %129 : vector<9x9x128xf32>
    %132 = arith.addf %126, %131 : vector<9x9x128xf32>
    %c1_132 = arith.constant 1 : index
    %c0_133 = arith.constant 0 : index
    %c0_134 = arith.constant 0 : index
    %c0_135 = arith.constant 0 : index
    %133 = vector.load %arg3[%c1_132, %c0_133, %c0_134, %c0_135] : memref<4x9x9x128xbf16, #tpu.memory_space<vmem>>, vector<1x9x9x128xbf16>
    %134 = vector.shape_cast %133 : vector<1x9x9x128xbf16> to vector<9x9x128xbf16>
    %135 = arith.extf %134 : vector<9x9x128xbf16> to vector<9x9x128xf32>
    %136 = arith.addf %132, %135 : vector<9x9x128xf32>
    %c1_136 = arith.constant 1 : index
    %c0_137 = arith.constant 0 : index
    %c0_138 = arith.constant 0 : index
    %c0_139 = arith.constant 0 : index
    %137 = vector.load %arg5[%c1_136, %c0_137, %c0_138, %c0_139] : memref<4x9x9x128xf32, #tpu.memory_space<vmem>>, vector<1x9x9x128xf32>
    %138 = vector.shape_cast %137 : vector<1x9x9x128xf32> to vector<9x9x128xf32>
    %139 = vector.shape_cast %136 : vector<9x9x128xf32> to vector<1x9x9x128xf32>
    tpu.vector_store %arg5[%c1_136, %c0_137, %c0_138, %c0_139], %139 {strides = array<i32>} : memref<4x9x9x128xf32, #tpu.memory_space<vmem>>, vector<1x9x9x128xf32>,
    %c10_140 = arith.constant 10 : index
    %c0_141 = arith.constant 0 : index
    %c0_142 = arith.constant 0 : index
    %c0_143 = arith.constant 0 : index
    %140 = vector.load %arg2[%c10_140, %c0_141, %c0_142, %c0_143] : memref<16x9x9x128xbf16, #tpu.memory_space<vmem>>, vector<1x9x9x128xbf16>
    %141 = vector.shape_cast %140 : vector<1x9x9x128xbf16> to vector<9x9x128xbf16>
    %142 = arith.extf %141 : vector<9x9x128xbf16> to vector<9x9x128xf32>
    %c14 = arith.constant 14 : index
    %c0_144 = arith.constant 0 : index
    %c0_145 = arith.constant 0 : index
    %c0_146 = arith.constant 0 : index
    %143 = vector.load %arg2[%c14, %c0_144, %c0_145, %c0_146] : memref<16x9x9x128xbf16, #tpu.memory_space<vmem>>, vector<1x9x9x128xbf16>
    %144 = vector.shape_cast %143 : vector<1x9x9x128xbf16> to vector<9x9x128xbf16>
    %145 = arith.extf %144 : vector<9x9x128xbf16> to vector<9x9x128xf32>
    %cst_147 = arith.constant 2.000000e+00 : f32
    %146 = vector.broadcast %cst_147 : f32 to vector<9x9x128xf32>
    %147 = arith.mulf %146, %145 : vector<9x9x128xf32>
    %148 = arith.addf %142, %147 : vector<9x9x128xf32>
    %c2_148 = arith.constant 2 : index
    %c0_149 = arith.constant 0 : index
    %c0_150 = arith.constant 0 : index
    %c0_151 = arith.constant 0 : index
    %149 = vector.load %arg3[%c2_148, %c0_149, %c0_150, %c0_151] : memref<4x9x9x128xbf16, #tpu.memory_space<vmem>>, vector<1x9x9x128xbf16>
    %150 = vector.shape_cast %149 : vector<1x9x9x128xbf16> to vector<9x9x128xbf16>
    %151 = arith.extf %150 : vector<9x9x128xbf16> to vector<9x9x128xf32>
    %152 = arith.addf %148, %151 : vector<9x9x128xf32>
    %c2_152 = arith.constant 2 : index
    %c0_153 = arith.constant 0 : index
    %c0_154 = arith.constant 0 : index
    %c0_155 = arith.constant 0 : index
    %153 = vector.load %arg5[%c2_152, %c0_153, %c0_154, %c0_155] : memref<4x9x9x128xf32, #tpu.memory_space<vmem>>, vector<1x9x9x128xf32>
    %154 = vector.shape_cast %153 : vector<1x9x9x128xf32> to vector<9x9x128xf32>
    %155 = vector.shape_cast %152 : vector<9x9x128xf32> to vector<1x9x9x128xf32>
    tpu.vector_store %arg5[%c2_152, %c0_153, %c0_154, %c0_155], %155 {strides = array<i32>} : memref<4x9x9x128xf32, #tpu.memory_space<vmem>>, vector<1x9x9x128xf32>,
    %c11_156 = arith.constant 11 : index
    %c0_157 = arith.constant 0 : index
    %c0_158 = arith.constant 0 : index
    %c0_159 = arith.constant 0 : index
    %156 = vector.load %arg2[%c11_156, %c0_157, %c0_158, %c0_159] : memref<16x9x9x128xbf16, #tpu.memory_space<vmem>>, vector<1x9x9x128xbf16>
    %157 = vector.shape_cast %156 : vector<1x9x9x128xbf16> to vector<9x9x128xbf16>
    %158 = arith.extf %157 : vector<9x9x128xbf16> to vector<9x9x128xf32>
    %c15 = arith.constant 15 : index
    %c0_160 = arith.constant 0 : index
    %c0_161 = arith.constant 0 : index
    %c0_162 = arith.constant 0 : index
    %159 = vector.load %arg2[%c15, %c0_160, %c0_161, %c0_162] : memref<16x9x9x128xbf16, #tpu.memory_space<vmem>>, vector<1x9x9x128xbf16>
    %160 = vector.shape_cast %159 : vector<1x9x9x128xbf16> to vector<9x9x128xbf16>
    %161 = arith.extf %160 : vector<9x9x128xbf16> to vector<9x9x128xf32>
    %cst_163 = arith.constant 2.000000e+00 : f32
    %162 = vector.broadcast %cst_163 : f32 to vector<9x9x128xf32>
    %163 = arith.mulf %162, %161 : vector<9x9x128xf32>
    %164 = arith.addf %158, %163 : vector<9x9x128xf32>
    %c3_164 = arith.constant 3 : index
    %c0_165 = arith.constant 0 : index
    %c0_166 = arith.constant 0 : index
    %c0_167 = arith.constant 0 : index
    %165 = vector.load %arg3[%c3_164, %c0_165, %c0_166, %c0_167] : memref<4x9x9x128xbf16, #tpu.memory_space<vmem>>, vector<1x9x9x128xbf16>
    %166 = vector.shape_cast %165 : vector<1x9x9x128xbf16> to vector<9x9x128xbf16>
    %167 = arith.extf %166 : vector<9x9x128xbf16> to vector<9x9x128xf32>
    %168 = arith.addf %164, %167 : vector<9x9x128xf32>
    %c3_168 = arith.constant 3 : index
    %c0_169 = arith.constant 0 : index
    %c0_170 = arith.constant 0 : index
    %c0_171 = arith.constant 0 : index
    %169 = vector.load %arg5[%c3_168, %c0_169, %c0_170, %c0_171] : memref<4x9x9x128xf32, #tpu.memory_space<vmem>>, vector<1x9x9x128xf32>
    %170 = vector.shape_cast %169 : vector<1x9x9x128xf32> to vector<9x9x128xf32>
    %171 = vector.shape_cast %168 : vector<9x9x128xf32> to vector<1x9x9x128xf32>
    tpu.vector_store %arg5[%c3_168, %c0_169, %c0_170, %c0_171], %171 {strides = array<i32>} : memref<4x9x9x128xf32, #tpu.memory_space<vmem>>, vector<1x9x9x128xf32>,
    %c0_172 = arith.constant 0 : index
    %c0_173 = arith.constant 0 : index
    %c0_174 = arith.constant 0 : index
    %c0_175 = arith.constant 0 : index
    %172 = vector.load %arg5[%c0_172, %c0_173, %c0_174, %c0_175] : memref<4x9x9x128xf32, #tpu.memory_space<vmem>>, vector<1x8x9x128xf32>
    %173 = vector.shape_cast %172 : vector<1x8x9x128xf32> to vector<8x9x128xf32>
    %c2_176 = arith.constant 2 : index
    %c0_177 = arith.constant 0 : index
    %c0_178 = arith.constant 0 : index
    %c0_179 = arith.constant 0 : index
    %174 = vector.load %arg5[%c2_176, %c0_177, %c0_178, %c0_179] : memref<4x9x9x128xf32, #tpu.memory_space<vmem>>, vector<1x8x9x128xf32>
    %175 = vector.shape_cast %174 : vector<1x8x9x128xf32> to vector<8x9x128xf32>
    %cst_180 = arith.constant 2.000000e+00 : f32
    %176 = vector.broadcast %cst_180 : f32 to vector<8x9x128xf32>
    %177 = arith.mulf %176, %175 : vector<8x9x128xf32>
    %178 = arith.addf %173, %177 : vector<8x9x128xf32>
    %c0_181 = arith.constant 0 : index
    %c1_182 = arith.constant 1 : index
    %c0_183 = arith.constant 0 : index
    %c0_184 = arith.constant 0 : index
    %179 = vector.load %arg5[%c0_181, %c1_182, %c0_183, %c0_184] : memref<4x9x9x128xf32, #tpu.memory_space<vmem>>, vector<1x8x9x128xf32>
    %180 = vector.shape_cast %179 : vector<1x8x9x128xf32> to vector<8x9x128xf32>
    %181 = arith.addf %178, %180 : vector<8x9x128xf32>
    %c0_185 = arith.constant 0 : index
    %c0_186 = arith.constant 0 : index
    %c0_187 = arith.constant 0 : index
    %c0_188 = arith.constant 0 : index
    %182 = vector.load %arg6[%c0_185, %c0_186, %c0_187, %c0_188] : memref<2x8x9x128xf32, #tpu.memory_space<vmem>>, vector<1x8x9x128xf32>
    %183 = vector.shape_cast %182 : vector<1x8x9x128xf32> to vector<8x9x128xf32>
    %184 = vector.shape_cast %181 : vector<8x9x128xf32> to vector<1x8x9x128xf32>
    tpu.vector_store %arg6[%c0_185, %c0_186, %c0_187, %c0_188], %184 {strides = array<i32>} : memref<2x8x9x128xf32, #tpu.memory_space<vmem>>, vector<1x8x9x128xf32>,
    %c1_189 = arith.constant 1 : index
    %c0_190 = arith.constant 0 : index
    %c0_191 = arith.constant 0 : index
    %c0_192 = arith.constant 0 : index
    %185 = vector.load %arg5[%c1_189, %c0_190, %c0_191, %c0_192] : memref<4x9x9x128xf32, #tpu.memory_space<vmem>>, vector<1x8x9x128xf32>
    %186 = vector.shape_cast %185 : vector<1x8x9x128xf32> to vector<8x9x128xf32>
    %c3_193 = arith.constant 3 : index
    %c0_194 = arith.constant 0 : index
    %c0_195 = arith.constant 0 : index
    %c0_196 = arith.constant 0 : index
    %187 = vector.load %arg5[%c3_193, %c0_194, %c0_195, %c0_196] : memref<4x9x9x128xf32, #tpu.memory_space<vmem>>, vector<1x8x9x128xf32>
    %188 = vector.shape_cast %187 : vector<1x8x9x128xf32> to vector<8x9x128xf32>
    %cst_197 = arith.constant 2.000000e+00 : f32
    %189 = vector.broadcast %cst_197 : f32 to vector<8x9x128xf32>
    %190 = arith.mulf %189, %188 : vector<8x9x128xf32>
    %191 = arith.addf %186, %190 : vector<8x9x128xf32>
    %c1_198 = arith.constant 1 : index
    %c1_199 = arith.constant 1 : index
    %c0_200 = arith.constant 0 : index
    %c0_201 = arith.constant 0 : index
    %192 = vector.load %arg5[%c1_198, %c1_199, %c0_200, %c0_201] : memref<4x9x9x128xf32, #tpu.memory_space<vmem>>, vector<1x8x9x128xf32>
    %193 = vector.shape_cast %192 : vector<1x8x9x128xf32> to vector<8x9x128xf32>
    %194 = arith.addf %191, %193 : vector<8x9x128xf32>
    %c1_202 = arith.constant 1 : index
    %c0_203 = arith.constant 0 : index
    %c0_204 = arith.constant 0 : index
    %c0_205 = arith.constant 0 : index
    %195 = vector.load %arg6[%c1_202, %c0_203, %c0_204, %c0_205] : memref<2x8x9x128xf32, #tpu.memory_space<vmem>>, vector<1x8x9x128xf32>
    %196 = vector.shape_cast %195 : vector<1x8x9x128xf32> to vector<8x9x128xf32>
    %197 = vector.shape_cast %194 : vector<8x9x128xf32> to vector<1x8x9x128xf32>
    tpu.vector_store %arg6[%c1_202, %c0_203, %c0_204, %c0_205], %197 {strides = array<i32>} : memref<2x8x9x128xf32, #tpu.memory_space<vmem>>, vector<1x8x9x128xf32>,
    %c0_206 = arith.constant 0 : index
    %c0_207 = arith.constant 0 : index
    %c0_208 = arith.constant 0 : index
    %c0_209 = arith.constant 0 : index
    %198 = vector.load %arg6[%c0_206, %c0_207, %c0_208, %c0_209] : memref<2x8x9x128xf32, #tpu.memory_space<vmem>>, vector<1x8x8x128xf32>
    %199 = vector.shape_cast %198 : vector<1x8x8x128xf32> to vector<8x8x128xf32>
    %cst_210 = arith.constant 1.562500e-02 : f32
    %200 = vector.broadcast %cst_210 : f32 to vector<8x8x128xf32>
    %201 = arith.mulf %200, %199 : vector<8x8x128xf32>
    %c1_211 = arith.constant 1 : index
    %c0_212 = arith.constant 0 : index
    %c0_213 = arith.constant 0 : index
    %c0_214 = arith.constant 0 : index
    %202 = vector.load %arg6[%c1_211, %c0_212, %c0_213, %c0_214] : memref<2x8x9x128xf32, #tpu.memory_space<vmem>>, vector<1x8x8x128xf32>
    %203 = vector.shape_cast %202 : vector<1x8x8x128xf32> to vector<8x8x128xf32>
    %cst_215 = arith.constant 3.125000e-02 : f32
    %204 = vector.broadcast %cst_215 : f32 to vector<8x8x128xf32>
    %205 = arith.mulf %204, %203 : vector<8x8x128xf32>
    %206 = arith.addf %201, %205 : vector<8x8x128xf32>
    %c0_216 = arith.constant 0 : index
    %c0_217 = arith.constant 0 : index
    %c1_218 = arith.constant 1 : index
    %c0_219 = arith.constant 0 : index
    %207 = vector.load %arg6[%c0_216, %c0_217, %c1_218, %c0_219] : memref<2x8x9x128xf32, #tpu.memory_space<vmem>>, vector<1x8x8x128xf32>
    %208 = vector.shape_cast %207 : vector<1x8x8x128xf32> to vector<8x8x128xf32>
    %cst_220 = arith.constant 1.562500e-02 : f32
    %209 = vector.broadcast %cst_220 : f32 to vector<8x8x128xf32>
    %210 = arith.mulf %209, %208 : vector<8x8x128xf32>
    %211 = arith.addf %206, %210 : vector<8x8x128xf32>
    %212 = arith.truncf %211 : vector<8x8x128xf32> to vector<8x8x128xbf16>
    %c1_221 = arith.constant 1 : index
    %c0_222 = arith.constant 0 : index
    %c0_223 = arith.constant 0 : index
    %c0_224 = arith.constant 0 : index
    %213 = vector.load %arg4[%c1_221, %c0_222, %c0_223, %c0_224] : memref<2x8x8x128xbf16, #tpu.memory_space<vmem>>, vector<1x8x8x128xbf16>
    %214 = vector.shape_cast %213 : vector<1x8x8x128xbf16> to vector<8x8x128xbf16>
    %215 = vector.shape_cast %212 : vector<8x8x128xbf16> to vector<1x8x8x128xbf16>
    tpu.vector_store %arg4[%c1_221, %c0_222, %c0_223, %c0_224], %215 {strides = array<i32>} : memref<2x8x8x128xbf16, #tpu.memory_space<vmem>>, vector<1x8x8x128xbf16>,
    return
  }
  func.func @transform_0(%arg0: i32, %arg1: i32) -> (i32, i32, i32, i32) {
    %c0_i32 = arith.constant 0 : i32
    %c0_i32_0 = arith.constant 0 : i32
    %c0_i32_1 = arith.constant 0 : i32
    return %arg1, %c0_i32, %c0_i32_0, %arg0 : i32, i32, i32, i32
  }
  func.func @transform_1(%arg0: i32, %arg1: i32) -> (i32, i32, i32, i32) {
    %c2_i32 = arith.constant 2 : i32
    %0 = arith.muli %arg1, %c2_i32 : i32
    %c2_i32_0 = arith.constant 2 : i32
    %1 = arith.addi %0, %c2_i32_0 : i32
    %c0_i32 = arith.constant 0 : i32
    %2 = arith.addi %1, %c0_i32 : i32
    %c4_i32 = arith.constant 4 : i32
    %3 = arith.minsi %2, %c4_i32 : i32
    %c2_i32_1 = arith.constant 2 : i32
    %4 = arith.muli %3, %c2_i32_1 : i32
    %c0_i32_2 = arith.constant 0 : i32
    %c0_i32_3 = arith.constant 0 : i32
    %c0_i32_4 = arith.constant 0 : i32
    return %4, %c0_i32_2, %c0_i32_3, %arg0 : i32, i32, i32, i32
  }
  func.func @transform_2(%arg0: i32, %arg1: i32) -> (i32, i32, i32, i32) {
    %c0_i32 = arith.constant 0 : i32
    %c0_i32_0 = arith.constant 0 : i32
    %c0_i32_1 = arith.constant 0 : i32
    return %arg1, %c0_i32, %c0_i32_0, %arg0 : i32, i32, i32, i32
  }
}

</mosaic_0001>

<bundles_post_ra>
// kernel: blurpool3d.1
= control target key start
LH: loop header
LB: loop body
LE: loop exit
PB: predicated region body
PF: predicated region fallthrough
CT: control target
= control target key end

     0   :  { %s3000_s9 = smov 0   ;;  %s3002_s10 = smov 0   ;;  %s3901_s0 = inlined_call_operand.vmem [shape: bf16[40,9,9,128], index: 0, kind: input, shape index: {}, may-alias: {0,1}]   ;;  %s3902_s1 = inlined_call_operand.vmem [shape: bf16[40,9,9,128], index: 1, kind: input, shape index: {}, may-alias: {0,1}]   ;;  %s3903_s2 = inlined_call_operand.vmem [shape: bf16[4,8,8,128], index: 2, kind: output, shape index: {}]  }
   0x1   :  { %s3004_s11 = smov 0  }
   0x2 LB: > { %s21_s12 = sadd.s32 1, %s2979_s10  ;;  %p2470_p0 = scmp.ge.s32.totalorder %s2983_s11, 1  ;;  %s2983_s11 = sphi %s3004_s11, %s12_s11   ;;  %s2979_s10 = sphi %s3002_s10, %s3969_s10   ;;  %s2975_s9 = sphi %s3000_s9, %s3968_s9  }
   0x3   : > { %p22_p1 = scmp.ge.s32.totalorder %s21_s12, 2  ;;  %p182_p2 = scmp.lt.s32.totalorder %s2983_s11, 3 }
   0x5   : > { %s3971_s12 = smov (%p22_p1, %s21_s12), 0  ;;  %p183_p3 = pnand %p2470_p0, %p182_p2 }
   0x7   : > { %186 = sbr.rel (%p183_p3) target bundleno = 305 (0x131), region = 28 }
   0xc   : > { %s2471_s13 = sshll.u32 %s2975_s9, 4  ;;  %s3116_s18 = sshll.u32 %s2975_s9, 1 }
   0xd   : > { %p239_p4 = scmp.lt.s32.totalorder %s2471_s13, 39  ;;  %s255_s19 = sadd.s32 2, %s3116_s18 }
   0xe   : > { %p3133_p5 = scmp.lt.s32.totalorder %s255_s19, 4  ;;  %p275_p7 = scmp.lt.s32.totalorder %s3116_s18, 3 }
   0xf   : > { %s3973_s13 = smov (!%p239_p4, %s2471_s13), 39 }
  0x10   : > { %s2935_s14 = smul.u32 72, %s3973_s13  ;;  %s3975_s19 = smov (!%p3133_p5, %s255_s19), 4 }
  0x11   : > { %s2886_s21 = sshll.u32 %s3975_s19, 3  ;;  %s3979_s18 = smov (!%p275_p7, %s3116_s18), 3 }
  0x12   : > { %s3024_s17 = scalar_lea.vmem %s3901_s0, %s2935_s14  ;;  %p3170_p6 = scmp.lt.s32.totalorder %s2886_s21, 39 }
  0x13   : > { %v2570_v0 = vld [vmem:[%s3024_s17 + $0x90] sm:$0xf]  ;;  %v2571_v5 = vld [vmem:[%s3024_s17 + $0x94] sm:$0x1]  ;;  %v2572_v10 = vld [vmem:[%s3024_s17 + $0x98] sm:$0xf] }
  0x14   : > { %v2588_v1 = vld [vmem:[%s3024_s17 + $0x1b0] sm:$0xf]  ;;  %v669_v3 = vunpack.c.l.bf16 %v2570_v0  ;;  %v2589_v6 = vld [vmem:[%s3024_s17 + $0x1b4] sm:$0x1]  ;;  %v670_v8 = vunpack.c.l.bf16 %v2571_v5  ;;  %v2590_v11 = vld [vmem:[%s3024_s17 + $0x1b8] sm:$0xf]  ;;  %v671_v15 = vunpack.c.l.bf16 %v2572_v10 }
  0x15   : > { %v3029_v2 = vld [vmem:[%s3024_s17 + $0x2d0] sm:$0xf]  ;;  %v706_v4 = vunpack.c.l.bf16 %v2588_v1  ;;  %v2607_v7 = vld [vmem:[%s3024_s17 + $0x2d4] sm:$0x1]  ;;  %v707_v9 = vunpack.c.l.bf16 %v2589_v6  ;;  %v2608_v12 = vld [vmem:[%s3024_s17 + $0x2d8] sm:$0xf]  ;;  %v708_v16 = vunpack.c.l.bf16 %v2590_v11 }
  0x16   : > { %v779_v14 = vunpack.c.l.bf16 %v3029_v2  ;;  %v2573_v17 = vld [vmem:[%s3024_s17 + $0x9c] sm:$0x1]  ;;  %v780_v20 = vunpack.c.l.bf16 %v2607_v7  ;;  %v2574_v24 = vld [vmem:[%s3024_s17 + $0xa0] sm:$0xf]  ;;  %v781_v27 = vunpack.c.l.bf16 %v2608_v12  ;;  %v2575_v35 = vld [vmem:[%s3024_s17 + $0xa4] sm:$0x1] }
  0x17   : > { %v724_v13 = vmul.f32 2.0, %v706_v4  ;;  %v2591_v18 = vld [vmem:[%s3024_s17 + $0x1bc] sm:$0x1]  ;;  %v725_v19 = vmul.f32 2.0, %v707_v9  ;;  %v672_v21 = vunpack.c.l.bf16 %v2573_v17  ;;  %v726_v26 = vmul.f32 2.0, %v708_v16  ;;  %s3977_s21 = smov (!%p3170_p6, %s2886_s21), 39 }
  0x18   : > { %v709_v22 = vunpack.c.l.bf16 %v2591_v18  ;;  %v2609_v23 = vld [vmem:[%s3024_s17 + $0x2dc] sm:$0x1]  ;;  %v2592_v29 = vld [vmem:[%s3024_s17 + $0x1c0] sm:$0xf]  ;;  %v673_v33 = vunpack.c.l.bf16 %v2574_v24  ;;  %v2593_v36 = vld [vmem:[%s3024_s17 + $0x1c4] sm:$0x1]  ;;  %v674_v39 = vunpack.c.l.bf16 %v2575_v35 }
  0x19   : > { %v3042_v25 = vadd.f32 %v724_v13, %v669_v3  ;;  %v782_v28 = vunpack.c.l.bf16 %v2609_v23  ;;  %v2610_v30 = vld [vmem:[%s3024_s17 + $0x2e0] sm:$0xf]  ;;  %v743_v31 = vadd.f32 %v725_v19, %v670_v8  ;;  %v710_v34 = vunpack.c.l.bf16 %v2592_v29  ;;  %v2611_v41 = vld [vmem:[%s3024_s17 + $0x2e4] sm:$0x1]  ;;  %v2576_v42 = vld [vmem:[%s3024_s17 + $0xa8] sm:$0xf] }
  0x1a   : > { %v727_v32 = vmul.f32 2.0, %v709_v22  ;;  %v744_v37 = vadd.f32 %v726_v26, %v671_v15  ;;  %v783_v38 = vunpack.c.l.bf16 %v2610_v30  ;;  %v711_v40 = vunpack.c.l.bf16 %v2593_v36  ;;  %v2594_v43 = vld [vmem:[%s3024_s17 + $0x1c8] sm:$0xf]  ;;  %v2577_v49 = vld [vmem:[%s3024_s17 + $0xac] sm:$0x1]  ;;  %s2936_s23 = smul.u32 72, %s3977_s21 }
  0x1b   : > { %v798_v44 = vadd.f32 %v780_v20, %v743_v31  ;;  %v728_v46 = vmul.f32 2.0, %v710_v34  ;;  %v784_v47 = vunpack.c.l.bf16 %v2611_v41  ;;  %v2612_v48 = vld [vmem:[%s3024_s17 + $0x2e8] sm:$0xf]  ;;  %v675_v52 = vunpack.c.l.bf16 %v2576_v42  ;;  %v2595_v54 = vld [vmem:[%s3024_s17 + $0x1cc] sm:$0x1]  ;;  %s2887_s27 = sshll.u32 %s3979_s18, 5 }
  0x1c   : > { %v745_v45 = vadd.f32 %v727_v32, %v672_v21  ;;  %v799_v50 = vadd.f32 %v781_v27, %v744_v37  ;;  %v729_v51 = vmul.f32 2.0, %v711_v40  ;;  %v712_v53 = vunpack.c.l.bf16 %v2594_v43  ;;  %v2613_v55 = vld [vmem:[%s3024_s17 + $0x2ec] sm:$0x1]  ;;  %v2578_v60 = vld [vmem:[%s3024_s17 + $0xb0] sm:$0xf]  ;;  %s3219_s26 = scalar_lea.vmem %s3902_s1, %s2936_s23  ;;  %s3867_s30 = scalar_lea.vmem %s3903_s2, %s2887_s27 }
  0x1d   : > { %817 = vst [vmem:[#allocation2 + $0xe0] sm:$0x1] %v798_v44  ;;  %v746_v57 = vadd.f32 %v728_v46, %v673_v33  ;;  %v785_v58 = vunpack.c.l.bf16 %v2612_v48  ;;  %v676_v59 = vunpack.c.l.bf16 %v2577_v49  ;;  %v2596_v61 = vld [vmem:[%s3024_s17 + $0x1d0] sm:$0xf]  ;;  %v713_v0 = vunpack.c.l.bf16 %v2595_v54  ;;  %v2579_v4 = vld [vmem:[%s3024_s17 + $0xb4] sm:$0x1] }
  0x1e   : > { %v800_v56 = vadd.f32 %v782_v28, %v745_v45  ;;  %818 = vst [vmem:[#allocation2 + $0x1e0] sm:$0xff] %v799_v50  ;;  %v747_v62 = vadd.f32 %v729_v51, %v674_v39  ;;  %v730_v63 = vmul.f32 2.0, %v712_v53  ;;  %v786_v1 = vunpack.c.l.bf16 %v2613_v55  ;;  %v2614_v3 = vld [vmem:[%s3024_s17 + $0x2f0] sm:$0xf]  ;;  %v2597_v9 = vld [vmem:[%s3024_s17 + $0x1d4] sm:$0x1] }
  0x1f   : > { %v801_v5 = vadd.f32 %v783_v38, %v746_v57  ;;  %v677_v6 = vunpack.c.l.bf16 %v2578_v60  ;;  %v714_v7 = vunpack.c.l.bf16 %v2596_v61  ;;  %v787_v8 = vunpack.c.l.bf16 %v2614_v3  ;;  %v2615_v10 = vld [vmem:[%s3024_s17 + $0x2f4] sm:$0x1]  ;;  %v2580_v16 = vld [vmem:[%s3024_s17 + $0xb8] sm:$0xf]  ;;  %v2581_v23 = vld [vmem:[%s3024_s17 + $0xbc] sm:$0x1] }
  0x20   : > { %819 = vst [vmem:[#allocation2 + $0x1f0] sm:$0x1] %v800_v56  ;;  %v802_v11 = vadd.f32 %v784_v47, %v747_v62  ;;  %v748_v12 = vadd.f32 %v730_v63, %v675_v52  ;;  %v731_v13 = vmul.f32 2.0, %v713_v0  ;;  %v678_v15 = vunpack.c.l.bf16 %v2579_v4  ;;  %v2598_v17 = vld [vmem:[%s3024_s17 + $0x1d8] sm:$0xf] }
  0x21   : > { %820 = vst [vmem:[#allocation2 + $0x48] sm:$0xff] %v801_v5  ;;  %v732_v18 = vmul.f32 2.0, %v714_v7  ;;  %v715_v19 = vunpack.c.l.bf16 %v2597_v9  ;;  %v788_v20 = vunpack.c.l.bf16 %v2615_v10  ;;  %v679_v21 = vunpack.c.l.bf16 %v2580_v16  ;;  %v2616_v22 = vld [vmem:[%s3024_s17 + $0x2f8] sm:$0xf]  ;;  %v2599_v29 = vld [vmem:[%s3024_s17 + $0x1dc] sm:$0x1] }
  0x22   : > { %821 = vst [vmem:[#allocation2 + $0x98] sm:$0x1] %v802_v11  ;;  %v803_v24 = vadd.f32 %v785_v58, %v748_v12  ;;  %v749_v26 = vadd.f32 %v731_v13, %v676_v59  ;;  %v716_v27 = vunpack.c.l.bf16 %v2598_v17  ;;  %v789_v28 = vunpack.c.l.bf16 %v2616_v22  ;;  %v2617_v30 = vld [vmem:[%s3024_s17 + $0x2fc] sm:$0x1]  ;;  %v2582_v35 = vld [vmem:[%s3024_s17 + $0xc0] sm:$0xf] }
  0x23   : > { %v750_v31 = vadd.f32 %v732_v18, %v677_v6  ;;  %v733_v32 = vmul.f32 2.0, %v715_v19  ;;  %v680_v33 = vunpack.c.l.bf16 %v2581_v23  ;;  %v717_v34 = vunpack.c.l.bf16 %v2599_v29  ;;  %v2600_v36 = vld [vmem:[%s3024_s17 + $0x1e0] sm:$0xf]  ;;  %v2583_v42 = vld [vmem:[%s3024_s17 + $0xc4] sm:$0x1] }
  0x24   : > { %822 = vst [vmem:[#allocation2 + $0x238] sm:$0xff] %v803_v24  ;;  %v804_v37 = vadd.f32 %v786_v1, %v749_v26  ;;  %v734_v38 = vmul.f32 2.0, %v716_v27  ;;  %v790_v39 = vunpack.c.l.bf16 %v2617_v30  ;;  %v681_v40 = vunpack.c.l.bf16 %v2582_v35  ;;  %v2618_v41 = vld [vmem:[%s3024_s17 + $0x300] sm:$0xf]  ;;  %v2601_v47 = vld [vmem:[%s3024_s17 + $0x1e4] sm:$0x1] }
  0x25   : > { %v805_v43 = vadd.f32 %v787_v8, %v750_v31  ;;  %v751_v44 = vadd.f32 %v733_v32, %v678_v15  ;;  %v735_v45 = vmul.f32 2.0, %v717_v34  ;;  %v718_v46 = vunpack.c.l.bf16 %v2600_v36  ;;  %v2619_v48 = vld [vmem:[%s3024_s17 + $0x304] sm:$0x1]  ;;  %v2584_v53 = vld [vmem:[%s3024_s17 + $0xc8] sm:$0xf] }
  0x26   : > { %823 = vst [vmem:[#allocation2 + $0x160] sm:$0x1] %v804_v37  ;;  %v752_v49 = vadd.f32 %v734_v38, %v679_v21  ;;  %v791_v50 = vunpack.c.l.bf16 %v2618_v41  ;;  %v682_v51 = vunpack.c.l.bf16 %v2583_v42  ;;  %v719_v52 = vunpack.c.l.bf16 %v2601_v47  ;;  %v2602_v54 = vld [vmem:[%s3024_s17 + $0x1e8] sm:$0xf]  ;;  %v2585_v60 = vld [vmem:[%s3024_s17 + $0xcc] sm:$0x1] }
  0x27   : > { %824 = vst [vmem:[#allocation2 + $0x50] sm:$0xff] %v805_v43  ;;  %v806_v55 = vadd.f32 %v788_v20, %v751_v44  ;;  %v753_v56 = vadd.f32 %v735_v45, %v680_v33  ;;  %v736_v57 = vmul.f32 2.0, %v718_v46  ;;  %v792_v58 = vunpack.c.l.bf16 %v2619_v48  ;;  %v2620_v59 = vld [vmem:[%s3024_s17 + $0x308] sm:$0xf]  ;;  %v2603_v1 = vld [vmem:[%s3024_s17 + $0x1ec] sm:$0x1] }
  0x28   : > { %v807_v61 = vadd.f32 %v789_v28, %v752_v49  ;;  %v737_v62 = vmul.f32 2.0, %v719_v52  ;;  %v683_v63 = vunpack.c.l.bf16 %v2584_v53  ;;  %v720_v0 = vunpack.c.l.bf16 %v2602_v54  ;;  %v2621_v3 = vld [vmem:[%s3024_s17 + $0x30c] sm:$0x1]  ;;  %v2624_v8 = vld [vmem:[%s3024_s17 + $0xd8] sm:$0xf] }
  0x29   : > { %825 = vst [vmem:[#allocation2 + $0x100] sm:$0x1] %v806_v55  ;;  %v808_v4 = vadd.f32 %v790_v39, %v753_v56  ;;  %v754_v5 = vadd.f32 %v736_v57, %v681_v40  ;;  %v793_v6 = vunpack.c.l.bf16 %v2620_v59  ;;  %v684_v7 = vunpack.c.l.bf16 %v2585_v60  ;;  %v2642_v9 = vld [vmem:[%s3024_s17 + $0x1f8] sm:$0xf]  ;;  %v2626_v16 = vld [vmem:[%s3024_s17 + $0xe0] sm:$0xf] }
  0x2a   : > { %826 = vst [vmem:[#allocation2 + $0x30] sm:$0xff] %v807_v61  ;;  %v755_v10 = vadd.f32 %v737_v62, %v682_v51  ;;  %v738_v11 = vmul.f32 2.0, %v720_v0  ;;  %v721_v12 = vunpack.c.l.bf16 %v2603_v1  ;;  %v794_v13 = vunpack.c.l.bf16 %v2621_v3  ;;  %v2660_v15 = vld [vmem:[%s3024_s17 + $0x318] sm:$0xf]  ;;  %v2644_v21 = vld [vmem:[%s3024_s17 + $0x200] sm:$0xf] }
  0x2b   : > { %827 = vst [vmem:[#allocation2 + $0x1b0] sm:$0x1] %v808_v4  ;;  %v809_v17 = vadd.f32 %v791_v50, %v754_v5  ;;  %v853_v18 = vunpack.c.l.bf16 %v2624_v8  ;;  %v890_v19 = vunpack.c.l.bf16 %v2642_v9  ;;  %v963_v20 = vunpack.c.l.bf16 %v2660_v15  ;;  %v2662_v22 = vld [vmem:[%s3024_s17 + $0x320] sm:$0xf]  ;;  %v2628_v28 = vld [vmem:[%s3024_s17 + $0xe8] sm:$0xf] }
  0x2c   : > { %v810_v23 = vadd.f32 %v792_v58, %v755_v10  ;;  %v756_v24 = vadd.f32 %v738_v11, %v683_v63  ;;  %v739_v26 = vmul.f32 2.0, %v721_v12  ;;  %v855_v27 = vunpack.c.l.bf16 %v2626_v16  ;;  %v2646_v29 = vld [vmem:[%s3024_s17 + $0x208] sm:$0xf]  ;;  %v2630_v35 = vld [vmem:[%s3024_s17 + $0xf0] sm:$0xf] }
  0x2d   : > { %828 = vst [vmem:[#allocation2 + $0x90] sm:$0xff] %v809_v17  ;;  %v908_v30 = vmul.f32 2.0, %v890_v19  ;;  %v892_v31 = vunpack.c.l.bf16 %v2644_v21  ;;  %v965_v32 = vunpack.c.l.bf16 %v2662_v22  ;;  %v857_v33 = vunpack.c.l.bf16 %v2628_v28  ;;  %v2664_v34 = vld [vmem:[%s3024_s17 + $0x328] sm:$0xf]  ;;  %v2648_v40 = vld [vmem:[%s3024_s17 + $0x210] sm:$0xf] }
  0x2e   : > { %829 = vst [vmem:[#allocation2 + $0x130] sm:$0x1] %v810_v23  ;;  %v811_v36 = vadd.f32 %v793_v6, %v756_v24  ;;  %v757_v37 = vadd.f32 %v739_v26, %v684_v7  ;;  %v894_v38 = vunpack.c.l.bf16 %v2646_v29  ;;  %v967_v39 = vunpack.c.l.bf16 %v2664_v34  ;;  %v2666_v41 = vld [vmem:[%s3024_s17 + $0x330] sm:$0xf]  ;;  %v2632_v46 = vld [vmem:[%s3024_s17 + $0xf8] sm:$0xf] }
  0x2f   : > { %v926_v42 = vadd.f32 %v908_v30, %v853_v18  ;;  %v910_v43 = vmul.f32 2.0, %v892_v31  ;;  %v859_v44 = vunpack.c.l.bf16 %v2630_v35  ;;  %v896_v45 = vunpack.c.l.bf16 %v2648_v40  ;;  %v2650_v47 = vld [vmem:[%s3024_s17 + $0x218] sm:$0xf]  ;;  %v2634_v53 = vld [vmem:[%s3024_s17 + $0x100] sm:$0xf] }
  0x30   : > { %830 = vst [vmem:[#allocation2 + $0x68] sm:$0xff] %v811_v36  ;;  %v812_v48 = vadd.f32 %v794_v13, %v757_v37  ;;  %v912_v49 = vmul.f32 2.0, %v894_v38  ;;  %v969_v50 = vunpack.c.l.bf16 %v2666_v41  ;;  %v861_v51 = vunpack.c.l.bf16 %v2632_v46  ;;  %v2668_v52 = vld [vmem:[%s3024_s17 + $0x338] sm:$0xf]  ;;  %v2652_v58 = vld [vmem:[%s3024_s17 + $0x220] sm:$0xf] }
  0x31   : > { %v981_v54 = vadd.f32 %v963_v20, %v926_v42  ;;  %v928_v55 = vadd.f32 %v910_v43, %v855_v27  ;;  %v914_v56 = vmul.f32 2.0, %v896_v45  ;;  %v898_v57 = vunpack.c.l.bf16 %v2650_v47  ;;  %v2670_v59 = vld [vmem:[%s3024_s17 + $0x340] sm:$0xf]  ;;  %v2636_v0 = vld [vmem:[%s3024_s17 + $0x108] sm:$0xf] }
  0x32   : > { %831 = vst [vmem:[#allocation2 + $0x230] sm:$0x1] %v812_v48  ;;  %v930_v60 = vadd.f32 %v912_v49, %v857_v33  ;;  %v971_v61 = vunpack.c.l.bf16 %v2668_v52  ;;  %v863_v62 = vunpack.c.l.bf16 %v2634_v53  ;;  %v900_v63 = vunpack.c.l.bf16 %v2652_v58  ;;  %v2654_v1 = vld [vmem:[%s3024_s17 + $0x228] sm:$0xf]  ;;  %v2638_v8 = vld [vmem:[%s3024_s17 + $0x110] sm:$0xf] }
  0x33   : > { %1000 = vst [vmem:[#allocation2 + $0x218] sm:$0xff] %v981_v54  ;;  %v983_v3 = vadd.f32 %v965_v32, %v928_v55  ;;  %v932_v4 = vadd.f32 %v914_v56, %v859_v44  ;;  %v916_v5 = vmul.f32 2.0, %v898_v57  ;;  %v973_v6 = vunpack.c.l.bf16 %v2670_v59  ;;  %v2672_v7 = vld [vmem:[%s3024_s17 + $0x348] sm:$0xf]  ;;  %v2656_v13 = vld [vmem:[%s3024_s17 + $0x230] sm:$0xf] }
  0x34   : > { %v985_v9 = vadd.f32 %v967_v39, %v930_v60  ;;  %v918_v10 = vmul.f32 2.0, %v900_v63  ;;  %v865_v11 = vunpack.c.l.bf16 %v2636_v0  ;;  %v902_v12 = vunpack.c.l.bf16 %v2654_v1  ;;  %v2674_v15 = vld [vmem:[%s3024_s17 + $0x350] sm:$0xf]  ;;  %v284_v20 = vld [vmem:[%s3024_s17] sm:$0xf] }
  0x35   : > { %1002 = vst [vmem:[#allocation2 + $0x10] sm:$0xff] %v983_v3  ;;  %v987_v16 = vadd.f32 %v969_v50, %v932_v4  ;;  %v934_v17 = vadd.f32 %v916_v5, %v861_v51  ;;  %v975_v18 = vunpack.c.l.bf16 %v2672_v7  ;;  %v867_v19 = vunpack.c.l.bf16 %v2638_v8  ;;  %v2480_v21 = vld [vmem:[%s3024_s17 + $0x120] sm:$0xf]  ;;  %v285_v28 = vld [vmem:[%s3024_s17 + $0x4] sm:$0x1] }
  0x36   : > { %1004 = vst [vmem:[#allocation2 + $0x178] sm:$0xff] %v985_v9  ;;  %v936_v22 = vadd.f32 %v918_v10, %v863_v62  ;;  %v920_v23 = vmul.f32 2.0, %v902_v12  ;;  %v904_v24 = vunpack.c.l.bf16 %v2656_v13  ;;  %v977_v26 = vunpack.c.l.bf16 %v2674_v15  ;;  %v2498_v27 = vld [vmem:[%s3024_s17 + $0x240] sm:$0xf]  ;;  %v2481_v33 = vld [vmem:[%s3024_s17 + $0x124] sm:$0x1] }
  0x37   : > { %1006 = vst [vmem:[#allocation2 + $0x210] sm:$0xff] %v987_v16  ;;  %v989_v29 = vadd.f32 %v971_v61, %v934_v17  ;;  %v302_v30 = vunpack.c.l.bf16 %v284_v20  ;;  %v339_v31 = vunpack.c.l.bf16 %v2480_v21  ;;  %v412_v32 = vunpack.c.l.bf16 %v2498_v27  ;;  %v2499_v34 = vld [vmem:[%s3024_s17 + $0x244] sm:$0x1]  ;;  %v286_v39 = vld [vmem:[%s3024_s17 + $0x8] sm:$0xf] }
  0x38   : > { %v991_v35 = vadd.f32 %v973_v6, %v936_v22  ;;  %v938_v36 = vadd.f32 %v920_v23, %v865_v11  ;;  %v922_v37 = vmul.f32 2.0, %v904_v24  ;;  %v303_v38 = vunpack.c.l.bf16 %v285_v28  ;;  %v2482_v40 = vld [vmem:[%s3024_s17 + $0x128] sm:$0xf]  ;;  %v287_v46 = vld [vmem:[%s3024_s17 + $0xc] sm:$0x1] }
  0x39   : > { %1008 = vst [vmem:[#allocation2 + $0x168] sm:$0xff] %v989_v29  ;;  %v357_v41 = vmul.f32 2.0, %v339_v31  ;;  %v340_v42 = vunpack.c.l.bf16 %v2481_v33  ;;  %v413_v43 = vunpack.c.l.bf16 %v2499_v34  ;;  %v304_v44 = vunpack.c.l.bf16 %v286_v39  ;;  %v2500_v45 = vld [vmem:[%s3024_s17 + $0x248] sm:$0xf]  ;;  %v2483_v51 = vld [vmem:[%s3024_s17 + $0x12c] sm:$0x1] }
  0x3a   : > { %1010 = vst [vmem:[#allocation2 + $0x1a0] sm:$0xff] %v991_v35  ;;  %v993_v47 = vadd.f32 %v975_v18, %v938_v36  ;;  %v940_v48 = vadd.f32 %v922_v37, %v867_v19  ;;  %v341_v49 = vunpack.c.l.bf16 %v2482_v40  ;;  %v414_v50 = vunpack.c.l.bf16 %v2500_v45  ;;  %v2501_v52 = vld [vmem:[%s3024_s17 + $0x24c] sm:$0x1]  ;;  %v288_v57 = vld [vmem:[%s3024_s17 + $0x10] sm:$0xf] }
  0x3b   : > { %v375_v53 = vadd.f32 %v357_v41, %v302_v30  ;;  %v358_v54 = vmul.f32 2.0, %v340_v42  ;;  %v305_v55 = vunpack.c.l.bf16 %v287_v46  ;;  %v342_v56 = vunpack.c.l.bf16 %v2483_v51  ;;  %v2484_v58 = vld [vmem:[%s3024_s17 + $0x130] sm:$0xf]  ;;  %v289_v0 = vld [vmem:[%s3024_s17 + $0x14] sm:$0x1] }
  0x3c   : > { %1012 = vst [vmem:[#allocation2 + $0x118] sm:$0xff] %v993_v47  ;;  %v995_v59 = vadd.f32 %v977_v26, %v940_v48  ;;  %v359_v60 = vmul.f32 2.0, %v341_v49  ;;  %v415_v61 = vunpack.c.l.bf16 %v2501_v52  ;;  %v306_v62 = vunpack.c.l.bf16 %v288_v57  ;;  %v2502_v63 = vld [vmem:[%s3024_s17 + $0x250] sm:$0xf]  ;;  %v2485_v6 = vld [vmem:[%s3024_s17 + $0x134] sm:$0x1] }
  0x3d   : > { %v430_v1 = vadd.f32 %v412_v32, %v375_v53  ;;  %v376_v3 = vadd.f32 %v358_v54, %v303_v38  ;;  %v360_v4 = vmul.f32 2.0, %v342_v56  ;;  %v343_v5 = vunpack.c.l.bf16 %v2484_v58  ;;  %v2503_v7 = vld [vmem:[%s3024_s17 + $0x254] sm:$0x1]  ;;  %v290_v12 = vld [vmem:[%s3024_s17 + $0x18] sm:$0xf] }
  0x3e   : > { %1014 = vst [vmem:[#allocation2 + $0x148] sm:$0xff] %v995_v59  ;;  %v377_v8 = vadd.f32 %v359_v60, %v304_v44  ;;  %v416_v9 = vunpack.c.l.bf16 %v2502_v63  ;;  %v307_v10 = vunpack.c.l.bf16 %v289_v0  ;;  %v344_v11 = vunpack.c.l.bf16 %v2485_v6  ;;  %v2486_v13 = vld [vmem:[%s3024_s17 + $0x138] sm:$0xf]  ;;  %v291_v20 = vld [vmem:[%s3024_s17 + $0x1c] sm:$0x1] }
  0x3f   : > { %448 = vst [vmem:[#allocation2 + $0xc8] sm:$0xff] %v430_v1  ;;  %v431_v15 = vadd.f32 %v413_v43, %v376_v3  ;;  %v378_v16 = vadd.f32 %v360_v4, %v305_v55  ;;  %v361_v17 = vmul.f32 2.0, %v343_v5  ;;  %v417_v18 = vunpack.c.l.bf16 %v2503_v7  ;;  %v2504_v19 = vld [vmem:[%s3024_s17 + $0x258] sm:$0xf]  ;;  %v2487_v26 = vld [vmem:[%s3024_s17 + $0x13c] sm:$0x1] }
  0x40   : > { %v432_v21 = vadd.f32 %v414_v50, %v377_v8  ;;  %v362_v22 = vmul.f32 2.0, %v344_v11  ;;  %v308_v23 = vunpack.c.l.bf16 %v290_v12  ;;  %v345_v24 = vunpack.c.l.bf16 %v2486_v13  ;;  %v2505_v27 = vld [vmem:[%s3024_s17 + $0x25c] sm:$0x1]  ;;  %v292_v32 = vld [vmem:[%s3024_s17 + $0x20] sm:$0xf] }
  0x41   : > { %449 = vst [vmem:[#allocation2 + $0x8] sm:$0x1] %v431_v15  ;;  %v433_v28 = vadd.f32 %v415_v61, %v378_v16  ;;  %v379_v29 = vadd.f32 %v361_v17, %v306_v62  ;;  %v418_v30 = vunpack.c.l.bf16 %v2504_v19  ;;  %v309_v31 = vunpack.c.l.bf16 %v291_v20  ;;  %v2488_v33 = vld [vmem:[%s3024_s17 + $0x140] sm:$0xf]  ;;  %v293_v39 = vld [vmem:[%s3024_s17 + $0x24] sm:$0x1] }
  0x42   : > { %450 = vst [vmem:[#allocation2 + $0x40] sm:$0xff] %v432_v21  ;;  %v380_v34 = vadd.f32 %v362_v22, %v307_v10  ;;  %v363_v35 = vmul.f32 2.0, %v345_v24  ;;  %v346_v36 = vunpack.c.l.bf16 %v2487_v26  ;;  %v419_v37 = vunpack.c.l.bf16 %v2505_v27  ;;  %v2506_v38 = vld [vmem:[%s3024_s17 + $0x260] sm:$0xf]  ;;  %v2489_v44 = vld [vmem:[%s3024_s17 + $0x144] sm:$0x1] }
  0x43   : > { %451 = vst [vmem:[#allocation2 + $0x28] sm:$0x1] %v433_v28  ;;  %v434_v40 = vadd.f32 %v416_v9, %v379_v29  ;;  %v310_v41 = vunpack.c.l.bf16 %v292_v32  ;;  %v347_v42 = vunpack.c.l.bf16 %v2488_v33  ;;  %v420_v43 = vunpack.c.l.bf16 %v2506_v38  ;;  %v2507_v45 = vld [vmem:[%s3024_s17 + $0x264] sm:$0x1]  ;;  %v294_v50 = vld [vmem:[%s3024_s17 + $0x28] sm:$0xf] }
  0x44   : > { %v435_v46 = vadd.f32 %v417_v18, %v380_v34  ;;  %v381_v47 = vadd.f32 %v363_v35, %v308_v23  ;;  %v364_v48 = vmul.f32 2.0, %v346_v36  ;;  %v311_v49 = vunpack.c.l.bf16 %v293_v39  ;;  %v2490_v51 = vld [vmem:[%s3024_s17 + $0x148] sm:$0xf]  ;;  %v295_v57 = vld [vmem:[%s3024_s17 + $0x2c] sm:$0x1] }
  0x45   : > { %452 = vst [vmem:[#allocation2 + $0xe8] sm:$0xff] %v434_v40  ;;  %v365_v52 = vmul.f32 2.0, %v347_v42  ;;  %v348_v53 = vunpack.c.l.bf16 %v2489_v44  ;;  %v421_v54 = vunpack.c.l.bf16 %v2507_v45  ;;  %v312_v55 = vunpack.c.l.bf16 %v294_v50  ;;  %v2508_v56 = vld [vmem:[%s3024_s17 + $0x268] sm:$0xf]  ;;  %v2491_v62 = vld [vmem:[%s3024_s17 + $0x14c] sm:$0x1] }
  0x46   : > { %453 = vst [vmem:[#allocation2 + $0xf0] sm:$0x1] %v435_v46  ;;  %v436_v58 = vadd.f32 %v418_v30, %v381_v47  ;;  %v382_v59 = vadd.f32 %v364_v48, %v309_v31  ;;  %v349_v60 = vunpack.c.l.bf16 %v2490_v51  ;;  %v422_v61 = vunpack.c.l.bf16 %v2508_v56  ;;  %v2509_v63 = vld [vmem:[%s3024_s17 + $0x26c] sm:$0x1]  ;;  %v296_v5 = vld [vmem:[%s3024_s17 + $0x30] sm:$0xf] }
  0x47   : > { %v383_v0 = vadd.f32 %v365_v52, %v310_v41  ;;  %v366_v1 = vmul.f32 2.0, %v348_v53  ;;  %v313_v3 = vunpack.c.l.bf16 %v295_v57  ;;  %v350_v4 = vunpack.c.l.bf16 %v2491_v62  ;;  %v2492_v6 = vld [vmem:[%s3024_s17 + $0x150] sm:$0xf]  ;;  %v297_v12 = vld [vmem:[%s3024_s17 + $0x34] sm:$0x1] }
  0x48   : > { %454 = vst [vmem:[#allocation2 + $0x70] sm:$0xff] %v436_v58  ;;  %v437_v7 = vadd.f32 %v419_v37, %v382_v59  ;;  %v367_v8 = vmul.f32 2.0, %v349_v60  ;;  %v423_v9 = vunpack.c.l.bf16 %v2509_v63  ;;  %v314_v10 = vunpack.c.l.bf16 %v296_v5  ;;  %v2510_v11 = vld [vmem:[%s3024_s17 + $0x270] sm:$0xf]  ;;  %v2493_v18 = vld [vmem:[%s3024_s17 + $0x154] sm:$0x1] }
  0x49   : > { %v438_v13 = vadd.f32 %v420_v43, %v383_v0  ;;  %v384_v15 = vadd.f32 %v366_v1, %v311_v49  ;;  %v368_v16 = vmul.f32 2.0, %v350_v4  ;;  %v351_v17 = vunpack.c.l.bf16 %v2492_v6  ;;  %v2511_v19 = vld [vmem:[%s3024_s17 + $0x274] sm:$0x1]  ;;  %v298_v24 = vld [vmem:[%s3024_s17 + $0x38] sm:$0xf] }
  0x4a   : > { %455 = vst [vmem:[#allocation2 + $0x120] sm:$0x1] %v437_v7  ;;  %v385_v20 = vadd.f32 %v367_v8, %v312_v55  ;;  %v424_v21 = vunpack.c.l.bf16 %v2510_v11  ;;  %v315_v22 = vunpack.c.l.bf16 %v297_v12  ;;  %v352_v23 = vunpack.c.l.bf16 %v2493_v18  ;;  %v2494_v26 = vld [vmem:[%s3024_s17 + $0x158] sm:$0xf]  ;;  %v299_v32 = vld [vmem:[%s3024_s17 + $0x3c] sm:$0x1] }
  0x4b   : > { %456 = vst [vmem:[#allocation2 + $0xd8] sm:$0xff] %v438_v13  ;;  %v439_v27 = vadd.f32 %v421_v54, %v384_v15  ;;  %v386_v28 = vadd.f32 %v368_v16, %v313_v3  ;;  %v369_v29 = vmul.f32 2.0, %v351_v17  ;;  %v425_v30 = vunpack.c.l.bf16 %v2511_v19  ;;  %v2512_v31 = vld [vmem:[%s3024_s17 + $0x278] sm:$0xf]  ;;  %v2495_v37 = vld [vmem:[%s3024_s17 + $0x15c] sm:$0x1] }
  0x4c   : > { %v440_v33 = vadd.f32 %v422_v61, %v385_v20  ;;  %v370_v34 = vmul.f32 2.0, %v352_v23  ;;  %v316_v35 = vunpack.c.l.bf16 %v298_v24  ;;  %v353_v36 = vunpack.c.l.bf16 %v2494_v26  ;;  %v2513_v38 = vld [vmem:[%s3024_s17 + $0x27c] sm:$0x1]  ;;  %v2516_v43 = vld [vmem:[%s3024_s17 + $0x48] sm:$0xf] }
  0x4d   : > { %457 = vst [vmem:[#allocation2 + $0x18] sm:$0x1] %v439_v27  ;;  %v441_v39 = vadd.f32 %v423_v9, %v386_v28  ;;  %v387_v40 = vadd.f32 %v369_v29, %v314_v10  ;;  %v426_v41 = vunpack.c.l.bf16 %v2512_v31  ;;  %v317_v42 = vunpack.c.l.bf16 %v299_v32  ;;  %v2534_v44 = vld [vmem:[%s3024_s17 + $0x168] sm:$0xf]  ;;  %v2518_v50 = vld [vmem:[%s3024_s17 + $0x50] sm:$0xf] }
  0x4e   : > { %458 = vst [vmem:[#allocation2 + $0xb0] sm:$0xff] %v440_v33  ;;  %v388_v45 = vadd.f32 %v370_v34, %v315_v22  ;;  %v371_v46 = vmul.f32 2.0, %v353_v36  ;;  %v354_v47 = vunpack.c.l.bf16 %v2495_v37  ;;  %v427_v48 = vunpack.c.l.bf16 %v2513_v38  ;;  %v2552_v49 = vld [vmem:[%s3024_s17 + $0x288] sm:$0xf]  ;;  %v2536_v55 = vld [vmem:[%s3024_s17 + $0x170] sm:$0xf] }
  0x4f   : > { %459 = vst [vmem:[#allocation2 + $0x158] sm:$0x1] %v441_v39  ;;  %v442_v51 = vadd.f32 %v424_v21, %v387_v40  ;;  %v485_v52 = vunpack.c.l.bf16 %v2516_v43  ;;  %v522_v53 = vunpack.c.l.bf16 %v2534_v44  ;;  %v595_v54 = vunpack.c.l.bf16 %v2552_v49  ;;  %v2554_v56 = vld [vmem:[%s3024_s17 + $0x290] sm:$0xf]  ;;  %v2520_v61 = vld [vmem:[%s3024_s17 + $0x58] sm:$0xf] }
  0x50   : > { %v443_v57 = vadd.f32 %v425_v30, %v388_v45  ;;  %v389_v58 = vadd.f32 %v371_v46, %v316_v35  ;;  %v372_v59 = vmul.f32 2.0, %v354_v47  ;;  %v487_v60 = vunpack.c.l.bf16 %v2518_v50  ;;  %v2538_v62 = vld [vmem:[%s3024_s17 + $0x178] sm:$0xf]  ;;  %v2522_v5 = vld [vmem:[%s3024_s17 + $0x60] sm:$0xf] }
  0x51   : > { %460 = vst [vmem:[#allocation2 + $0x108] sm:$0xff] %v442_v51  ;;  %v540_v63 = vmul.f32 2.0, %v522_v53  ;;  %v524_v0 = vunpack.c.l.bf16 %v2536_v55  ;;  %v597_v1 = vunpack.c.l.bf16 %v2554_v56  ;;  %v489_v3 = vunpack.c.l.bf16 %v2520_v61  ;;  %v2556_v4 = vld [vmem:[%s3024_s17 + $0x298] sm:$0xf]  ;;  %v2540_v10 = vld [vmem:[%s3024_s17 + $0x180] sm:$0xf] }
  0x52   : > { %461 = vst [vmem:[#allocation2 + $0x110] sm:$0x1] %v443_v57  ;;  %v444_v6 = vadd.f32 %v426_v41, %v389_v58  ;;  %v390_v7 = vadd.f32 %v372_v59, %v317_v42  ;;  %v526_v8 = vunpack.c.l.bf16 %v2538_v62  ;;  %v599_v9 = vunpack.c.l.bf16 %v2556_v4  ;;  %v2558_v11 = vld [vmem:[%s3024_s17 + $0x2a0] sm:$0xf]  ;;  %v2524_v17 = vld [vmem:[%s3024_s17 + $0x68] sm:$0xf] }
  0x53   : > { %v558_v12 = vadd.f32 %v540_v63, %v485_v52  ;;  %v542_v13 = vmul.f32 2.0, %v524_v0  ;;  %v491_v15 = vunpack.c.l.bf16 %v2522_v5  ;;  %v528_v16 = vunpack.c.l.bf16 %v2540_v10  ;;  %v2542_v18 = vld [vmem:[%s3024_s17 + $0x188] sm:$0xf]  ;;  %v2526_v24 = vld [vmem:[%s3024_s17 + $0x70] sm:$0xf] }
  0x54   : > { %462 = vst [vmem:[#allocation2 + $0x1f8] sm:$0xff] %v444_v6  ;;  %v445_v19 = vadd.f32 %v427_v48, %v390_v7  ;;  %v544_v20 = vmul.f32 2.0, %v526_v8  ;;  %v601_v21 = vunpack.c.l.bf16 %v2558_v11  ;;  %v493_v22 = vunpack.c.l.bf16 %v2524_v17  ;;  %v2560_v23 = vld [vmem:[%s3024_s17 + $0x2a8] sm:$0xf]  ;;  %v2544_v30 = vld [vmem:[%s3024_s17 + $0x190] sm:$0xf] }
  0x55   : > { %v613_v26 = vadd.f32 %v595_v54, %v558_v12  ;;  %v560_v27 = vadd.f32 %v542_v13, %v487_v60  ;;  %v546_v28 = vmul.f32 2.0, %v528_v16  ;;  %v530_v29 = vunpack.c.l.bf16 %v2542_v18  ;;  %v2562_v31 = vld [vmem:[%s3024_s17 + $0x2b0] sm:$0xf]  ;;  %v2528_v36 = vld [vmem:[%s3024_s17 + $0x78] sm:$0xf] }
  0x56   : > { %463 = vst [vmem:[#allocation2 + $0xb8] sm:$0x1] %v445_v19  ;;  %v562_v32 = vadd.f32 %v544_v20, %v489_v3  ;;  %v603_v33 = vunpack.c.l.bf16 %v2560_v23  ;;  %v495_v34 = vunpack.c.l.bf16 %v2526_v24  ;;  %v532_v35 = vunpack.c.l.bf16 %v2544_v30  ;;  %v2546_v37 = vld [vmem:[%s3024_s17 + $0x198] sm:$0xf]  ;;  %v2530_v43 = vld [vmem:[%s3024_s17 + $0x80] sm:$0xf] }
  0x57   : > { %632 = vst [vmem:[#allocation2 + $0x140] sm:$0xff] %v613_v26  ;;  %v615_v38 = vadd.f32 %v597_v1, %v560_v27  ;;  %v564_v39 = vadd.f32 %v546_v28, %v491_v15  ;;  %v548_v40 = vmul.f32 2.0, %v530_v29  ;;  %v605_v41 = vunpack.c.l.bf16 %v2562_v31  ;;  %v2564_v42 = vld [vmem:[%s3024_s17 + $0x2b8] sm:$0xf]  ;;  %v2548_v48 = vld [vmem:[%s3024_s17 + $0x1a0] sm:$0xf] }
  0x58   : > { %v617_v44 = vadd.f32 %v599_v9, %v562_v32  ;;  %v550_v45 = vmul.f32 2.0, %v532_v35  ;;  %v497_v46 = vunpack.c.l.bf16 %v2528_v36  ;;  %v534_v47 = vunpack.c.l.bf16 %v2546_v37  ;;  %v2566_v49 = vld [vmem:[%s3024_s17 + $0x2c0] sm:$0xf]  ;;  %v301_v61 = vld [vmem:[%s3024_s17 + $0x44] sm:$0x1] }
  0x59   : > { %v797_v50 = vadd.f32 %v779_v14, %v3042_v25  ;;  %634 = vst [vmem:[#allocation2 + $0xd0] sm:$0xff] %v615_v38  ;;  %v619_v51 = vadd.f32 %v601_v21, %v564_v39  ;;  %v566_v52 = vadd.f32 %v548_v40, %v493_v22  ;;  %v607_v53 = vunpack.c.l.bf16 %v2564_v42  ;;  %v300_v54 = vld [vmem:[%s3024_s17 + $0x40] sm:$0xf]  ;;  %v2497_v63 = vld [vmem:[%s3024_s17 + $0x164] sm:$0x1] }
  0x5a   : > { %v2496_v55 = vld [vmem:[%s3024_s17 + $0x160] sm:$0xf]  ;;  %636 = vst [vmem:[#allocation2 + $0x60] sm:$0xff] %v617_v44  ;;  %v568_v56 = vadd.f32 %v550_v45, %v495_v34  ;;  %v552_v57 = vmul.f32 2.0, %v534_v47  ;;  %v499_v58 = vunpack.c.l.bf16 %v2530_v43  ;;  %v536_v59 = vunpack.c.l.bf16 %v2548_v48  ;;  %v2515_v0 = vld [vmem:[%s3024_s17 + $0x284] sm:$0x1] }
  0x5b   : > { %v2514_v60 = vld [vmem:[%s3024_s17 + $0x280] sm:$0xf]  ;;  %638 = vst [vmem:[#allocation2 + $0x88] sm:$0xff] %v619_v51  ;;  %v621_v2 = vadd.f32 %v603_v33, %v566_v52  ;;  %v609_v14 = vunpack.c.l.bf16 %v2566_v49  ;;  %v318_v25 = vunpack.c.l.bf16 %v300_v54  ;;  %v355_v62 = vunpack.c.l.bf16 %v2496_v55  ;;  %v2532_v6 = vld [vmem:[%s3024_s17 + $0x88] sm:$0xf] }
  0x5c   : > { %v623_v1 = vadd.f32 %v605_v41, %v568_v56  ;;  %v570_v3 = vadd.f32 %v552_v57, %v497_v46  ;;  %v554_v4 = vmul.f32 2.0, %v536_v59  ;;  %v428_v5 = vunpack.c.l.bf16 %v2514_v60  ;;  %v2550_v7 = vld [vmem:[%s3024_s17 + $0x1a8] sm:$0xf]  ;;  %v2768_v13 = vld [vmem:[%s3024_s17 + $0x2d0] sm:$0xf]  ;;  %v1036_v43 = vld [vmem:[#allocation2 + $0x1e0] sm:$0xff] }
  0x5d   : > { %640 = vst [vmem:[#allocation2 + $0x188] sm:$0xff] %v621_v2  ;;  %v373_v8 = vmul.f32 2.0, %v355_v62  ;;  %v319_v9 = vunpack.c.l.bf16 %v301_v61  ;;  %v356_v10 = vunpack.c.l.bf16 %v2497_v63  ;;  %v429_v11 = vunpack.c.l.bf16 %v2515_v0  ;;  %v2568_v12 = vld [vmem:[%s3024_s17 + $0x2c8] sm:$0xf]  ;;  %v2786_v19 = vld [vmem:[%s3024_s17 + $0x3f0] sm:$0xf] }
  0x5e   : > { %642 = vst [vmem:[#allocation2 + $0x1a8] sm:$0xff] %v623_v1  ;;  %v625_v15 = vadd.f32 %v607_v53, %v570_v3  ;;  %v572_v16 = vadd.f32 %v554_v4, %v499_v58  ;;  %v501_v17 = vunpack.c.l.bf16 %v2532_v6  ;;  %v538_v18 = vunpack.c.l.bf16 %v2550_v7  ;;  %v2804_v20 = vld [vmem:[%s3219_s26 + $0x90] sm:$0xf]  ;;  %v2769_v26 = vld [vmem:[%s3024_s17 + $0x2d4] sm:$0x1] }
  0x5f   : > { %v391_v21 = vadd.f32 %v373_v8, %v318_v25  ;;  %v374_v22 = vmul.f32 2.0, %v356_v10  ;;  %v611_v23 = vunpack.c.l.bf16 %v2568_v12  ;;  %v3227_v24 = vmul.f32 2.0, %v797_v50  ;;  %v1035_v31 = vld [vmem:[#allocation2 + $0xe0] sm:$0x1]  ;;  %v2787_v32 = vld [vmem:[%s3024_s17 + $0x3f4] sm:$0x1] }
  0x60   : > { %644 = vst [vmem:[#allocation2 + $0x1e8] sm:$0xff] %v625_v15  ;;  %v627_v27 = vadd.f32 %v609_v14, %v572_v16  ;;  %v556_v28 = vmul.f32 2.0, %v538_v18  ;;  %v1706_v29 = vunpack.c.l.bf16 %v2768_v13  ;;  %v1743_v30 = vunpack.c.l.bf16 %v2786_v19  ;;  %v2805_v36 = vld [vmem:[%s3219_s26 + $0x94] sm:$0x1]  ;;  %v2770_v37 = vld [vmem:[%s3024_s17 + $0x2d8] sm:$0xf] }
  0x61   : > { %v446_v33 = vadd.f32 %v428_v5, %v391_v21  ;;  %v392_v34 = vadd.f32 %v374_v22, %v319_v9  ;;  %v1816_v35 = vunpack.c.l.bf16 %v2804_v20  ;;  %v2788_v38 = vld [vmem:[%s3024_s17 + $0x3f8] sm:$0xf]  ;;  %v1707_v41 = vunpack.c.l.bf16 %v2769_v26  ;;  %v1037_v49 = vld [vmem:[#allocation2 + $0x1f0] sm:$0x1]  ;;  %v2771_v50 = vld [vmem:[%s3024_s17 + $0x2dc] sm:$0x1] }
  0x62   : > { %646 = vst [vmem:[#allocation2 + $0x80] sm:$0xff] %v627_v27  ;;  %v574_v39 = vadd.f32 %v556_v28, %v501_v17  ;;  %v1761_v40 = vmul.f32 2.0, %v1743_v30  ;;  %v1744_v42 = vunpack.c.l.bf16 %v2787_v32  ;;  %v2806_v44 = vld [vmem:[%s3219_s26 + $0x98] sm:$0xf]  ;;  %v3235_v46 = vmul.f32 2.0, %v1035_v31  ;;  %v1038_v5 = vld [vmem:[#allocation2 + $0x48] sm:$0xff] }
  0x63   : > { %464 = vst [vmem:[#allocation2 + $0x180] sm:$0xff] %v446_v33  ;;  %v447_v45 = vadd.f32 %v429_v11, %v392_v34  ;;  %v1708_v47 = vunpack.c.l.bf16 %v2770_v37  ;;  %v1745_v48 = vunpack.c.l.bf16 %v2788_v38  ;;  %v2789_v51 = vld [vmem:[%s3024_s17 + $0x3fc] sm:$0x1]  ;;  %v1817_v55 = vunpack.c.l.bf16 %v2805_v36  ;;  %v2772_v57 = vld [vmem:[%s3024_s17 + $0x2e0] sm:$0xf] }
  0x64   : > { %v629_v52 = vadd.f32 %v611_v23, %v574_v39  ;;  %v1779_v53 = vadd.f32 %v1761_v40, %v1706_v29  ;;  %v1762_v54 = vmul.f32 2.0, %v1744_v42  ;;  %v2807_v56 = vld [vmem:[%s3219_s26 + $0x9c] sm:$0x1]  ;;  %v1818_v59 = vunpack.c.l.bf16 %v2806_v44  ;;  %v2790_v2 = vld [vmem:[%s3024_s17 + $0x400] sm:$0xf] }
  0x65   : > { %465 = vst [vmem:[#allocation2 + $0x190] sm:$0x1] %v447_v45  ;;  %v1763_v58 = vmul.f32 2.0, %v1745_v48  ;;  %v1709_v60 = vunpack.c.l.bf16 %v2771_v50  ;;  %v1746_v61 = vunpack.c.l.bf16 %v2789_v51  ;;  %v3242_v62 = vmul.f32 2.0, %v1036_v43  ;;  %v2808_v0 = vld [vmem:[%s3219_s26 + $0xa0] sm:$0xf] }
  0x66   : > { %648 = vst [vmem:[#allocation2 + $0x78] sm:$0xff] %v629_v52  ;;  %v1834_v14 = vadd.f32 %v1816_v35, %v1779_v53  ;;  %v1780_v25 = vadd.f32 %v1762_v54, %v1707_v41  ;;  %v1819_v63 = vunpack.c.l.bf16 %v2807_v56  ;;  %v1039_v1 = vld [vmem:[#allocation2 + $0x98] sm:$0x1]  ;;  %v1710_v6 = vunpack.c.l.bf16 %v2772_v57  ;;  %v2773_v8 = vld [vmem:[%s3024_s17 + $0x2e4] sm:$0x1]  ;;  %v1042_v50 = vld [vmem:[#allocation2 + $0x50] sm:$0xff] }
  0x67   : > { %v1781_v3 = vadd.f32 %v1763_v58, %v1708_v47  ;;  %v1764_v4 = vmul.f32 2.0, %v1746_v61  ;;  %v1747_v7 = vunpack.c.l.bf16 %v2790_v2  ;;  %v2791_v9 = vld [vmem:[%s3024_s17 + $0x404] sm:$0x1]  ;;  %v3247_v11 = vmul.f32 2.0, %v1037_v49  ;;  %v2774_v16 = vld [vmem:[%s3024_s17 + $0x2e8] sm:$0xf] }
  0x68   : > { %1852 = vst [vmem:[#allocation2 + $0x198] sm:$0xff] %v1834_v14  ;;  %v1835_v10 = vadd.f32 %v1817_v55, %v1780_v25  ;;  %v1820_v12 = vunpack.c.l.bf16 %v2808_v0  ;;  %v1711_v13 = vunpack.c.l.bf16 %v2773_v8  ;;  %v2809_v15 = vld [vmem:[%s3219_s26 + $0xa4] sm:$0x1]  ;;  %v1748_v20 = vunpack.c.l.bf16 %v2791_v9  ;;  %v2792_v21 = vld [vmem:[%s3024_s17 + $0x408] sm:$0xf]  ;;  %v1040_v35 = vld [vmem:[#allocation2 + $0x238] sm:$0xff] }
  0x69   : > { %v1836_v17 = vadd.f32 %v1818_v59, %v1781_v3  ;;  %v1782_v18 = vadd.f32 %v1764_v4, %v1709_v60  ;;  %v1765_v19 = vmul.f32 2.0, %v1747_v7  ;;  %v2810_v22 = vld [vmem:[%s3219_s26 + $0xa8] sm:$0xf]  ;;  %v3253_v23 = vmul.f32 2.0, %v1038_v5  ;;  %v2775_v33 = vld [vmem:[%s3024_s17 + $0x2ec] sm:$0x1] }
  0x6a   : > { %1853 = vst [vmem:[#allocation2 + $0xe0] sm:$0x1] %v1835_v10  ;;  %v3255_v26 = vmul.f32 2.0, %v1039_v1  ;;  %v1712_v27 = vunpack.c.l.bf16 %v2774_v16  ;;  %v1749_v28 = vunpack.c.l.bf16 %v2792_v21  ;;  %v1766_v31 = vmul.f32 2.0, %v1748_v20  ;;  %v2793_v34 = vld [vmem:[%s3024_s17 + $0x40c] sm:$0x1] }
  0x6b   : > { %1854 = vst [vmem:[#allocation2 + $0x1e0] sm:$0xff] %v1836_v17  ;;  %v1837_v29 = vadd.f32 %v1819_v63, %v1782_v18  ;;  %v1783_v30 = vadd.f32 %v1765_v19, %v1710_v6  ;;  %v1821_v32 = vunpack.c.l.bf16 %v2809_v15  ;;  %v1822_v37 = vunpack.c.l.bf16 %v2810_v22  ;;  %v2811_v40 = vld [vmem:[%s3219_s26 + $0xac] sm:$0x1]  ;;  %v2776_v41 = vld [vmem:[%s3024_s17 + $0x2f0] sm:$0xf] }
  0x6c   : > { %v1767_v36 = vmul.f32 2.0, %v1749_v28  ;;  %v1713_v38 = vunpack.c.l.bf16 %v2775_v33  ;;  %v1750_v39 = vunpack.c.l.bf16 %v2793_v34  ;;  %v1784_v43 = vadd.f32 %v1766_v31, %v1711_v13  ;;  %v1041_v44 = vld [vmem:[#allocation2 + $0x160] sm:$0x1]  ;;  %v2794_v47 = vld [vmem:[%s3024_s17 + $0x410] sm:$0xf] }
  0x6d   : > { %1855 = vst [vmem:[#allocation2 + $0x1f0] sm:$0x1] %v1837_v29  ;;  %v1838_v42 = vadd.f32 %v1820_v12, %v1783_v30  ;;  %v1823_v45 = vunpack.c.l.bf16 %v2811_v40  ;;  %v1714_v51 = vunpack.c.l.bf16 %v2776_v41  ;;  %v1751_v52 = vunpack.c.l.bf16 %v2794_v47  ;;  %v2812_v53 = vld [vmem:[%s3219_s26 + $0xb0] sm:$0xf]  ;;  %v1043_v54 = vld [vmem:[#allocation2 + $0x100] sm:$0x1] }
  0x6e   : > { %v1785_v48 = vadd.f32 %v1767_v36, %v1712_v27  ;;  %v1768_v49 = vmul.f32 2.0, %v1750_v39  ;;  %v1839_v55 = vadd.f32 %v1821_v32, %v1784_v43  ;;  %v3263_v56 = vmul.f32 2.0, %v1040_v35  ;;  %v2777_v57 = vld [vmem:[%s3024_s17 + $0x2f4] sm:$0x1]  ;;  %v2778_v25 = vld [vmem:[%s3024_s17 + $0x2f8] sm:$0xf] }
  0x6f   : > { %1856 = vst [vmem:[#allocation2 + $0x48] sm:$0xff] %v1838_v42  ;;  %v2795_v58 = vld [vmem:[%s3024_s17 + $0x414] sm:$0x1]  ;;  %v1769_v61 = vmul.f32 2.0, %v1751_v52  ;;  %v1824_v2 = vunpack.c.l.bf16 %v2812_v53  ;;  %v3269_v63 = vmul.f32 2.0, %v1041_v44  ;;  %v3271_v0 = vmul.f32 2.0, %v1042_v50 }
  0x70   : > { %v1840_v59 = vadd.f32 %v1822_v37, %v1785_v48  ;;  %v1786_v60 = vadd.f32 %v1768_v49, %v1713_v38  ;;  %v2813_v14 = vld [vmem:[%s3219_s26 + $0xb4] sm:$0x1]  ;;  %1857 = vst [vmem:[#allocation2 + $0x98] sm:$0x1] %v1839_v55  ;;  %v1715_v1 = vunpack.c.l.bf16 %v2777_v57  ;;  %v1752_v3 = vunpack.c.l.bf16 %v2795_v58  ;;  %v2796_v4 = vld [vmem:[%s3024_s17 + $0x418] sm:$0xf] }
  0x71   : > { %v1787_v6 = vadd.f32 %v1769_v61, %v1714_v51  ;;  %v1716_v7 = vunpack.c.l.bf16 %v2778_v25  ;;  %v1753_v8 = vunpack.c.l.bf16 %v2796_v4  ;;  %v2814_v9 = vld [vmem:[%s3219_s26 + $0xb8] sm:$0xf]  ;;  %v3275_v10 = vmul.f32 2.0, %v1043_v54  ;;  %v2779_v16 = vld [vmem:[%s3024_s17 + $0x2fc] sm:$0x1]  ;;  %v1044_v32 = vld [vmem:[#allocation2 + $0x30] sm:$0xff] }
  0x72   : > { %1858 = vst [vmem:[#allocation2 + $0x238] sm:$0xff] %v1840_v59  ;;  %v1841_v5 = vadd.f32 %v1823_v45, %v1786_v60  ;;  %v1770_v12 = vmul.f32 2.0, %v1752_v3  ;;  %v1825_v13 = vunpack.c.l.bf16 %v2813_v14  ;;  %v1826_v15 = vunpack.c.l.bf16 %v2814_v9  ;;  %v2797_v17 = vld [vmem:[%s3024_s17 + $0x41c] sm:$0x1]  ;;  %v2780_v29 = vld [vmem:[%s3024_s17 + $0x300] sm:$0xf] }
  0x73   : > { %v1842_v18 = vadd.f32 %v1824_v2, %v1787_v6  ;;  %v1771_v19 = vmul.f32 2.0, %v1753_v8  ;;  %v1717_v20 = vunpack.c.l.bf16 %v2779_v16  ;;  %v1754_v21 = vunpack.c.l.bf16 %v2797_v17  ;;  %v2815_v22 = vld [vmem:[%s3219_s26 + $0xbc] sm:$0x1]  ;;  %v2798_v30 = vld [vmem:[%s3024_s17 + $0x420] sm:$0xf]  ;;  %v1046_v35 = vld [vmem:[#allocation2 + $0x90] sm:$0xff] }
  0x74   : > { %1859 = vst [vmem:[#allocation2 + $0x160] sm:$0x1] %v1841_v5  ;;  %v1788_v27 = vadd.f32 %v1770_v12, %v1715_v1  ;;  %v1827_v28 = vunpack.c.l.bf16 %v2815_v22  ;;  %v2816_v31 = vld [vmem:[%s3219_s26 + $0xc0] sm:$0xf]  ;;  %v1718_v36 = vunpack.c.l.bf16 %v2780_v29  ;;  %v1755_v37 = vunpack.c.l.bf16 %v2798_v30  ;;  %v2781_v38 = vld [vmem:[%s3024_s17 + $0x304] sm:$0x1] }
  0x75   : > { %1860 = vst [vmem:[#allocation2 + $0x50] sm:$0xff] %v1842_v18  ;;  %v1789_v33 = vadd.f32 %v1771_v19, %v1716_v7  ;;  %v1772_v34 = vmul.f32 2.0, %v1754_v21  ;;  %v1045_v40 = vld [vmem:[#allocation2 + $0x1b0] sm:$0x1]  ;;  %v1828_v41 = vunpack.c.l.bf16 %v2816_v31  ;;  %v1719_v42 = vunpack.c.l.bf16 %v2781_v38  ;;  %v2799_v43 = vld [vmem:[%s3024_s17 + $0x424] sm:$0x1] }
  0x76   : > { %v1843_v39 = vadd.f32 %v1825_v13, %v1788_v27  ;;  %v2817_v44 = vld [vmem:[%s3219_s26 + $0xc4] sm:$0x1]  ;;  %v1773_v48 = vmul.f32 2.0, %v1755_v37  ;;  %v1756_v49 = vunpack.c.l.bf16 %v2799_v43  ;;  %v2782_v50 = vld [vmem:[%s3024_s17 + $0x308] sm:$0xf]  ;;  %v3288_v52 = vmul.f32 2.0, %v1044_v32 }
  0x77   : > { %v1844_v45 = vadd.f32 %v1826_v15, %v1789_v33  ;;  %v1790_v47 = vadd.f32 %v1772_v34, %v1717_v20  ;;  %v2800_v51 = vld [vmem:[%s3024_s17 + $0x428] sm:$0xf]  ;;  %v3290_v53 = vmul.f32 2.0, %v1046_v35  ;;  %v1720_v54 = vunpack.c.l.bf16 %v2782_v50  ;;  %v2783_v2 = vld [vmem:[%s3024_s17 + $0x30c] sm:$0x1]  ;;  %v1147_v31 = vld [vmem:[#allocation2 + $0x218] sm:$0xff] }
  0x78   : > { %1861 = vst [vmem:[#allocation2 + $0x100] sm:$0x1] %v1843_v39  ;;  %v1757_v55 = vunpack.c.l.bf16 %v2800_v51  ;;  %v2818_v57 = vld [vmem:[%s3219_s26 + $0xc8] sm:$0xf]  ;;  %v1791_v59 = vadd.f32 %v1773_v48, %v1718_v36  ;;  %v1774_v60 = vmul.f32 2.0, %v1756_v49  ;;  %v1829_v61 = vunpack.c.l.bf16 %v2817_v44 }
  0x79   : > { %1862 = vst [vmem:[#allocation2 + $0x30] sm:$0xff] %v1844_v45  ;;  %v1845_v58 = vadd.f32 %v1827_v28, %v1790_v47  ;;  %v3294_v14 = vmul.f32 2.0, %v1045_v40  ;;  %v1048_v25 = vld [vmem:[#allocation2 + $0x68] sm:$0xff]  ;;  %v1830_v3 = vunpack.c.l.bf16 %v2818_v57  ;;  %v1721_v8 = vunpack.c.l.bf16 %v2783_v2  ;;  %v2822_v12 = vld [vmem:[%s3024_s17 + $0x318] sm:$0xf]  ;;  %v1149_v57 = vld [vmem:[#allocation2 + $0x10] sm:$0xff] }
  0x7a   : > { %v1775_v1 = vmul.f32 2.0, %v1757_v55  ;;  %v2801_v4 = vld [vmem:[%s3024_s17 + $0x42c] sm:$0x1]  ;;  %v1846_v6 = vadd.f32 %v1828_v41, %v1791_v59  ;;  %v1792_v7 = vadd.f32 %v1774_v60, %v1719_v42  ;;  %v2840_v13 = vld [vmem:[%s3024_s17 + $0x438] sm:$0xf]  ;;  %v1888_v17 = vunpack.c.l.bf16 %v2822_v12 }
  0x7b   : > { %v2819_v5 = vld [vmem:[%s3219_s26 + $0xcc] sm:$0x1]  ;;  %1863 = vst [vmem:[#allocation2 + $0x1b0] sm:$0x1] %v1845_v58  ;;  %v1758_v9 = vunpack.c.l.bf16 %v2801_v4  ;;  %v1047_v15 = vld [vmem:[#allocation2 + $0x130] sm:$0x1]  ;;  %v1925_v18 = vunpack.c.l.bf16 %v2840_v13 }
  0x7c   : > { %v1793_v16 = vadd.f32 %v1775_v1, %v1720_v54  ;;  %v2858_v19 = vld [vmem:[%s3219_s26 + $0xd8] sm:$0xf]  ;;  %v2824_v20 = vld [vmem:[%s3024_s17 + $0x320] sm:$0xf]  ;;  %1864 = vst [vmem:[#allocation2 + $0x90] sm:$0xff] %v1846_v6  ;;  %v1847_v21 = vadd.f32 %v1829_v61, %v1792_v7  ;;  %v1831_v27 = vunpack.c.l.bf16 %v2819_v5  ;;  %v3305_v37 = vmul.f32 2.0, %v1047_v15 }
  0x7d   : > { %v1776_v22 = vmul.f32 2.0, %v1758_v9  ;;  %v1998_v28 = vunpack.c.l.bf16 %v2858_v19  ;;  %v2842_v29 = vld [vmem:[%s3024_s17 + $0x440] sm:$0xf]  ;;  %v1943_v32 = vmul.f32 2.0, %v1925_v18  ;;  %v1890_v33 = vunpack.c.l.bf16 %v2824_v20  ;;  %v2826_v36 = vld [vmem:[%s3024_s17 + $0x328] sm:$0xf] }
  0x7e   : > { %v1848_v30 = vadd.f32 %v1830_v3, %v1793_v16  ;;  %v1927_v34 = vunpack.c.l.bf16 %v2842_v29  ;;  %v2860_v35 = vld [vmem:[%s3219_s26 + $0xe0] sm:$0xf]  ;;  %1865 = vst [vmem:[#allocation2 + $0x130] sm:$0x1] %v1847_v21  ;;  %v3307_v38 = vmul.f32 2.0, %v1048_v25  ;;  %v1892_v45 = vunpack.c.l.bf16 %v2826_v36  ;;  %v1151_v15 = vld [vmem:[#allocation2 + $0x178] sm:$0xff] }
  0x7f   : > { %v1794_v39 = vadd.f32 %v1776_v22, %v1721_v8  ;;  %v2000_v40 = vunpack.c.l.bf16 %v2860_v35  ;;  %v2844_v41 = vld [vmem:[%s3024_s17 + $0x448] sm:$0xf]  ;;  %v1049_v42 = vld [vmem:[#allocation2 + $0x230] sm:$0x1]  ;;  %v1961_v43 = vadd.f32 %v1943_v32, %v1888_v17  ;;  %v2830_v61 = vld [vmem:[%s3024_s17 + $0x338] sm:$0xf] }
  0x80   : > { %3916 = vst [vmem:[#allocation4_spill] sm:$0xff] %v3307_v38  ;;  %v1945_v44 = vmul.f32 2.0, %v1927_v34  ;;  %v1929_v47 = vunpack.c.l.bf16 %v2844_v41  ;;  %v2862_v48 = vld [vmem:[%s3219_s26 + $0xe8] sm:$0xf]  ;;  %v2828_v50 = vld [vmem:[%s3024_s17 + $0x330] sm:$0xf]  ;;  %v1896_v8 = vunpack.c.l.bf16 %v2830_v61 }
  0x81   : > { %1866 = vst [vmem:[#allocation2 + $0x68] sm:$0xff] %v1848_v30  ;;  %v1849_v49 = vadd.f32 %v1831_v27, %v1794_v39  ;;  %v2846_v51 = vld [vmem:[%s3024_s17 + $0x450] sm:$0xf]  ;;  %v2016_v55 = vadd.f32 %v1998_v28, %v1961_v43  ;;  %v2002_v60 = vunpack.c.l.bf16 %v2862_v48  ;;  %v2848_v2 = vld [vmem:[%s3024_s17 + $0x458] sm:$0xf]  ;;  %v3316_v25 = vmul.f32 2.0, %v1049_v42 }
  0x82   : > { %v2864_v54 = vld [vmem:[%s3219_s26 + $0xf0] sm:$0xf]  ;;  %v1963_v58 = vadd.f32 %v1945_v44, %v1890_v33  ;;  %v1947_v59 = vmul.f32 2.0, %v1929_v47  ;;  %v3318_v1 = vmul.f32 2.0, %v1147_v31  ;;  %v1894_v3 = vunpack.c.l.bf16 %v2828_v50  ;;  %v2866_v5 = vld [vmem:[%s3219_s26 + $0xf8] sm:$0xf] }
  0x83   : > { %3917 = vst [vmem:[#allocation5_spill] sm:$0xff] %v3316_v25  ;;  %v1931_v4 = vunpack.c.l.bf16 %v2846_v51  ;;  %v1933_v9 = vunpack.c.l.bf16 %v2848_v2  ;;  %v2832_v12 = vld [vmem:[%s3024_s17 + $0x340] sm:$0xf]  ;;  %v2004_v17 = vunpack.c.l.bf16 %v2864_v54  ;;  %v2834_v21 = vld [vmem:[%s3024_s17 + $0x348] sm:$0xf]  ;;  %v1153_v27 = vld [vmem:[#allocation2 + $0x210] sm:$0xff]  ;;  %v2006_v29 = vunpack.c.l.bf16 %v2866_v5 }
  0x84   : > { %1867 = vst [vmem:[#allocation2 + $0x230] sm:$0x1] %v1849_v49  ;;  %v2018_v6 = vadd.f32 %v2000_v40, %v1963_v58  ;;  %v1965_v7 = vadd.f32 %v1947_v59, %v1892_v45  ;;  %v2850_v13 = vld [vmem:[%s3024_s17 + $0x460] sm:$0xf]  ;;  %v1898_v18 = vunpack.c.l.bf16 %v2832_v12  ;;  %v2852_v31 = vld [vmem:[%s3024_s17 + $0x468] sm:$0xf]  ;;  %v1900_v35 = vunpack.c.l.bf16 %v2834_v21 }
  0x85   : > { %3918 = vst [vmem:[#allocation6_spill] sm:$0xff] %v3318_v1  ;;  %v1949_v16 = vmul.f32 2.0, %v1931_v4  ;;  %v1935_v19 = vunpack.c.l.bf16 %v2850_v13  ;;  %v2868_v20 = vld [vmem:[%s3219_s26 + $0x100] sm:$0xf]  ;;  %v1951_v28 = vmul.f32 2.0, %v1933_v9  ;;  %v3326_v33 = vld [vmem:[#allocation2 + $0x168] sm:$0xff]  ;;  %v1937_v36 = vunpack.c.l.bf16 %v2852_v31 }
  0x86   : > { %2034 = vst [vmem:[#allocation2 + $0x218] sm:$0xff] %v2016_v55  ;;  %v2020_v22 = vadd.f32 %v2002_v60, %v1965_v7  ;;  %v2008_v30 = vunpack.c.l.bf16 %v2868_v20  ;;  %v2870_v39 = vld [vmem:[%s3219_s26 + $0x108] sm:$0xf]  ;;  %v2836_v40 = vld [vmem:[%s3024_s17 + $0x350] sm:$0xf]  ;;  %v3330_v41 = vmul.f32 2.0, %v1149_v57 }
  0x87   : > { %2036 = vst [vmem:[#allocation2 + $0x10] sm:$0xff] %v2018_v6  ;;  %v1967_v32 = vadd.f32 %v1949_v16, %v1894_v3  ;;  %v1953_v34 = vmul.f32 2.0, %v1935_v19  ;;  %v1969_v42 = vadd.f32 %v1951_v28, %v1896_v8  ;;  %v2010_v43 = vunpack.c.l.bf16 %v2870_v39  ;;  %v2854_v45 = vld [vmem:[%s3024_s17 + $0x470] sm:$0xf]  ;;  %v3334_v49 = vld [vmem:[#allocation2 + $0x1a0] sm:$0xff]  ;;  %v3340_v60 = vld [vmem:[#allocation2 + $0x118] sm:$0xff] }
  0x88   : > { %3919 = vst [vmem:[#allocation7_spill] sm:$0xff] %v3330_v41  ;;  %v1902_v44 = vunpack.c.l.bf16 %v2836_v40  ;;  %v2872_v47 = vld [vmem:[%s3219_s26 + $0x110] sm:$0xf]  ;;  %v1955_v51 = vmul.f32 2.0, %v1937_v36  ;;  %v1939_v54 = vunpack.c.l.bf16 %v2854_v45  ;;  %v2678_v55 = vld [vmem:[%s3024_s17 + $0x240] sm:$0xf] }
  0x89   : > { %2038 = vst [vmem:[#allocation2 + $0x178] sm:$0xff] %v2020_v22  ;;  %v2022_v48 = vadd.f32 %v2004_v17, %v1967_v32  ;;  %v1971_v50 = vadd.f32 %v1953_v34, %v1898_v18  ;;  %v2696_v58 = vld [vmem:[%s3024_s17 + $0x360] sm:$0xf]  ;;  %v3338_v57 = vmul.f32 2.0, %v1151_v15  ;;  %v2024_v59 = vadd.f32 %v2006_v29, %v1969_v42  ;;  %v2679_v4 = vld [vmem:[%s3024_s17 + $0x244] sm:$0x1] }
  0x8a   : > { %v1343_v61 = vunpack.c.l.bf16 %v2678_v55  ;;  %v1380_v2 = vunpack.c.l.bf16 %v2696_v58  ;;  %v1434_v3 = vld [vmem:[%s3219_s26] sm:$0xf]  ;;  %v1973_v6 = vadd.f32 %v1955_v51, %v1900_v35  ;;  %v1957_v7 = vmul.f32 2.0, %v1939_v54  ;;  %v2697_v9 = vld [vmem:[%s3024_s17 + $0x364] sm:$0x1]  ;;  %v3351_v31 = vld [vmem:[#allocation2 + $0x148] sm:$0xff] }
  0x8b   : > { %3920 = vst [vmem:[#allocation8_spill] sm:$0xff] %v3338_v57  ;;  %v2026_v5 = vadd.f32 %v2008_v30, %v1971_v50  ;;  %v2012_v8 = vunpack.c.l.bf16 %v2872_v47  ;;  %v1435_v12 = vld [vmem:[%s3219_s26 + $0x4] sm:$0x1]  ;;  %v1452_v15 = vunpack.c.l.bf16 %v1434_v3  ;;  %v1344_v16 = vunpack.c.l.bf16 %v2679_v4  ;;  %v2680_v18 = vld [vmem:[%s3024_s17 + $0x248] sm:$0xf] }
  0x8c   : > { %2040 = vst [vmem:[#allocation2 + $0x210] sm:$0xff] %v2022_v48  ;;  %v1398_v13 = vmul.f32 2.0, %v1380_v2  ;;  %v1381_v17 = vunpack.c.l.bf16 %v2697_v9  ;;  %v2698_v19 = vld [vmem:[%s3024_s17 + $0x368] sm:$0xf]  ;;  %v2028_v20 = vadd.f32 %v2010_v43, %v1973_v6  ;;  %v1975_v21 = vadd.f32 %v1957_v7, %v1902_v44  ;;  %v2681_v39 = vld [vmem:[%s3024_s17 + $0x24c] sm:$0x1] }
  0x8d   : > { %2042 = vst [vmem:[#allocation2 + $0x168] sm:$0xff] %v2024_v59  ;;  %v1345_v22 = vunpack.c.l.bf16 %v2680_v18  ;;  %v1382_v28 = vunpack.c.l.bf16 %v2698_v19  ;;  %v1436_v29 = vld [vmem:[%s3219_s26 + $0x8] sm:$0xf]  ;;  %v3349_v30 = vmul.f32 2.0, %v1153_v27  ;;  %v1453_v36 = vunpack.c.l.bf16 %v1435_v12  ;;  %v2699_v44 = vld [vmem:[%s3024_s17 + $0x36c] sm:$0x1] }
  0x8e   : > { %2044 = vst [vmem:[#allocation2 + $0x1a0] sm:$0xff] %v2026_v5  ;;  %v3353_v32 = vld [vmem:[#allocation2 + $0xc8] sm:$0xff]  ;;  %v1416_v34 = vadd.f32 %v1398_v13, %v1343_v61  ;;  %v1399_v35 = vmul.f32 2.0, %v1381_v17  ;;  %v2030_v40 = vadd.f32 %v2012_v8, %v1975_v21  ;;  %v1454_v43 = vunpack.c.l.bf16 %v1436_v29  ;;  %v2682_v51 = vld [vmem:[%s3024_s17 + $0x250] sm:$0xf]  ;;  %v3366_v61 = vld [vmem:[#allocation2 + $0x40] sm:$0xff] }
  0x8f   : > { %3921 = vst [vmem:[#allocation9_spill] sm:$0xff] %v3349_v30  ;;  %v1400_v42 = vmul.f32 2.0, %v1382_v28  ;;  %v1437_v45 = vld [vmem:[%s3219_s26 + $0xc] sm:$0x1]  ;;  %v1346_v48 = vunpack.c.l.bf16 %v2681_v39  ;;  %v1383_v50 = vunpack.c.l.bf16 %v2699_v44  ;;  %v2700_v54 = vld [vmem:[%s3024_s17 + $0x370] sm:$0xf]  ;;  %v1347_v3 = vunpack.c.l.bf16 %v2682_v51 }
  0x90   : > { %2046 = vst [vmem:[#allocation2 + $0x118] sm:$0xff] %v2028_v20  ;;  %v1470_v47 = vadd.f32 %v1452_v15, %v1416_v34  ;;  %v1417_v27 = vadd.f32 %v1399_v35, %v1344_v16  ;;  %v1438_v55 = vld [vmem:[%s3219_s26 + $0x10] sm:$0xf]  ;;  %v3362_v58 = vmul.f32 2.0, %v3326_v33  ;;  %v3364_v59 = vld [vmem:[#allocation2 + $0x8] sm:$0x1]  ;;  %v1384_v4 = vunpack.c.l.bf16 %v2700_v54 }
  0x91   : > { %2048 = vst [vmem:[#allocation2 + $0x148] sm:$0xff] %v2030_v40  ;;  %v1418_v2 = vadd.f32 %v1400_v42, %v1345_v22  ;;  %v1401_v6 = vmul.f32 2.0, %v1383_v50  ;;  %v1455_v7 = vunpack.c.l.bf16 %v1437_v45  ;;  %v1456_v8 = vunpack.c.l.bf16 %v1438_v55  ;;  %v2683_v9 = vld [vmem:[%s3024_s17 + $0x254] sm:$0x1]  ;;  %v2684_v18 = vld [vmem:[%s3024_s17 + $0x258] sm:$0xf] }
  0x92   : > { %3922 = vst [vmem:[#allocation10_spill] sm:$0xff] %v3362_v58  ;;  %v1471_v5 = vadd.f32 %v1453_v36, %v1417_v27  ;;  %v2701_v33 = vld [vmem:[%s3024_s17 + $0x374] sm:$0x1]  ;;  %v1402_v13 = vmul.f32 2.0, %v1384_v4  ;;  %v1348_v15 = vunpack.c.l.bf16 %v2683_v9  ;;  %v3372_v20 = vld [vmem:[#allocation2 + $0xe8] sm:$0xff]  ;;  %v1349_v39 = vunpack.c.l.bf16 %v2684_v18 }
  0x93   : > { %1488 = vst [vmem:[#allocation2 + $0xc8] sm:$0xff] %v1470_v47  ;;  %v1472_v12 = vadd.f32 %v1454_v43, %v1418_v2  ;;  %v1385_v16 = vunpack.c.l.bf16 %v2701_v33  ;;  %v1439_v17 = vld [vmem:[%s3219_s26 + $0x14] sm:$0x1]  ;;  %v1419_v19 = vadd.f32 %v1401_v6, %v1346_v48  ;;  %v2702_v22 = vld [vmem:[%s3024_s17 + $0x378] sm:$0xf]  ;;  %v3391_v9 = vmul.f32 2.0, %v3334_v49 }
  0x94   : > { %1489 = vst [vmem:[#allocation2 + $0x8] sm:$0x1] %v1471_v5  ;;  %v1457_v21 = vunpack.c.l.bf16 %v1439_v17  ;;  %v1440_v28 = vld [vmem:[%s3219_s26 + $0x18] sm:$0xf]  ;;  %v3376_v29 = vld [vmem:[#allocation2 + $0x28] sm:$0x1]  ;;  %v1420_v35 = vadd.f32 %v1402_v13, %v1347_v3  ;;  %v1386_v40 = vunpack.c.l.bf16 %v2702_v22 }
  0x95   : > { %1490 = vst [vmem:[#allocation2 + $0x40] sm:$0xff] %v1472_v12  ;;  %v3378_v34 = vld [vmem:[#allocation2 + $0x28] sm:$0x1]  ;;  %v1403_v36 = vmul.f32 2.0, %v1385_v16  ;;  %v1473_v42 = vadd.f32 %v1455_v7, %v1419_v19  ;;  %v3380_v43 = vld [vmem:[#allocation2 + $0xf0] sm:$0x1]  ;;  %v1458_v51 = vunpack.c.l.bf16 %v1440_v28 }
  0x96   : > { %v2685_v44 = vld [vmem:[%s3024_s17 + $0x25c] sm:$0x1]  ;;  %v1474_v27 = vadd.f32 %v1456_v8, %v1420_v35  ;;  %v1404_v50 = vmul.f32 2.0, %v1386_v40  ;;  %v2686_v54 = vld [vmem:[%s3024_s17 + $0x260] sm:$0xf]  ;;  %3923 = vst [vmem:[#allocation11_spill] sm:$0xff] %v3391_v9 }
  0x97   : > { %v2703_v45 = vld [vmem:[%s3024_s17 + $0x37c] sm:$0x1]  ;;  %v1421_v48 = vadd.f32 %v1403_v36, %v1348_v15  ;;  %v2704_v55 = vld [vmem:[%s3024_s17 + $0x380] sm:$0xf]  ;;  %1491 = vst [vmem:[#allocation2 + $0x28] sm:$0x1] %v1473_v42  ;;  %v1350_v3 = vunpack.c.l.bf16 %v2685_v44  ;;  %v1351_v5 = vunpack.c.l.bf16 %v2686_v54 }
  0x98   : > { %v1441_v47 = vld [vmem:[%s3219_s26 + $0x1c] sm:$0x1]  ;;  %v3387_v2 = vld [vmem:[#allocation2 + $0xf0] sm:$0x1]  ;;  %v1387_v4 = vunpack.c.l.bf16 %v2703_v45  ;;  %v1388_v6 = vunpack.c.l.bf16 %v2704_v55  ;;  %v1442_v7 = vld [vmem:[%s3219_s26 + $0x20] sm:$0xf]  ;;  %v1422_v13 = vadd.f32 %v1404_v50, %v1349_v39 }
  0x99   : > { %v3394_v8 = vmul.f32 2.0, %v3340_v60  ;;  %1492 = vst [vmem:[#allocation2 + $0xe8] sm:$0xff] %v1474_v27  ;;  %v1475_v33 = vadd.f32 %v1457_v21, %v1421_v48  ;;  %v3396_v12 = vld [vmem:[#allocation2 + $0x70] sm:$0xff]  ;;  %v2687_v15 = vld [vmem:[%s3024_s17 + $0x264] sm:$0x1]  ;;  %v1459_v17 = vunpack.c.l.bf16 %v1441_v47  ;;  %v1460_v19 = vunpack.c.l.bf16 %v1442_v7 }
  0x9a   : > { %v1405_v16 = vmul.f32 2.0, %v1387_v4  ;;  %v1406_v18 = vmul.f32 2.0, %v1388_v6  ;;  %v2705_v22 = vld [vmem:[%s3024_s17 + $0x384] sm:$0x1]  ;;  %v1476_v49 = vadd.f32 %v1458_v51, %v1422_v13  ;;  %v1352_v60 = vunpack.c.l.bf16 %v2687_v15  ;;  %v2688_v36 = vld [vmem:[%s3024_s17 + $0x268] sm:$0xf] }
  0x9b   : > { %3924 = vst [vmem:[#allocation12_spill] sm:$0xff] %v3394_v8  ;;  %v1443_v28 = vld [vmem:[%s3219_s26 + $0x24] sm:$0x1]  ;;  %v1389_v35 = vunpack.c.l.bf16 %v2705_v22  ;;  %v2706_v40 = vld [vmem:[%s3024_s17 + $0x388] sm:$0xf]  ;;  %v1353_v45 = vunpack.c.l.bf16 %v2688_v36  ;;  %v3410_v4 = vld [vmem:[#allocation2 + $0xd8] sm:$0xff] }
  0x9c   : > { %1493 = vst [vmem:[#allocation2 + $0xf0] sm:$0x1] %v1475_v33  ;;  %v3403_v21 = vld [vmem:[#allocation2 + $0x120] sm:$0x1]  ;;  %v1423_v39 = vadd.f32 %v1405_v16, %v1350_v3  ;;  %v1424_v44 = vadd.f32 %v1406_v18, %v1351_v5  ;;  %v1390_v47 = vunpack.c.l.bf16 %v2706_v40  ;;  %v1444_v27 = vld [vmem:[%s3219_s26 + $0x28] sm:$0xf]  ;;  %v1461_v50 = vunpack.c.l.bf16 %v1443_v28 }
  0x9d   : > { %v3405_v42 = vld [vmem:[#allocation2 + $0x120] sm:$0x1]  ;;  %1494 = vst [vmem:[#allocation2 + $0x70] sm:$0xff] %v1476_v49  ;;  %v1407_v48 = vmul.f32 2.0, %v1389_v35  ;;  %v2689_v51 = vld [vmem:[%s3024_s17 + $0x26c] sm:$0x1]  ;;  %v1462_v33 = vunpack.c.l.bf16 %v1444_v27 }
  0x9e   : > { %v2707_v54 = vld [vmem:[%s3024_s17 + $0x38c] sm:$0x1]  ;;  %v1477_v55 = vadd.f32 %v1459_v17, %v1423_v39  ;;  %v1478_v6 = vadd.f32 %v1460_v19, %v1424_v44  ;;  %v1408_v7 = vmul.f32 2.0, %v1390_v47  ;;  %v2690_v13 = vld [vmem:[%s3024_s17 + $0x270] sm:$0xf]  ;;  %v1354_v18 = vunpack.c.l.bf16 %v2689_v51 }
  0x9f   : > { %v1445_v3 = vld [vmem:[%s3219_s26 + $0x2c] sm:$0x1]  ;;  %v3414_v5 = vld [vmem:[#allocation2 + $0x18] sm:$0x1]  ;;  %v1425_v15 = vadd.f32 %v1407_v48, %v1352_v60  ;;  %v3416_v16 = vld [vmem:[#allocation2 + $0xb0] sm:$0xff]  ;;  %v1391_v22 = vunpack.c.l.bf16 %v2707_v54  ;;  %v1355_v35 = vunpack.c.l.bf16 %v2690_v13 }
  0xa0   : > { %v2708_v28 = vld [vmem:[%s3024_s17 + $0x390] sm:$0xf]  ;;  %1495 = vst [vmem:[#allocation2 + $0x120] sm:$0x1] %v1477_v55  ;;  %v3420_v17 = vld [vmem:[#allocation2 + $0x18] sm:$0x1]  ;;  %v1426_v19 = vadd.f32 %v1408_v7, %v1353_v45  ;;  %v1463_v44 = vunpack.c.l.bf16 %v1445_v3 }
  0xa1   : > { %v1446_v49 = vld [vmem:[%s3219_s26 + $0x30] sm:$0xf]  ;;  %v1392_v36 = vunpack.c.l.bf16 %v2708_v28  ;;  %v2691_v40 = vld [vmem:[%s3024_s17 + $0x274] sm:$0x1]  ;;  %1496 = vst [vmem:[#allocation2 + $0xd8] sm:$0xff] %v1478_v6  ;;  %v1479_v39 = vadd.f32 %v1461_v50, %v1425_v15  ;;  %v1409_v60 = vmul.f32 2.0, %v1391_v22 }
  0xa2   : > { %v1464_v47 = vunpack.c.l.bf16 %v1446_v49  ;;  %v2709_v27 = vld [vmem:[%s3024_s17 + $0x394] sm:$0x1]  ;;  %v1480_v51 = vadd.f32 %v1462_v33, %v1426_v19  ;;  %v1356_v8 = vunpack.c.l.bf16 %v2691_v40  ;;  %v2692_v9 = vld [vmem:[%s3024_s17 + $0x278] sm:$0xf]  ;;  %v2693_v49 = vld [vmem:[%s3024_s17 + $0x27c] sm:$0x1] }
  0xa3   : > { %v1447_v48 = vld [vmem:[%s3219_s26 + $0x34] sm:$0x1]  ;;  %v1410_v54 = vmul.f32 2.0, %v1392_v36  ;;  %v1393_v55 = vunpack.c.l.bf16 %v2709_v27  ;;  %v2710_v58 = vld [vmem:[%s3024_s17 + $0x398] sm:$0xf]  ;;  %v1427_v7 = vadd.f32 %v1409_v60, %v1354_v18  ;;  %v1357_v13 = vunpack.c.l.bf16 %v2692_v9  ;;  %v3433_v36 = vld [vmem:[#allocation2 + $0x108] sm:$0xff] }
  0xa4   : > { %1497 = vst [vmem:[#allocation2 + $0x18] sm:$0x1] %v1479_v39  ;;  %v3427_v45 = vld [vmem:[#allocation2 + $0x158] sm:$0x1]  ;;  %v1394_v50 = vunpack.c.l.bf16 %v2710_v58  ;;  %v1465_v22 = vunpack.c.l.bf16 %v1447_v48  ;;  %v3435_v18 = vld [vmem:[#allocation2 + $0x110] sm:$0x1]  ;;  %v1358_v40 = vunpack.c.l.bf16 %v2693_v49 }
  0xa5   : > { %v1448_v6 = vld [vmem:[%s3219_s26 + $0x38] sm:$0xf]  ;;  %1498 = vst [vmem:[#allocation2 + $0xb0] sm:$0xff] %v1480_v51  ;;  %v1428_v15 = vadd.f32 %v1410_v54, %v1355_v35  ;;  %v1411_v33 = vmul.f32 2.0, %v1393_v55  ;;  %v1481_v19 = vadd.f32 %v1463_v44, %v1427_v7  ;;  %v3437_v9 = vld [vmem:[#allocation2 + $0x110] sm:$0x1]  ;;  %v1066_v35 = vadd.f32 %v3227_v24, %v3353_v32 }
  0xa6   : > { %v3430_v3 = vld [vmem:[#allocation2 + $0x158] sm:$0x1]  ;;  %v1466_v28 = vunpack.c.l.bf16 %v1448_v6  ;;  %3925 = vst [vmem:[#allocation13_spill] sm:$0xff] %v3437_v9  ;;  %v1412_v58 = vmul.f32 2.0, %v1394_v50  ;;  %v2711_v39 = vld [vmem:[%s3024_s17 + $0x39c] sm:$0x1] }
  0xa7   : > { %v1449_v60 = vld [vmem:[%s3219_s26 + $0x3c] sm:$0x1]  ;;  %v1482_v27 = vadd.f32 %v1464_v47, %v1428_v15  ;;  %v1429_v48 = vadd.f32 %v1411_v33, %v1356_v8  ;;  %v1395_v44 = vunpack.c.l.bf16 %v2711_v39  ;;  %v2714_v55 = vld [vmem:[%s3024_s17 + $0x288] sm:$0xf]  ;;  %1499 = vst [vmem:[#allocation2 + $0x158] sm:$0x1] %v1481_v19 }
  0xa8   : > { %v3443_v51 = vld [vmem:[#allocation2 + $0x1f8] sm:$0xff]  ;;  %v1467_v54 = vunpack.c.l.bf16 %v1449_v60  ;;  %v2732_v7 = vld [vmem:[%s3024_s17 + $0x3a8] sm:$0xf]  ;;  %v1430_v50 = vadd.f32 %v1412_v58, %v1357_v13  ;;  %v1524_v49 = vunpack.c.l.bf16 %v2714_v55  ;;  %v2716_v41 = vld [vmem:[%s3024_s17 + $0x290] sm:$0xf] }
  0xa9   : > { %3926 = vst [vmem:[#allocation14_spill] sm:$0xff] %v3443_v51  ;;  %v2750_v6 = vld [vmem:[%s3219_s26 + $0x48] sm:$0xf]  ;;  %v1561_v30 = vunpack.c.l.bf16 %v2732_v7  ;;  %v2734_v24 = vld [vmem:[%s3024_s17 + $0x3b0] sm:$0xf]  ;;  %v1483_v32 = vadd.f32 %v1465_v22, %v1429_v48  ;;  %v1413_v8 = vmul.f32 2.0, %v1395_v44  ;;  %v1526_v47 = vunpack.c.l.bf16 %v2716_v41 }
  0xaa   : > { %v1634_v57 = vunpack.c.l.bf16 %v2750_v6  ;;  %1500 = vst [vmem:[#allocation2 + $0x108] sm:$0xff] %v1482_v27  ;;  %v1563_v15 = vunpack.c.l.bf16 %v2734_v24  ;;  %v2752_v33 = vld [vmem:[%s3219_s26 + $0x50] sm:$0xf]  ;;  %v2718_v39 = vld [vmem:[%s3024_s17 + $0x298] sm:$0xf]  ;;  %v1484_v60 = vadd.f32 %v1466_v28, %v1430_v50 }
  0xab   : > { %v3452_v1 = vld [vmem:[#allocation2 + $0xb8] sm:$0x1]  ;;  %v1579_v19 = vmul.f32 2.0, %v1561_v30  ;;  %v1636_v58 = vunpack.c.l.bf16 %v2752_v33  ;;  %v1528_v55 = vunpack.c.l.bf16 %v2718_v39  ;;  %1501 = vst [vmem:[#allocation2 + $0x110] sm:$0x1] %v1483_v32  ;;  %v1431_v22 = vadd.f32 %v1413_v8, %v1358_v40  ;;  %v3468_v8 = vld [vmem:[#allocation2 + $0x140] sm:$0xff] }
  0xac   : > { %3927 = vst [vmem:[#allocation15_spill] sm:$0xff] %v3452_v1  ;;  %v3454_v13 = vld [vmem:[#allocation2 + $0xb8] sm:$0x1]  ;;  %v1581_v27 = vmul.f32 2.0, %v1563_v15  ;;  %v2720_v44 = vld [vmem:[%s3024_s17 + $0x2a0] sm:$0xf]  ;;  %v3462_v30 = vadd.f32 %v1066_v35, %v3366_v61  ;;  %v3466_v40 = vadd.f32 %v3235_v46, %v3364_v59 }
  0xad   : > { %3928 = vst [vmem:[#allocation16_spill] sm:$0xff] %v3454_v13  ;;  %v2736_v7 = vld [vmem:[%s3024_s17 + $0x3b8] sm:$0xf]  ;;  %v1597_v28 = vadd.f32 %v1579_v19, %v1524_v49  ;;  %v1530_v50 = vunpack.c.l.bf16 %v2720_v44  ;;  %v2738_v24 = vld [vmem:[%s3024_s17 + $0x3c0] sm:$0xf]  ;;  %v1485_v32 = vadd.f32 %v1467_v54, %v1431_v22  ;;  %v3470_v15 = vld [vmem:[#allocation2 + $0xd0] sm:$0xff] }
  0xae   : > { %v2754_v6 = vld [vmem:[%s3219_s26 + $0x58] sm:$0xf]  ;;  %v1565_v41 = vunpack.c.l.bf16 %v2736_v7  ;;  %1502 = vst [vmem:[#allocation2 + $0x1f8] sm:$0xff] %v1484_v60  ;;  %v2756_v13 = vld [vmem:[%s3219_s26 + $0x60] sm:$0xf]  ;;  %v1599_v33 = vadd.f32 %v1581_v27, %v1526_v47  ;;  %v1567_v39 = vunpack.c.l.bf16 %v2738_v24 }
  0xaf   : > { %v1638_v48 = vunpack.c.l.bf16 %v2754_v6  ;;  %3929 = vst [vmem:[#allocation17_spill] sm:$0xff] %v3462_v30  ;;  %v2722_v60 = vld [vmem:[%s3024_s17 + $0x2a8] sm:$0xf]  ;;  %v1652_v7 = vadd.f32 %v1634_v57, %v1597_v28  ;;  %v1640_v6 = vunpack.c.l.bf16 %v2756_v13  ;;  %v2724_v1 = vld [vmem:[%s3024_s17 + $0x2b0] sm:$0xf]  ;;  %v3477_v54 = vld [vmem:[#allocation2 + $0x60] sm:$0xff] }
  0xb0   : > { %3930 = vst [vmem:[#allocation18_spill] sm:$0xff] %v3468_v8  ;;  %v1583_v49 = vmul.f32 2.0, %v1565_v41  ;;  %v2740_v19 = vld [vmem:[%s3024_s17 + $0x3c8] sm:$0xf]  ;;  %v1532_v35 = vunpack.c.l.bf16 %v2722_v60  ;;  %v2742_v46 = vld [vmem:[%s3024_s17 + $0x3d0] sm:$0xf]  ;;  %v1654_v59 = vadd.f32 %v1636_v58, %v1599_v33  ;;  %v1534_v28 = vunpack.c.l.bf16 %v2724_v1 }
  0xb1   : > { %3931 = vst [vmem:[#allocation19_spill] sm:$0xff] %v3470_v15  ;;  %v1569_v44 = vunpack.c.l.bf16 %v2740_v19  ;;  %v2758_v25 = vld [vmem:[%s3219_s26 + $0x68] sm:$0xf]  ;;  %v1585_v47 = vmul.f32 2.0, %v1567_v39  ;;  %v2760_v41 = vld [vmem:[%s3219_s26 + $0x70] sm:$0xf]  ;;  %v1571_v24 = vunpack.c.l.bf16 %v2742_v46 }
  0xb2   : > { %1503 = vst [vmem:[#allocation2 + $0xb8] sm:$0x1] %v1485_v32  ;;  %v1601_v22 = vadd.f32 %v1583_v49, %v1528_v55  ;;  %v1642_v27 = vunpack.c.l.bf16 %v2758_v25  ;;  %v3480_v57 = vld [vmem:[#allocation2 + $0x88] sm:$0xff]  ;;  %v1644_v60 = vunpack.c.l.bf16 %v2760_v41  ;;  %v2726_v19 = vld [vmem:[%s3024_s17 + $0x2b8] sm:$0xf] }
  0xb3   : > { %3932 = vst [vmem:[#allocation20_spill] sm:$0xff] %v3477_v54  ;;  %v1587_v13 = vmul.f32 2.0, %v1569_v44  ;;  %v2744_v32 = vld [vmem:[%s3024_s17 + $0x3d8] sm:$0xf]  ;;  %v1603_v33 = vadd.f32 %v1585_v47, %v1530_v50  ;;  %v3484_v55 = vld [vmem:[#allocation2 + $0x188] sm:$0xff]  ;;  %v1536_v25 = vunpack.c.l.bf16 %v2726_v19  ;;  %v1589_v44 = vmul.f32 2.0, %v1571_v24 }
  0xb4   : > { %1670 = vst [vmem:[#allocation2 + $0x140] sm:$0xff] %v1652_v7  ;;  %v1656_v58 = vadd.f32 %v1638_v48, %v1601_v22  ;;  %v1573_v49 = vunpack.c.l.bf16 %v2744_v32  ;;  %v2762_v39 = vld [vmem:[%s3219_s26 + $0x78] sm:$0xf]  ;;  %v2728_v7 = vld [vmem:[%s3024_s17 + $0x2c0] sm:$0xf]  ;;  %v3491_v50 = vld [vmem:[#allocation2 + $0x1a8] sm:$0xff] }
  0xb5   : > { %3933 = vst [vmem:[#allocation21_spill] sm:$0xff] %v3480_v57  ;;  %v1605_v57 = vadd.f32 %v1587_v13, %v1532_v35  ;;  %v1646_v1 = vunpack.c.l.bf16 %v2762_v39  ;;  %v1538_v46 = vunpack.c.l.bf16 %v2728_v7  ;;  %v2746_v54 = vld [vmem:[%s3024_s17 + $0x3e0] sm:$0xf]  ;;  %v1658_v48 = vadd.f32 %v1640_v6, %v1603_v33  ;;  %v3495_v32 = vld [vmem:[#allocation2 + $0x1e8] sm:$0xff] }
  0xb6   : > { %1672 = vst [vmem:[#allocation2 + $0xd0] sm:$0xff] %v1654_v59  ;;  %v2764_v41 = vld [vmem:[%s3219_s26 + $0x80] sm:$0xf]  ;;  %v1591_v59 = vmul.f32 2.0, %v1573_v49  ;;  %v1575_v22 = vunpack.c.l.bf16 %v2746_v54  ;;  %v1607_v24 = vadd.f32 %v1589_v44, %v1534_v28  ;;  %v2655_v51 = vld [vmem:[%s3024_s17 + $0x22c] sm:$0x1] }
  0xb7   : > { %3934 = vst [vmem:[#allocation22_spill] sm:$0xff] %v3484_v55  ;;  %v1648_v47 = vunpack.c.l.bf16 %v2764_v41  ;;  %v2694_v19 = vld [vmem:[%s3024_s17 + $0x280] sm:$0xf]  ;;  %v1660_v13 = vadd.f32 %v1642_v27, %v1605_v57  ;;  %v2713_v41 = vld [vmem:[%s3024_s17 + $0x3a4] sm:$0x1] }
  0xb8   : > { %1115 = vst [vmem:[#allocation3] sm:$0xff] %v3462_v30  ;;  %v2712_v35 = vld [vmem:[%s3024_s17 + $0x3a0] sm:$0xf]  ;;  %v1359_v39 = vunpack.c.l.bf16 %v2694_v19  ;;  %v1609_v6 = vadd.f32 %v1591_v59, %v1536_v25  ;;  %v1593_v33 = vmul.f32 2.0, %v1575_v22  ;;  %v1451_v30 = vld [vmem:[%s3219_s26 + $0x44] sm:$0x1]  ;;  %v1662_v27 = vadd.f32 %v1644_v60, %v1607_v24 }
  0xb9   : > { %1674 = vst [vmem:[#allocation2 + $0x60] sm:$0xff] %v1656_v58  ;;  %v1396_v7 = vunpack.c.l.bf16 %v2712_v35  ;;  %v1450_v55 = vld [vmem:[%s3219_s26 + $0x40] sm:$0xf]  ;;  %v2695_v58 = vld [vmem:[%s3024_s17 + $0x284] sm:$0x1]  ;;  %v1397_v44 = vunpack.c.l.bf16 %v2713_v41  ;;  %v1469_v19 = vunpack.c.l.bf16 %v1451_v30 }
  0xba   : > { %3935 = vst [vmem:[#allocation23_spill] sm:$0xff] %v3491_v50  ;;  %v1468_v49 = vunpack.c.l.bf16 %v1450_v55  ;;  %v1360_v54 = vunpack.c.l.bf16 %v2695_v58  ;;  %v3501_v57 = vld [vmem:[#allocation2 + $0x80] sm:$0xff]  ;;  %v2730_v35 = vld [vmem:[%s3024_s17 + $0x2c8] sm:$0xf]  ;;  %v1664_v25 = vadd.f32 %v1646_v1, %v1609_v6  ;;  %v1611_v59 = vadd.f32 %v1593_v33, %v1538_v46  ;;  %v2643_v50 = vld [vmem:[%s3024_s17 + $0x1fc] sm:$0x1] }
  0xbb   : > { %3936 = vst [vmem:[#allocation24_spill] sm:$0xff] %v3495_v32  ;;  %v1414_v28 = vmul.f32 2.0, %v1396_v7  ;;  %v1540_v55 = vunpack.c.l.bf16 %v2730_v35  ;;  %v2766_v58 = vld [vmem:[%s3219_s26 + $0x88] sm:$0xf]  ;;  %v2625_v32 = vld [vmem:[%s3024_s17 + $0xdc] sm:$0x1]  ;;  %v891_v35 = vunpack.c.l.bf16 %v2643_v50 }
  0xbc   : > { %1676 = vst [vmem:[#allocation2 + $0x88] sm:$0xff] %v1658_v48  ;;  %v2748_v48 = vld [vmem:[%s3024_s17 + $0x3e8] sm:$0xf]  ;;  %v1650_v24 = vunpack.c.l.bf16 %v2766_v58  ;;  %v854_v7 = vunpack.c.l.bf16 %v2625_v32  ;;  %v2661_v41 = vld [vmem:[%s3024_s17 + $0x31c] sm:$0x1]  ;;  %v1666_v1 = vadd.f32 %v1648_v47, %v1611_v59  ;;  %v3510_v46 = vld [vmem:[#allocation2 + $0x180] sm:$0xff] }
  0xbd   : > { %1678 = vst [vmem:[#allocation2 + $0x188] sm:$0xff] %v1660_v13  ;;  %v1577_v22 = vunpack.c.l.bf16 %v2748_v48  ;;  %v1432_v60 = vadd.f32 %v1414_v28, %v1359_v39  ;;  %v1415_v13 = vmul.f32 2.0, %v1397_v44  ;;  %v2627_v30 = vld [vmem:[%s3024_s17 + $0xe4] sm:$0x1]  ;;  %v3512_v6 = vld [vmem:[#allocation2 + $0x190] sm:$0x1]  ;;  %v964_v48 = vunpack.c.l.bf16 %v2661_v41 }
  0xbe   : > { %3937 = vst [vmem:[#allocation25_spill] sm:$0xff] %v3501_v57  ;;  %v2663_v39 = vld [vmem:[%s3024_s17 + $0x324] sm:$0x1]  ;;  %v3518_v44 = vld [vmem:[#allocation2 + $0x78] sm:$0xff]  ;;  %v856_v58 = vunpack.c.l.bf16 %v2627_v30  ;;  %v2629_v47 = vld [vmem:[%s3024_s17 + $0xec] sm:$0x1] }
  0xbf   : > { %1680 = vst [vmem:[#allocation2 + $0x1a8] sm:$0xff] %v1662_v27  ;;  %v1595_v33 = vmul.f32 2.0, %v1577_v22  ;;  %v2645_v27 = vld [vmem:[%s3024_s17 + $0x204] sm:$0x1]  ;;  %v3516_v28 = vadd.f32 %v1468_v49, %v1432_v60  ;;  %v1433_v32 = vadd.f32 %v1415_v13, %v1360_v54  ;;  %v2647_v59 = vld [vmem:[%s3024_s17 + $0x20c] sm:$0x1]  ;;  %v966_v41 = vunpack.c.l.bf16 %v2663_v39 }
  0xc0   : > { %1682 = vst [vmem:[#allocation2 + $0x1e8] sm:$0xff] %v1664_v25  ;;  %v893_v25 = vunpack.c.l.bf16 %v2645_v27  ;;  %v2665_v57 = vld [vmem:[%s3024_s17 + $0x32c] sm:$0x1]  ;;  %v909_v50 = vmul.f32 2.0, %v891_v35  ;;  %v2631_v49 = vld [vmem:[%s3024_s17 + $0xf4] sm:$0x1]  ;;  %v895_v30 = vunpack.c.l.bf16 %v2647_v59 }
  0xc1   : > { %3938 = vst [vmem:[#allocation26_spill] sm:$0xff] %v3510_v46  ;;  %v1613_v22 = vadd.f32 %v1595_v33, %v1540_v55  ;;  %v2649_v60 = vld [vmem:[%s3024_s17 + $0x214] sm:$0x1]  ;;  %v1487_v54 = vadd.f32 %v1469_v19, %v1433_v32  ;;  %v968_v27 = vunpack.c.l.bf16 %v2665_v57  ;;  %v2633_v46 = vld [vmem:[%s3024_s17 + $0xfc] sm:$0x1]  ;;  %v860_v55 = vunpack.c.l.bf16 %v2631_v49 }
  0xc2   : > { %3939 = vst [vmem:[#allocation27_spill] sm:$0xff] %v3512_v6  ;;  %v858_v6 = vunpack.c.l.bf16 %v2629_v47  ;;  %v911_v13 = vmul.f32 2.0, %v893_v25  ;;  %v897_v33 = vunpack.c.l.bf16 %v2649_v60  ;;  %v2651_v35 = vld [vmem:[%s3024_s17 + $0x21c] sm:$0x1]  ;;  %v2635_v47 = vld [vmem:[%s3024_s17 + $0x104] sm:$0x1]  ;;  %v862_v32 = vunpack.c.l.bf16 %v2633_v46 }
  0xc3   : > { %3940 = vst [vmem:[#allocation28_spill] sm:$0xff] %v3516_v28  ;;  %v1668_v15 = vadd.f32 %v1650_v24, %v1613_v22  ;;  %v2669_v39 = vld [vmem:[%s3024_s17 + $0x33c] sm:$0x1]  ;;  %v2653_v25 = vld [vmem:[%s3024_s17 + $0x224] sm:$0x1]  ;;  %v899_v24 = vunpack.c.l.bf16 %v2651_v35  ;;  %v864_v9 = vunpack.c.l.bf16 %v2635_v47 }
  0xc4   : > { %3941 = vst [vmem:[#allocation29_spill] sm:$0xff] %v3518_v44  ;;  %v2667_v44 = vld [vmem:[%s3024_s17 + $0x334] sm:$0x1]  ;;  %v929_v8 = vadd.f32 %v911_v13, %v856_v58  ;;  %v915_v59 = vmul.f32 2.0, %v897_v33  ;;  %v2671_v22 = vld [vmem:[%s3024_s17 + $0x344] sm:$0x1]  ;;  %v901_v38 = vunpack.c.l.bf16 %v2653_v25 }
  0xc5   : > { %1684 = vst [vmem:[#allocation2 + $0x80] sm:$0xff] %v1666_v1  ;;  %v927_v1 = vadd.f32 %v909_v50, %v854_v7  ;;  %v970_v19 = vunpack.c.l.bf16 %v2667_v44  ;;  %v972_v7 = vunpack.c.l.bf16 %v2669_v39  ;;  %v2637_v50 = vld [vmem:[%s3024_s17 + $0x10c] sm:$0x1]  ;;  %v917_v13 = vmul.f32 2.0, %v899_v24  ;;  %v3947_v39 = vld [vmem:[#allocation18_spill] sm:$0xff]  ;;  %v3949_v25 = vld [vmem:[#allocation16_spill] sm:$0xff] }
  0xc6   : > { %1504 = vst [vmem:[#allocation2 + $0x180] sm:$0xff] %v3516_v28  ;;  %v913_v28 = vmul.f32 2.0, %v895_v30  ;;  %v984_v49 = vadd.f32 %v966_v41, %v929_v8  ;;  %v933_v58 = vadd.f32 %v915_v59, %v860_v55  ;;  %v974_v30 = vunpack.c.l.bf16 %v2671_v22  ;;  %v3950_v59 = vld [vmem:[#allocation19_spill] sm:$0xff]  ;;  %v3952_v22 = vld [vmem:[#allocation20_spill] sm:$0xff] }
  0xc7   : > { %1505 = vst [vmem:[#allocation2 + $0x190] sm:$0x1] %v1487_v54  ;;  %v982_v57 = vadd.f32 %v964_v48, %v927_v1  ;;  %v2673_v54 = vld [vmem:[%s3024_s17 + $0x34c] sm:$0x1]  ;;  %v866_v44 = vunpack.c.l.bf16 %v2637_v50  ;;  %v903_v48 = vunpack.c.l.bf16 %v2655_v51  ;;  %v935_v35 = vadd.f32 %v917_v13, %v862_v32  ;;  %v3951_v24 = vld [vmem:[#allocation7_spill] sm:$0xff]  ;;  %v3953_v50 = vld [vmem:[#allocation8_spill] sm:$0xff] }
  0xc8   : > { %1686 = vst [vmem:[#allocation2 + $0x78] sm:$0xff] %v1668_v15  ;;  %v931_v60 = vadd.f32 %v913_v28, %v858_v6  ;;  %v919_v15 = vmul.f32 2.0, %v901_v38  ;;  %v976_v1 = vunpack.c.l.bf16 %v2673_v54  ;;  %v988_v33 = vadd.f32 %v970_v19, %v933_v58  ;;  %v2517_v19 = vld [vmem:[%s3024_s17 + $0x4c] sm:$0x1]  ;;  %v2519_v13 = vld [vmem:[%s3024_s17 + $0x54] sm:$0x1] }
  0xc9   : > { %1001 = vst [vmem:[#allocation2 + $0x200] sm:$0x1] %v982_v57  ;;  %v1100_v8 = vadd.f32 %v3378_v34, %v3466_v40  ;;  %v1068_v6 = vadd.f32 %v3242_v62, %v3366_v61  ;;  %v921_v41 = vmul.f32 2.0, %v903_v48  ;;  %v1069_v55 = vadd.f32 %v3247_v11, %v3376_v29  ;;  %v3596_v32 = vld [vmem:[%s3024_s17 + $0x28c] sm:$0x1] }
  0xca   : > { %1003 = vst [vmem:[#allocation2 + $0x128] sm:$0x1] %v984_v49  ;;  %v986_v46 = vadd.f32 %v968_v27, %v931_v60  ;;  %v937_v28 = vadd.f32 %v919_v15, %v864_v9  ;;  %v1070_v27 = vadd.f32 %v3253_v23, %v3372_v20  ;;  %v990_v38 = vadd.f32 %v972_v7, %v935_v35  ;;  %v3954_v60 = vld [vmem:[#allocation21_spill] sm:$0xff] }
  0xcb   : > { %1007 = vst [vmem:[#allocation2 + $0x1d0] sm:$0x1] %v988_v33  ;;  %v3545_v51 = vadd.f32 %v1068_v6, %v3372_v20  ;;  %v1071_v34 = vadd.f32 %v3255_v26, %v3380_v43  ;;  %v1072_v62 = vadd.f32 %v3263_v56, %v3396_v12  ;;  %v1177_v61 = vmul.f32 2.0, %v3351_v31  ;;  %v3955_v54 = vld [vmem:[#allocation9_spill] sm:$0xff]  ;;  %v3958_v33 = vld [vmem:[#allocation10_spill] sm:$0xff]  ;;  %v3960_v6 = vld [vmem:[#allocation11_spill] sm:$0xff] }
  0xcc   : > { %1005 = vst [vmem:[#allocation2 + $0x208] sm:$0x1] %v986_v46  ;;  %v992_v9 = vadd.f32 %v974_v30, %v937_v28  ;;  %v939_v40 = vadd.f32 %v921_v41, %v866_v44  ;;  %v1102_v11 = vadd.f32 %v3387_v2, %v1069_v55  ;;  %v3554_v23 = vadd.f32 %v1070_v27, %v3396_v12  ;;  %v2537_v30 = vld [vmem:[%s3024_s17 + $0x174] sm:$0x1]  ;;  %v2521_v41 = vld [vmem:[%s3024_s17 + $0x5c] sm:$0x1] }
  0xcd   : > { %1116 = vst [vmem:[#allocation3 + $0x8] sm:$0x1] %v1100_v8  ;;  %v1104_v20 = vadd.f32 %v3405_v42, %v1071_v34  ;;  %v1073_v29 = vadd.f32 %v3269_v63, %v3403_v21  ;;  %v1074_v26 = vadd.f32 %v3271_v0, %v3410_v4  ;;  %v1075_v31 = vadd.f32 %v3275_v10, %v3414_v5  ;;  %v3942_v42 = vld [vmem:[#allocation14_spill] sm:$0xff]  ;;  %v3959_v8 = vld [vmem:[#allocation23_spill] sm:$0xff] }
  0xce   : > { %1009 = vst [vmem:[#allocation2 + $0xc0] sm:$0x1] %v990_v38  ;;  %v994_v56 = vadd.f32 %v976_v1, %v939_v40  ;;  %v1076_v43 = vadd.f32 %v3288_v52, %v3416_v16  ;;  %v1077_v2 = vadd.f32 %v3294_v14, %v3427_v45  ;;  %v3569_v63 = vadd.f32 %v1072_v62, %v3410_v4  ;;  %v3943_v4 = vld [vmem:[#allocation4_spill] sm:$0xff]  ;;  %v3945_v45 = vld [vmem:[#allocation15_spill] sm:$0xff]  ;;  %v3609_v44 = vld [vmem:[%s3024_s17 + $0x294] sm:$0x1] }
  0xcf   : > { %1011 = vst [vmem:[#allocation2 + $0x58] sm:$0x1] %v992_v9  ;;  %v1106_v0 = vadd.f32 %v3420_v17, %v1073_v29  ;;  %v1078_v12 = vadd.f32 %v3290_v53, %v3433_v36  ;;  %v1079_v10 = vadd.f32 %v3305_v37, %v3435_v18  ;;  %v3577_v52 = vadd.f32 %v1074_v26, %v3416_v16  ;;  %v3944_v53 = vld [vmem:[#allocation13_spill] sm:$0xff]  ;;  %v3956_v46 = vld [vmem:[#allocation26_spill] sm:$0xff]  ;;  %v2539_v55 = vld [vmem:[%s3024_s17 + $0x17c] sm:$0x1] }
  0xd0   : > { %1117 = vst [vmem:[#allocation3 + $0x10] sm:$0xff] %v3545_v51  ;;  %v1108_v14 = vadd.f32 %v3430_v3, %v1075_v31  ;;  %v3581_v21 = vadd.f32 %v1076_v43, %v3433_v36  ;;  %v1080_v5 = vadd.f32 %v3943_v4, %v3942_v42  ;;  %v1110_v17 = vadd.f32 %v3944_v53, %v1077_v2  ;;  %v3946_v16 = vld [vmem:[#allocation5_spill] sm:$0xff]  ;;  %v3948_v3 = vld [vmem:[#allocation6_spill] sm:$0xff]  ;;  %v3961_v62 = vld [vmem:[#allocation24_spill] sm:$0xff] }
  0xd1   : > { %1013 = vst [vmem:[#allocation2 + $0x20] sm:$0x1] %v994_v56  ;;  %v3587_v37 = vadd.f32 %v1078_v12, %v3942_v42  ;;  %v1081_v18 = vadd.f32 %v3946_v16, %v3945_v45  ;;  %v1179_v47 = vadd.f32 %v3948_v3, %v3947_v39  ;;  %v2535_v36 = vld [vmem:[%s3024_s17 + $0x16c] sm:$0x1]  ;;  %v1112_v57 = vadd.f32 %v3949_v25, %v1079_v10  ;;  %v3957_v1 = vld [vmem:[#allocation22_spill] sm:$0xff]  ;;  %v3962_v9 = vld [vmem:[#allocation12_spill] sm:$0xff] }
  0xd2   : > { %1118 = vst [vmem:[#allocation3 + $0x18] sm:$0x1] %v1102_v11  ;;  %v1181_v7 = vadd.f32 %v3951_v24, %v3950_v59  ;;  %v1183_v49 = vadd.f32 %v3953_v50, %v3952_v22  ;;  %v1185_v58 = vadd.f32 %v3955_v54, %v3954_v60  ;;  %v3612_v15 = vadd.f32 %v3956_v46, %v1080_v5  ;;  %v3636_v11 = vld [vmem:[%s3024_s17 + $0x29c] sm:$0x1]  ;;  %v3964_v43 = vld [vmem:[#allocation25_spill] sm:$0xff] }
  0xd3   : > { %1119 = vst [vmem:[#allocation3 + $0x20] sm:$0xff] %v3554_v23  ;;  %v3615_v48 = vadd.f32 %v1179_v47, %v3950_v59  ;;  %v1187_v35 = vadd.f32 %v3958_v33, %v3957_v1  ;;  %v1189_v28 = vadd.f32 %v3960_v6, %v3959_v8  ;;  %v1191_v40 = vadd.f32 %v3962_v9, %v3961_v62  ;;  %v3963_v29 = vld [vmem:[#allocation27_spill] sm:$0xff]  ;;  %v2541_v12 = vld [vmem:[%s3024_s17 + $0x184] sm:$0x1]  ;;  %v2525_v53 = vld [vmem:[%s3024_s17 + $0x6c] sm:$0x1] }
  0xd4   : > { %1120 = vst [vmem:[#allocation3 + $0x28] sm:$0x1] %v1104_v20  ;;  %v3625_v27 = vadd.f32 %v1181_v7, %v3952_v22  ;;  %v3628_v38 = vadd.f32 %v1183_v49, %v3954_v60  ;;  %v3631_v34 = vadd.f32 %v1185_v58, %v3957_v1  ;;  %v2523_v20 = vld [vmem:[%s3024_s17 + $0x64] sm:$0x1]  ;;  %v1114_v26 = vadd.f32 %v3963_v29, %v1081_v18  ;;  %v2543_v45 = vld [vmem:[%s3024_s17 + $0x18c] sm:$0x1] }
  0xd5   : > { %1121 = vst [vmem:[#allocation3 + $0x30] sm:$0xff] %v3569_v63  ;;  %v3641_v56 = vadd.f32 %v1187_v35, %v3959_v8  ;;  %v3644_v31 = vadd.f32 %v1189_v28, %v3961_v62  ;;  %v1193_v2 = vadd.f32 %v1177_v61, %v3964_v43  ;;  %v3649_v10 = vld [vmem:[%s3024_s17 + $0x2a4] sm:$0x1]  ;;  %v3653_v42 = vadd.f32 %v1191_v40, %v3964_v43  ;;  %v3965_v16 = vld [vmem:[#allocation29_spill] sm:$0xff]  ;;  %v2527_v25 = vld [vmem:[%s3024_s17 + $0x74] sm:$0x1] }
  0xd6   : > { %1122 = vst [vmem:[#allocation3 + $0x38] sm:$0x1] %v1106_v0  ;;  %v486_v0 = vunpack.c.l.bf16 %v2517_v19  ;;  %v523_v4 = vunpack.c.l.bf16 %v2535_v36  ;;  %v596_v5 = vunpack.c.l.bf16 %v3596_v32  ;;  %v488_v18 = vunpack.c.l.bf16 %v2519_v13  ;;  %v2561_v47 = vld [vmem:[%s3024_s17 + $0x2ac] sm:$0x1]  ;;  %v2563_v24 = vld [vmem:[%s3024_s17 + $0x2b4] sm:$0x1] }
  0xd7   : > { %1123 = vst [vmem:[#allocation3 + $0x40] sm:$0xff] %v3577_v52  ;;  %v3659_v61 = vadd.f32 %v3965_v16, %v1193_v2  ;;  %v525_v39 = vunpack.c.l.bf16 %v2537_v30  ;;  %v598_v3 = vunpack.c.l.bf16 %v3609_v44  ;;  %v490_v36 = vunpack.c.l.bf16 %v2521_v41  ;;  %v2529_v60 = vld [vmem:[%s3024_s17 + $0x7c] sm:$0x1]  ;;  %v2639_v46 = vld [vmem:[%s3024_s17 + $0x114] sm:$0x1] }
  0xd8   : > { %1124 = vst [vmem:[#allocation3 + $0x48] sm:$0x1] %v1108_v14  ;;  %v541_v19 = vmul.f32 2.0, %v523_v4  ;;  %v527_v32 = vunpack.c.l.bf16 %v2539_v55  ;;  %v600_v59 = vunpack.c.l.bf16 %v3636_v11  ;;  %v2545_v14 = vld [vmem:[%s3024_s17 + $0x194] sm:$0x1]  ;;  %v492_v22 = vunpack.c.l.bf16 %v2523_v20 }
  0xd9   : > { %1125 = vst [vmem:[#allocation3 + $0x50] sm:$0xff] %v3581_v21  ;;  %v543_v7 = vmul.f32 2.0, %v525_v39  ;;  %v529_v50 = vunpack.c.l.bf16 %v2541_v12  ;;  %v602_v49 = vunpack.c.l.bf16 %v3649_v10  ;;  %v494_v13 = vunpack.c.l.bf16 %v2525_v53  ;;  %v2547_v44 = vld [vmem:[%s3024_s17 + $0x19c] sm:$0x1]  ;;  %v2657_v6 = vld [vmem:[%s3024_s17 + $0x234] sm:$0x1] }
  0xda   : > { %1126 = vst [vmem:[#allocation3 + $0x58] sm:$0x1] %v1110_v17  ;;  %v559_v54 = vadd.f32 %v541_v19, %v486_v0  ;;  %v545_v58 = vmul.f32 2.0, %v527_v32  ;;  %v531_v30 = vunpack.c.l.bf16 %v2543_v45  ;;  %v496_v33 = vunpack.c.l.bf16 %v2527_v25  ;;  %v2565_v8 = vld [vmem:[%s3024_s17 + $0x2bc] sm:$0x1] }
  0xdb   : > { %1127 = vst [vmem:[#allocation3 + $0x60] sm:$0xff] %v3587_v37  ;;  %v561_v17 = vadd.f32 %v543_v7, %v488_v18  ;;  %v547_v1 = vmul.f32 2.0, %v529_v50  ;;  %v533_v35 = vunpack.c.l.bf16 %v2545_v14  ;;  %v604_v62 = vunpack.c.l.bf16 %v2561_v47  ;;  %v2675_v9 = vld [vmem:[%s3024_s17 + $0x354] sm:$0x1]  ;;  %v2531_v40 = vld [vmem:[%s3024_s17 + $0x84] sm:$0x1] }
  0xdc   : > { %1128 = vst [vmem:[#allocation3 + $0x68] sm:$0x1] %v1112_v57  ;;  %v614_v28 = vadd.f32 %v596_v5, %v559_v54  ;;  %v563_v41 = vadd.f32 %v545_v58, %v490_v36  ;;  %v549_v55 = vmul.f32 2.0, %v531_v30  ;;  %v606_v29 = vunpack.c.l.bf16 %v2563_v24  ;;  %v2549_v43 = vld [vmem:[%s3024_s17 + $0x1a4] sm:$0x1] }
  0xdd   : > { %1129 = vst [vmem:[#allocation3 + $0x70] sm:$0xff] %v3612_v15  ;;  %v616_v57 = vadd.f32 %v598_v3, %v561_v17  ;;  %v565_v11 = vadd.f32 %v547_v1, %v492_v22  ;;  %v551_v20 = vmul.f32 2.0, %v533_v35  ;;  %v498_v10 = vunpack.c.l.bf16 %v2529_v60  ;;  %v2567_v4 = vld [vmem:[%s3024_s17 + $0x2c4] sm:$0x1]  ;;  %v2533_v5 = vld [vmem:[%s3024_s17 + $0x8c] sm:$0x1] }
  0xde   : > { %1130 = vst [vmem:[#allocation3 + $0x78] sm:$0x1] %v1114_v26  ;;  %v618_v2 = vadd.f32 %v600_v59, %v563_v41  ;;  %v567_v12 = vadd.f32 %v549_v55, %v494_v13  ;;  %v535_v0 = vunpack.c.l.bf16 %v2547_v44  ;;  %v2551_v53 = vld [vmem:[%s3024_s17 + $0x1ac] sm:$0x1]  ;;  %v868_v26 = vunpack.c.l.bf16 %v2639_v46  ;;  %v2823_v3 = vld [vmem:[%s3024_s17 + $0x31c] sm:$0x1] }
  0xdf   : > { %633 = vst [vmem:[#allocation2 + $0x1c0] sm:$0x1] %v614_v28  ;;  %v620_v45 = vadd.f32 %v602_v49, %v565_v11  ;;  %v569_v16 = vadd.f32 %v551_v20, %v496_v33  ;;  %v905_v18 = vunpack.c.l.bf16 %v2657_v6  ;;  %v2569_v39 = vld [vmem:[%s3024_s17 + $0x2cc] sm:$0x1]  ;;  %v608_v19 = vunpack.c.l.bf16 %v2565_v8  ;;  %v2841_v32 = vld [vmem:[%s3024_s17 + $0x43c] sm:$0x1] }
  0xe0   : > { %635 = vst [vmem:[#allocation2 + $0x138] sm:$0x1] %v616_v57  ;;  %v622_v47 = vadd.f32 %v604_v62, %v567_v12  ;;  %v553_v25 = vmul.f32 2.0, %v535_v0  ;;  %v978_v36 = vunpack.c.l.bf16 %v2675_v9  ;;  %v500_v24 = vunpack.c.l.bf16 %v2531_v40  ;;  %v2859_v22 = vld [vmem:[%s3219_s26 + $0xdc] sm:$0x1] }
  0xe1   : > { %637 = vst [vmem:[#allocation2 + $0x1b8] sm:$0x1] %v618_v2  ;;  %v624_v59 = vadd.f32 %v606_v29, %v569_v16  ;;  %v923_v14 = vmul.f32 2.0, %v905_v18  ;;  %v537_v7 = vunpack.c.l.bf16 %v2549_v43  ;;  %v502_v49 = vunpack.c.l.bf16 %v2533_v5  ;;  %v2825_v54 = vld [vmem:[%s3024_s17 + $0x324] sm:$0x1] }
  0xe2   : > { %639 = vst [vmem:[#allocation2] sm:$0x1] %v620_v45  ;;  %v571_v50 = vadd.f32 %v553_v25, %v498_v10  ;;  %v539_v60 = vunpack.c.l.bf16 %v2551_v53  ;;  %v2843_v58 = vld [vmem:[%s3024_s17 + $0x444] sm:$0x1]  ;;  %v610_v44 = vunpack.c.l.bf16 %v2567_v4  ;;  %v612_v46 = vunpack.c.l.bf16 %v2569_v39  ;;  %v2827_v1 = vld [vmem:[%s3024_s17 + $0x32c] sm:$0x1] }
  0xe3   : > { %641 = vst [vmem:[#allocation2 + $0x38] sm:$0x1] %v622_v47  ;;  %v941_v13 = vadd.f32 %v923_v14, %v868_v26  ;;  %v555_v30 = vmul.f32 2.0, %v537_v7  ;;  %v2861_v17 = vld [vmem:[%s3219_s26 + $0xe4] sm:$0x1]  ;;  %v1889_v8 = vunpack.c.l.bf16 %v2823_v3  ;;  %v1926_v6 = vunpack.c.l.bf16 %v2841_v32 }
  0xe4   : > { %643 = vst [vmem:[#allocation2 + $0x220] sm:$0x1] %v624_v59  ;;  %v626_v33 = vadd.f32 %v608_v19, %v571_v50  ;;  %v557_v35 = vmul.f32 2.0, %v539_v60  ;;  %v2845_v28 = vld [vmem:[%s3024_s17 + $0x44c] sm:$0x1]  ;;  %v1999_v9 = vunpack.c.l.bf16 %v2859_v22  ;;  %v1891_v29 = vunpack.c.l.bf16 %v2825_v54 }
  0xe5   : > { %v2863_v41 = vld [vmem:[%s3219_s26 + $0xec] sm:$0x1]  ;;  %v996_v55 = vadd.f32 %v978_v36, %v941_v13  ;;  %v573_v62 = vadd.f32 %v555_v30, %v500_v24  ;;  %v2829_v40 = vld [vmem:[%s3024_s17 + $0x334] sm:$0x1]  ;;  %v1944_v20 = vmul.f32 2.0, %v1926_v6  ;;  %v1928_v43 = vunpack.c.l.bf16 %v2843_v58 }
  0xe6   : > { %v2847_v57 = vld [vmem:[%s3024_s17 + $0x454] sm:$0x1]  ;;  %645 = vst [vmem:[#allocation2 + $0x1c8] sm:$0x1] %v626_v33  ;;  %v575_v11 = vadd.f32 %v557_v35, %v502_v49  ;;  %v1893_v10 = vunpack.c.l.bf16 %v2827_v1  ;;  %v1930_v0 = vunpack.c.l.bf16 %v2845_v28  ;;  %v2831_v4 = vld [vmem:[%s3024_s17 + $0x33c] sm:$0x1]  ;;  %v2001_v16 = vunpack.c.l.bf16 %v2861_v17 }
  0xe7   : > { %v2865_v2 = vld [vmem:[%s3219_s26 + $0xf4] sm:$0x1]  ;;  %1015 = vst [vmem:[#allocation2 + $0xa8] sm:$0x1] %v996_v55  ;;  %v628_v12 = vadd.f32 %v610_v44, %v573_v62  ;;  %v1962_v53 = vadd.f32 %v1944_v20, %v1889_v8  ;;  %v1946_v45 = vmul.f32 2.0, %v1928_v43  ;;  %v2003_v3 = vunpack.c.l.bf16 %v2863_v41  ;;  %v2068_v44 = vld [vmem:[#allocation2 + $0x198] sm:$0xff] }
  0xe8   : > { %v630_v5 = vadd.f32 %v612_v46, %v575_v11  ;;  %v2849_v26 = vld [vmem:[%s3024_s17 + $0x45c] sm:$0x1]  ;;  %v1948_v39 = vmul.f32 2.0, %v1930_v0  ;;  %v1895_v47 = vunpack.c.l.bf16 %v2829_v40  ;;  %v1932_v25 = vunpack.c.l.bf16 %v2847_v57  ;;  %v2833_v19 = vld [vmem:[%s3024_s17 + $0x344] sm:$0x1]  ;;  %v2052_v8 = vld [vmem:[#allocation2 + $0xc8] sm:$0xff] }
  0xe9   : > { %v2867_v18 = vld [vmem:[%s3219_s26 + $0xfc] sm:$0x1]  ;;  %647 = vst [vmem:[#allocation2 + $0xf8] sm:$0x1] %v628_v12  ;;  %v2017_v36 = vadd.f32 %v1999_v9, %v1962_v53  ;;  %v1964_v32 = vadd.f32 %v1946_v45, %v1891_v29  ;;  %v2005_v59 = vunpack.c.l.bf16 %v2865_v2  ;;  %v2851_v14 = vld [vmem:[%s3024_s17 + $0x464] sm:$0x1]  ;;  %v1897_v22 = vunpack.c.l.bf16 %v2831_v4 }
  0xea   : > { %649 = vst [vmem:[#allocation2 + $0x170] sm:$0x1] %v630_v5  ;;  %v1966_v24 = vadd.f32 %v1948_v39, %v1893_v10  ;;  %v1950_v7 = vmul.f32 2.0, %v1932_v25  ;;  %v1934_v50 = vunpack.c.l.bf16 %v2849_v26  ;;  %v2835_v49 = vld [vmem:[%s3024_s17 + $0x34c] sm:$0x1]  ;;  %v2007_v58 = vunpack.c.l.bf16 %v2867_v18  ;;  %v2070_v28 = vld [vmem:[#allocation2 + $0x1e0] sm:$0xff] }
  0xeb   : > { %v2853_v60 = vld [vmem:[%s3024_s17 + $0x46c] sm:$0x1]  ;;  %2035 = vst [vmem:[#allocation2 + $0x200] sm:$0x1] %v2017_v36  ;;  %v2019_v54 = vadd.f32 %v2001_v16, %v1964_v32  ;;  %v1899_v13 = vunpack.c.l.bf16 %v2833_v19  ;;  %v2869_v30 = vld [vmem:[%s3219_s26 + $0x104] sm:$0x1]  ;;  %v1936_v33 = vunpack.c.l.bf16 %v2851_v14  ;;  %v1901_v41 = vunpack.c.l.bf16 %v2835_v49 }
  0xec   : > { %v2021_v46 = vadd.f32 %v2003_v3, %v1966_v24  ;;  %v1968_v17 = vadd.f32 %v1950_v7, %v1895_v47  ;;  %v1952_v1 = vmul.f32 2.0, %v1934_v50  ;;  %v2871_v35 = vld [vmem:[%s3219_s26 + $0x10c] sm:$0x1]  ;;  %v2069_v6 = vld [vmem:[#allocation2 + $0xe0] sm:$0x1]  ;;  %v1938_v55 = vunpack.c.l.bf16 %v2853_v60  ;;  %v2074_v47 = vld [vmem:[#allocation2 + $0x238] sm:$0xff] }
  0xed   : > { %2037 = vst [vmem:[#allocation2 + $0x128] sm:$0x1] %v2019_v54  ;;  %v2053_v62 = vld [vmem:[#allocation2 + $0x8] sm:$0x1]  ;;  %v1954_v57 = vmul.f32 2.0, %v1936_v33  ;;  %v2009_v11 = vunpack.c.l.bf16 %v2869_v30  ;;  %v2116_v20 = vld [vmem:[#allocation2 + $0x40] sm:$0xff]  ;;  %v2011_v12 = vunpack.c.l.bf16 %v2871_v35 }
  0xee   : > { %2039 = vst [vmem:[#allocation2 + $0x208] sm:$0x1] %v2021_v46  ;;  %v2023_v9 = vadd.f32 %v2005_v59, %v1968_v17  ;;  %v1970_v40 = vadd.f32 %v1952_v1, %v1897_v22  ;;  %v2117_v29 = vld [vmem:[#allocation2 + $0x28] sm:$0x1]  ;;  %v2071_v43 = vld [vmem:[#allocation2 + $0x1f0] sm:$0x1] }
  0xef   : > { %v1956_v2 = vmul.f32 2.0, %v1938_v55  ;;  %v2084_v10 = vmul.f32 2.0, %v2068_v44  ;;  %v2085_v0 = vmul.f32 2.0, %v2069_v6  ;;  %v2118_v4 = vld [vmem:[#allocation2 + $0xe8] sm:$0xff]  ;;  %v1972_v16 = vadd.f32 %v1954_v57, %v1899_v13  ;;  %v2119_v3 = vld [vmem:[#allocation2 + $0xf0] sm:$0x1] }
  0xf0   : > { %v2055_v5 = vld [vmem:[#allocation2 + $0x28] sm:$0x1]  ;;  %2041 = vst [vmem:[#allocation2 + $0x1d0] sm:$0x1] %v2023_v9  ;;  %v2025_v45 = vadd.f32 %v2007_v58, %v1970_v40  ;;  %v2086_v39 = vmul.f32 2.0, %v2070_v28  ;;  %v2087_v59 = vmul.f32 2.0, %v2071_v43 }
  0xf1   : > { %v2072_v53 = vld [vmem:[#allocation2 + $0x48] sm:$0xff]  ;;  %v1974_v25 = vadd.f32 %v1956_v2, %v1901_v41  ;;  %v2100_v36 = vadd.f32 %v2084_v10, %v2052_v8  ;;  %v2101_v32 = vadd.f32 %v2085_v0, %v2053_v62  ;;  %v2057_v14 = vld [vmem:[#allocation2 + $0xf0] sm:$0x1]  ;;  %v2073_v24 = vld [vmem:[#allocation2 + $0x98] sm:$0x1]  ;;  %v2027_v22 = vadd.f32 %v2009_v11, %v1972_v16 }
  0xf2   : > { %v3966_v26 = vld [vmem:[#allocation17_spill] sm:$0xff]  ;;  %v2076_v7 = vld [vmem:[#allocation2 + $0x50] sm:$0xff]  ;;  %2043 = vst [vmem:[#allocation2 + $0xc0] sm:$0x1] %v2025_v45  ;;  %v3710_v50 = vmul.f32 0.015625, %v3545_v51  ;;  %v2102_v49 = vadd.f32 %v2116_v20, %v2086_v39  ;;  %v2088_v60 = vmul.f32 2.0, %v2072_v53  ;;  %v2103_v1 = vadd.f32 %v2087_v59, %v2055_v5 }
  0xf3   : > { %v3705_v18 = vmul.f32 0.015625, %v3966_v26  ;;  %v3707_v19 = vld [vmem:[#allocation3 + $0x1] sm:$0xff]  ;;  %v2120_v54 = vld [vmem:[#allocation2 + $0x70] sm:$0xff]  ;;  %v2075_v58 = vld [vmem:[#allocation2 + $0x160] sm:$0x1]  ;;  %v2029_v30 = vadd.f32 %v2011_v12, %v1974_v25  ;;  %v2132_v44 = vadd.f32 %v2116_v20, %v2100_v36  ;;  %v2133_v46 = vadd.f32 %v2117_v29, %v2101_v32 }
  0xf4   : > { %v2078_v13 = vld [vmem:[#allocation2 + $0x30] sm:$0xff]  ;;  %v2121_v33 = vld [vmem:[#allocation2 + $0x120] sm:$0x1]  ;;  %v2061_v8 = vld [vmem:[#allocation2 + $0x18] sm:$0x1]  ;;  %v3714_v28 = vadd.f32 %v2118_v4, %v2102_v49  ;;  %v3717_v51 = vmul.f32 0.015625, %v3554_v23  ;;  %v2104_v41 = vadd.f32 %v2118_v4, %v2088_v60  ;;  %v2135_v40 = vadd.f32 %v2119_v3, %v2103_v1 }
  0xf5   : > { %v3712_v17 = vld [vmem:[#allocation3 + $0x11] sm:$0xff]  ;;  %v2059_v35 = vld [vmem:[#allocation2 + $0x120] sm:$0x1]  ;;  %2045 = vst [vmem:[#allocation2 + $0x58] sm:$0x1] %v2027_v22  ;;  %v2089_v55 = vmul.f32 2.0, %v2073_v24 }
  0xf6   : > { %v2077_v6 = vld [vmem:[#allocation2 + $0x100] sm:$0x1]  ;;  %v2123_v62 = vld [vmem:[#allocation2 + $0x18] sm:$0x1]  ;;  %v2079_v9 = vld [vmem:[#allocation2 + $0x1b0] sm:$0x1]  ;;  %v3724_v2 = vadd.f32 %v2120_v54, %v2104_v41 }
  0xf7   : > { %2047 = vst [vmem:[#allocation2 + $0x20] sm:$0x1] %v2029_v30  ;;  %v3719_v57 = vld [vmem:[#allocation3 + $0x21] sm:$0xff]  ;;  %v3722_v11 = vmul.f32 0.015625, %v3569_v63  ;;  %v2090_v20 = vmul.f32 2.0, %v2074_v47  ;;  %v2122_v29 = vld [vmem:[#allocation2 + $0xd8] sm:$0xff]  ;;  %v2105_v12 = vadd.f32 %v2089_v55, %v2057_v14 }
  0xf8   : > { %v2091_v43 = vmul.f32 2.0, %v2075_v58  ;;  %2148 = vst [vmem:[#allocation3] sm:$0xff] %v2132_v44  ;;  %v2092_v23 = vmul.f32 2.0, %v2076_v7  ;;  %v2124_v10 = vld [vmem:[#allocation2 + $0xb0] sm:$0xff]  ;;  %v2093_v0 = vmul.f32 2.0, %v2077_v6  ;;  %v3729_v63 = vmul.f32 0.015625, %v3577_v52 }
  0xf9   : > { %v2125_v4 = vld [vmem:[#allocation2 + $0x158] sm:$0x1]  ;;  %2149 = vst [vmem:[#allocation3 + $0x8] sm:$0x1] %v2133_v46  ;;  %v2106_v45 = vadd.f32 %v2120_v54, %v2090_v20  ;;  %v2094_v26 = vmul.f32 2.0, %v2078_v13  ;;  %v2080_v3 = vld [vmem:[#allocation2 + $0x90] sm:$0xff]  ;;  %v2137_v47 = vadd.f32 %v2121_v33, %v2105_v12 }
  0xfa   : > { %v2063_v5 = vld [vmem:[#allocation2 + $0x158] sm:$0x1]  ;;  %v2107_v16 = vadd.f32 %v2091_v43, %v2059_v35  ;;  %v2127_v39 = vld [vmem:[#allocation2 + $0x110] sm:$0x1]  ;;  %2150 = vst [vmem:[#allocation3 + $0x10] sm:$0xff] %v3714_v28  ;;  %v2108_v25 = vadd.f32 %v2122_v29, %v2092_v23  ;;  %v2109_v36 = vadd.f32 %v2093_v0, %v2061_v8  ;;  %v2126_v32 = vld [vmem:[#allocation2 + $0x108] sm:$0xff] }
  0xfb   : > { %v3726_v53 = vld [vmem:[#allocation3 + $0x31] sm:$0xff]  ;;  %v2095_v59 = vmul.f32 2.0, %v2079_v9  ;;  %v2065_v14 = vld [vmem:[#allocation2 + $0x110] sm:$0x1]  ;;  %v2082_v7 = vld [vmem:[#allocation2 + $0x68] sm:$0xff]  ;;  %v3732_v22 = vadd.f32 %v2122_v29, %v2106_v45  ;;  %v3737_v52 = vmul.f32 0.015625, %v3581_v21  ;;  %v2110_v54 = vadd.f32 %v2124_v10, %v2094_v26 }
  0xfc   : > { %v2081_v24 = vld [vmem:[#allocation2 + $0x130] sm:$0x1]  ;;  %2151 = vst [vmem:[#allocation3 + $0x18] sm:$0x1] %v2135_v40  ;;  %v2139_v49 = vadd.f32 %v2123_v62, %v2107_v16  ;;  %v3734_v60 = vld [vmem:[#allocation3 + $0x41] sm:$0xff]  ;;  %v2128_v58 = vld [vmem:[#allocation2 + $0x1f8] sm:$0xff]  ;;  %v3740_v30 = vadd.f32 %v2124_v10, %v2108_v25  ;;  %v2141_v8 = vadd.f32 %v2125_v4, %v2109_v36 }
  0xfd   : > { %v2083_v13 = vld [vmem:[#allocation2 + $0x230] sm:$0x1]  ;;  %2152 = vst [vmem:[#allocation3 + $0x20] sm:$0xff] %v3724_v2  ;;  %v2111_v44 = vadd.f32 %v2095_v59, %v2063_v5  ;;  %v3743_v46 = vmul.f32 0.015625, %v3587_v37  ;;  %v2096_v1 = vmul.f32 2.0, %v2080_v3  ;;  %v2180_v35 = vld [vmem:[#allocation2 + $0x218] sm:$0xff]  ;;  %v3747_v21 = vadd.f32 %v2126_v32, %v2110_v54 }
  0xfe   : > { %v2067_v33 = vld [vmem:[#allocation2 + $0xb8] sm:$0x1]  ;;  %2153 = vst [vmem:[#allocation3 + $0x28] sm:$0x1] %v2137_v47  ;;  %v2097_v41 = vmul.f32 2.0, %v2081_v24  ;;  %v2098_v55 = vmul.f32 2.0, %v2082_v7 }
  0xff   : > { %v3745_v6 = vld [vmem:[#allocation3 + $0x51] sm:$0xff]  ;;  %2154 = vst [vmem:[#allocation3 + $0x30] sm:$0xff] %v3732_v22  ;;  %v2143_v9 = vadd.f32 %v2127_v39, %v2111_v44  ;;  %v2112_v40 = vadd.f32 %v2126_v32, %v2096_v1  ;;  %v2099_v29 = vmul.f32 2.0, %v2083_v13  ;;  %v1269_v37 = vmul.f32 0.03125, %v3615_v48  ;;  %v2164_v43 = vld [vmem:[#allocation2 + $0x140] sm:$0xff]  ;;  %v2232_v13 = vld [vmem:[#allocation2 + $0x88] sm:$0xff] }
 0x100   : > { %v2182_v62 = vld [vmem:[#allocation2 + $0x10] sm:$0xff]  ;;  %v2129_v20 = vld [vmem:[#allocation2 + $0xb8] sm:$0x1]  ;;  %2155 = vst [vmem:[#allocation3 + $0x38] sm:$0x1] %v2139_v49  ;;  %v2113_v12 = vadd.f32 %v2097_v41, %v2065_v14  ;;  %v2114_v23 = vadd.f32 %v2128_v58, %v2098_v55  ;;  %v2196_v10 = vmul.f32 2.0, %v2180_v35 }
 0x101   : > { %v2228_v0 = vld [vmem:[#allocation2 + $0xd0] sm:$0xff]  ;;  %v1270_v4 = vmul.f32 0.03125, %v3625_v27  ;;  %v2184_v5 = vld [vmem:[#allocation2 + $0x178] sm:$0xff]  ;;  %2156 = vst [vmem:[#allocation3 + $0x40] sm:$0xff] %v3740_v30  ;;  %v3753_v45 = vadd.f32 %v2128_v58, %v2112_v40  ;;  %v2115_v16 = vadd.f32 %v2099_v29, %v2067_v33  ;;  %v3756_v39 = vadd.f32 %v1269_v37, %v3705_v18  ;;  %v3758_v47 = vld [vmem:[#allocation3 + $0x61] sm:$0xff] }
 0x102   : > { %v2131_v26 = vld [vmem:[#allocation2 + $0x190] sm:$0x1]  ;;  %v2198_v3 = vmul.f32 2.0, %v2182_v62  ;;  %2157 = vst [vmem:[#allocation3 + $0x48] sm:$0x1] %v2141_v8  ;;  %v2145_v25 = vadd.f32 %v2129_v20, %v2113_v12  ;;  %v1260_v36 = vmul.f32 0.015625, %v3612_v15  ;;  %v2212_v32 = vadd.f32 %v2196_v10, %v2164_v43 }
 0x103   : > { %v2186_v48 = vld [vmem:[#allocation2 + $0x210] sm:$0xff]  ;;  %v3762_v27 = vadd.f32 %v1270_v4, %v3710_v50  ;;  %v2230_v59 = vld [vmem:[#allocation2 + $0x60] sm:$0xff]  ;;  %v2188_v14 = vld [vmem:[#allocation2 + $0x168] sm:$0xff]  ;;  %2158 = vst [vmem:[#allocation3 + $0x50] sm:$0xff] %v3747_v21  ;;  %v1271_v54 = vmul.f32 0.03125, %v3628_v38  ;;  %v2200_v58 = vmul.f32 2.0, %v2184_v5  ;;  %v2147_v15 = vadd.f32 %v2131_v26, %v2115_v16 }
 0x104   : > { %v3765_v24 = vld [vmem:[#allocation3 + $0x71] sm:$0xff]  ;;  %v3967_v18 = vld [vmem:[#allocation28_spill] sm:$0xff]  ;;  %v2214_v49 = vadd.f32 %v2228_v0, %v2198_v3  ;;  %v2234_v44 = vld [vmem:[#allocation2 + $0x188] sm:$0xff]  ;;  %2159 = vst [vmem:[#allocation3 + $0x58] sm:$0x1] %v2143_v9  ;;  %v1272_v50 = vmul.f32 0.03125, %v3631_v34  ;;  %v3774_v8 = vadd.f32 %v2228_v0, %v2212_v32 }
 0x105   : > { %v3768_v7 = vadd.f32 %v2114_v23, %v3967_v18  ;;  %v2202_v1 = vmul.f32 2.0, %v2186_v48  ;;  %v1273_v33 = vmul.f32 0.03125, %v3641_v56  ;;  %v2190_v35 = vld [vmem:[#allocation2 + $0x1a0] sm:$0xff]  ;;  %2160 = vst [vmem:[#allocation3 + $0x60] sm:$0xff] %v3753_v45  ;;  %v3777_v41 = vadd.f32 %v1271_v54, %v3717_v51  ;;  %v2236_v62 = vld [vmem:[#allocation2 + $0x1a8] sm:$0xff]  ;;  %v2192_v9 = vld [vmem:[#allocation2 + $0x118] sm:$0xff] }
 0x106   : > { %v2216_v38 = vadd.f32 %v2230_v59, %v2200_v58  ;;  %v2204_v55 = vmul.f32 2.0, %v2188_v14  ;;  %2161 = vst [vmem:[#allocation3 + $0x68] sm:$0x1] %v2145_v25  ;;  %v3780_v34 = vadd.f32 %v1272_v50, %v3722_v11  ;;  %v1274_v20 = vmul.f32 0.03125, %v3644_v31  ;;  %v2194_v29 = vld [vmem:[#allocation2 + $0x148] sm:$0xff]  ;;  %v2240_v4 = vld [vmem:[#allocation2 + $0x80] sm:$0xff] }
 0x107   : > { %v2218_v40 = vadd.f32 %v2232_v13, %v2202_v1  ;;  %v3783_v56 = vadd.f32 %v1273_v33, %v3729_v63  ;;  %v2715_v37 = vld [vmem:[%s3024_s17 + $0x28c] sm:$0x1]  ;;  %2162 = vst [vmem:[#allocation3 + $0x70] sm:$0xff] %v3768_v7  ;;  %v3788_v51 = vadd.f32 %v2230_v59, %v2214_v49  ;;  %v2206_v12 = vmul.f32 2.0, %v2190_v35  ;;  %v2717_v25 = vld [vmem:[%s3024_s17 + $0x294] sm:$0x1] }
 0x108   : > { %v2220_v43 = vadd.f32 %v2234_v44, %v2204_v55  ;;  %v2238_v23 = vld [vmem:[#allocation2 + $0x1e8] sm:$0xff]  ;;  %v1275_v11 = vmul.f32 0.03125, %v3653_v42  ;;  %2163 = vst [vmem:[#allocation3 + $0x78] sm:$0x1] %v2147_v15  ;;  %v3792_v63 = vadd.f32 %v2232_v13, %v2216_v38  ;;  %v3795_v31 = vadd.f32 %v1274_v20, %v3737_v52  ;;  %v2735_v18 = vld [vmem:[%s3024_s17 + $0x3b4] sm:$0x1] }
 0x109   : > { %v2733_v10 = vld [vmem:[%s3024_s17 + $0x3ac] sm:$0x1]  ;;  %v2208_v0 = vmul.f32 2.0, %v2192_v9  ;;  %v1276_v5 = vmul.f32 0.03125, %v3659_v61  ;;  %v3798_v16 = vadd.f32 %v2234_v44, %v2218_v40  ;;  %v2222_v26 = vadd.f32 %v2236_v62, %v2206_v12  ;;  %v2242_v58 = vld [vmem:[#allocation2 + $0x78] sm:$0xff] }
 0x10a   : > { %v3801_v3 = vadd.f32 %v1275_v11, %v3743_v46  ;;  %v2210_v42 = vmul.f32 2.0, %v2194_v29  ;;  %v2751_v48 = vld [vmem:[%s3219_s26 + $0x4c] sm:$0x1]  ;;  %v1525_v52 = vunpack.c.l.bf16 %v2715_v37  ;;  %v1562_v14 = vunpack.c.l.bf16 %v2733_v10  ;;  %v2753_v46 = vld [vmem:[%s3219_s26 + $0x54] sm:$0x1] }
 0x10b   : > { %v2224_v32 = vadd.f32 %v2238_v23, %v2208_v0  ;;  %v3805_v59 = vadd.f32 %v1276_v5, %v1260_v36  ;;  %v3808_v61 = vadd.f32 %v2236_v62, %v2220_v43  ;;  %v3810_v49 = vadd.f32 %v2238_v23, %v2222_v26  ;;  %v2719_v36 = vld [vmem:[%s3024_s17 + $0x29c] sm:$0x1]  ;;  %v2721_v29 = vld [vmem:[%s3024_s17 + $0x2a4] sm:$0x1] }
 0x10c   : > { %v2226_v54 = vadd.f32 %v2240_v4, %v2210_v42  ;;  %v1580_v13 = vmul.f32 2.0, %v1562_v14  ;;  %v1635_v44 = vunpack.c.l.bf16 %v2751_v48  ;;  %v1527_v15 = vunpack.c.l.bf16 %v2717_v25  ;;  %v2737_v1 = vld [vmem:[%s3024_s17 + $0x3bc] sm:$0x1]  ;;  %v2739_v12 = vld [vmem:[%s3024_s17 + $0x3c4] sm:$0x1] }
 0x10d   : > { %v1564_v50 = vunpack.c.l.bf16 %v2735_v18  ;;  %v3815_v33 = vadd.f32 %v2240_v4, %v2224_v32  ;;  %v1529_v35 = vunpack.c.l.bf16 %v2719_v36  ;;  %v1566_v38 = vunpack.c.l.bf16 %v2737_v1  ;;  %v2755_v55 = vld [vmem:[%s3219_s26 + $0x5c] sm:$0x1]  ;;  %v2757_v23 = vld [vmem:[%s3219_s26 + $0x64] sm:$0x1]  ;;  %v2723_v42 = vld [vmem:[%s3024_s17 + $0x2ac] sm:$0x1] }
 0x10e   : > { %v3818_v62 = vadd.f32 %v2242_v58, %v2226_v54  ;;  %v1598_v9 = vadd.f32 %v1580_v13, %v1525_v52  ;;  %v1637_v20 = vunpack.c.l.bf16 %v2753_v46  ;;  %v1639_v43 = vunpack.c.l.bf16 %v2755_v55  ;;  %v2741_v48 = vld [vmem:[%s3024_s17 + $0x3cc] sm:$0x1]  ;;  %v2725_v46 = vld [vmem:[%s3024_s17 + $0x2b4] sm:$0x1] }
 0x10f   : > { %v1582_v40 = vmul.f32 2.0, %v1564_v50  ;;  %v1584_v37 = vmul.f32 2.0, %v1566_v38  ;;  %v1531_v0 = vunpack.c.l.bf16 %v2721_v29  ;;  %v1568_v4 = vunpack.c.l.bf16 %v2739_v12  ;;  %v2759_v25 = vld [vmem:[%s3219_s26 + $0x6c] sm:$0x1]  ;;  %v2743_v13 = vld [vmem:[%s3024_s17 + $0x3d4] sm:$0x1] }
 0x110   : > { %v1653_v11 = vadd.f32 %v1635_v44, %v1598_v9  ;;  %v1641_v26 = vunpack.c.l.bf16 %v2757_v23  ;;  %v1533_v14 = vunpack.c.l.bf16 %v2723_v42  ;;  %v1570_v18 = vunpack.c.l.bf16 %v2741_v48  ;;  %v2761_v1 = vld [vmem:[%s3219_s26 + $0x74] sm:$0x1] }
 0x111   : > { %v1600_v10 = vadd.f32 %v1582_v40, %v1527_v15  ;;  %v1602_v5 = vadd.f32 %v1584_v37, %v1529_v35  ;;  %v1586_v52 = vmul.f32 2.0, %v1568_v4  ;;  %v1643_v58 = vunpack.c.l.bf16 %v2759_v25  ;;  %v2727_v40 = vld [vmem:[%s3024_s17 + $0x2bc] sm:$0x1]  ;;  %v2837_v12 = vld [vmem:[%s3024_s17 + $0x354] sm:$0x1] }
 0x112   : > { %1671 = vst [vmem:[#allocation2 + $0x1c0] sm:$0x1] %v1653_v11  ;;  %v1588_v15 = vmul.f32 2.0, %v1570_v18  ;;  %v1535_v50 = vunpack.c.l.bf16 %v2725_v46  ;;  %v1572_v36 = vunpack.c.l.bf16 %v2743_v13  ;;  %v1645_v35 = vunpack.c.l.bf16 %v2761_v1  ;;  %v2873_v42 = vld [vmem:[%s3219_s26 + $0x114] sm:$0x1] }
 0x113   : > { %v1655_v32 = vadd.f32 %v1637_v20, %v1600_v10  ;;  %v1657_v54 = vadd.f32 %v1639_v43, %v1602_v5  ;;  %v1604_v44 = vadd.f32 %v1586_v52, %v1531_v0  ;;  %v2745_v20 = vld [vmem:[%s3024_s17 + $0x3dc] sm:$0x1]  ;;  %v1537_v29 = vunpack.c.l.bf16 %v2727_v40  ;;  %v2855_v0 = vld [vmem:[%s3024_s17 + $0x474] sm:$0x1]  ;;  %v2749_v1 = vld [vmem:[%s3024_s17 + $0x3ec] sm:$0x1] }
 0x114   : > { %v1606_v55 = vadd.f32 %v1588_v15, %v1533_v14  ;;  %v1590_v9 = vmul.f32 2.0, %v1572_v36  ;;  %v1574_v37 = vunpack.c.l.bf16 %v2745_v20  ;;  %v2763_v43 = vld [vmem:[%s3219_s26 + $0x7c] sm:$0x1]  ;;  %v1903_v5 = vunpack.c.l.bf16 %v2837_v12  ;;  %v2731_v15 = vld [vmem:[%s3024_s17 + $0x2cc] sm:$0x1] }
 0x115   : > { %1673 = vst [vmem:[#allocation2 + $0x138] sm:$0x1] %v1655_v32  ;;  %v1659_v38 = vadd.f32 %v1641_v26, %v1604_v44  ;;  %v1647_v10 = vunpack.c.l.bf16 %v2763_v43  ;;  %v1940_v26 = vunpack.c.l.bf16 %v2855_v0  ;;  %v1293_v48 = vmul.f32 0.015625, %v3707_v19  ;;  %v2729_v32 = vld [vmem:[%s3024_s17 + $0x2c4] sm:$0x1] }
 0x116   : > { %1675 = vst [vmem:[#allocation2 + $0x1b8] sm:$0x1] %v1657_v54  ;;  %v1661_v23 = vadd.f32 %v1643_v58, %v1606_v55  ;;  %v1608_v11 = vadd.f32 %v1590_v9, %v1535_v50  ;;  %v1592_v4 = vmul.f32 2.0, %v1574_v37  ;;  %v2013_v18 = vunpack.c.l.bf16 %v2873_v42  ;;  %v2747_v54 = vld [vmem:[%s3024_s17 + $0x3e4] sm:$0x1] }
 0x117   : > { %1677 = vst [vmem:[#allocation2] sm:$0x1] %v1659_v38  ;;  %v1958_v14 = vmul.f32 2.0, %v1940_v26  ;;  %v2765_v58 = vld [vmem:[%s3219_s26 + $0x84] sm:$0x1]  ;;  %v1539_v46 = vunpack.c.l.bf16 %v2729_v32  ;;  %v1576_v13 = vunpack.c.l.bf16 %v2747_v54  ;;  %v1541_v36 = vunpack.c.l.bf16 %v2731_v15 }
 0x118   : > { %1679 = vst [vmem:[#allocation2 + $0x38] sm:$0x1] %v1661_v23  ;;  %v1663_v25 = vadd.f32 %v1645_v35, %v1608_v11  ;;  %v1610_v52 = vadd.f32 %v1592_v4, %v1537_v29  ;;  %v1649_v44 = vunpack.c.l.bf16 %v2765_v58  ;;  %v2767_v35 = vld [vmem:[%s3219_s26 + $0x8c] sm:$0x1]  ;;  %v1301_v38 = vadd.f32 %v1293_v48, %v3756_v39  ;;  %v2318_v54 = vld [vmem:[#allocation3 + $0x21] sm:$0xff]  ;;  %v2319_v58 = vld [vmem:[#allocation3 + $0x31] sm:$0xff] }
 0x119   : > { %v1976_v50 = vadd.f32 %v1958_v14, %v1903_v5  ;;  %v1594_v55 = vmul.f32 2.0, %v1576_v13  ;;  %v1578_v9 = vunpack.c.l.bf16 %v2749_v1  ;;  %v1651_v40 = vunpack.c.l.bf16 %v2767_v35  ;;  %v2317_v14 = vld [vmem:[#allocation3 + $0x11] sm:$0xff] }
 0x11a   : > { %1681 = vst [vmem:[#allocation2 + $0x220] sm:$0x1] %v1663_v25  ;;  %v1665_v19 = vadd.f32 %v1647_v10, %v1610_v52  ;;  %v1294_v20 = vmul.f32 0.015625, %v3712_v17  ;;  %v1295_v37 = vmul.f32 0.015625, %v3719_v57  ;;  %v1296_v43 = vmul.f32 0.015625, %v3726_v53  ;;  %v2276_v57 = vld [vmem:[#allocation3] sm:$0xff] }
 0x11b   : > { %v2031_v29 = vadd.f32 %v2013_v18, %v1976_v50  ;;  %v1297_v12 = vmul.f32 0.015625, %v3734_v60  ;;  %v1612_v23 = vadd.f32 %v1594_v55, %v1539_v46  ;;  %v1596_v11 = vmul.f32 2.0, %v1578_v9  ;;  %v2316_v52 = vld [vmem:[#allocation3 + $0x1] sm:$0xff]  ;;  %v2321_v1 = vld [vmem:[#allocation3 + $0x51] sm:$0xff] }
 0x11c   : > { %1683 = vst [vmem:[#allocation2 + $0x1c8] sm:$0x1] %v1665_v19  ;;  %v1302_v10 = vadd.f32 %v1294_v20, %v3762_v27  ;;  %v1298_v39 = vmul.f32 0.015625, %v3745_v6  ;;  %v1303_v0 = vadd.f32 %v1295_v37, %v3777_v41  ;;  %v1304_v17 = vadd.f32 %v1296_v43, %v3780_v34 }
 0x11d   : > { %2049 = vst [vmem:[#allocation2 + $0xa8] sm:$0x1] %v2031_v29  ;;  %v1305_v4 = vadd.f32 %v1297_v12, %v3783_v56  ;;  %v1299_v5 = vmul.f32 0.015625, %v3758_v47  ;;  %v1667_v26 = vadd.f32 %v1649_v44, %v1612_v23  ;;  %v1614_v53 = vadd.f32 %v1596_v11, %v1541_v36  ;;  %v2323_v29 = vld [vmem:[#allocation3 + $0x71] sm:$0xff] }
 0x11e   : > { %v2891_v42 = vpack.c.bf16 %v1302_v10, %v1301_v38  ;;  %v1306_v60 = vadd.f32 %v1298_v39, %v3795_v31  ;;  %v2896_v48 = vpack.c.bf16 %v1304_v17, %v1303_v0  ;;  %v1300_v27 = vmul.f32 0.015625, %v3765_v24 }
 0x11f   : > { %v1307_v6 = vadd.f32 %v1299_v5, %v3801_v3  ;;  %1685 = vst [vmem:[#allocation2 + $0xf8] sm:$0x1] %v1667_v26  ;;  %v1669_v25 = vadd.f32 %v1651_v40, %v1614_v53  ;;  %v2284_v32 = vmul.f32 0.015625, %v2276_v57  ;;  %v2285_v47 = vmul.f32 0.015625, %v3714_v28  ;;  %v2322_v40 = vld [vmem:[#allocation3 + $0x61] sm:$0xff] }
 0x120   : > { %v2901_v41 = vpack.c.bf16 %v1306_v60, %v1305_v4  ;;  %v1308_v34 = vadd.f32 %v1300_v27, %v3805_v59  ;;  %v2300_v56 = vmul.f32 0.03125, %v3774_v8  ;;  %2892 = vst [vmem:[%s3867_s30] sm:$0xff] %v2891_v42   ;;  %v2301_v31 = vmul.f32 0.03125, %v3788_v51  ;;  %v2320_v51 = vld [vmem:[#allocation3 + $0x41] sm:$0xff] }
 0x121   : > { %1687 = vst [vmem:[#allocation2 + $0x170] sm:$0x1] %v1669_v25  ;;  %v2324_v18 = vmul.f32 0.015625, %v2316_v52  ;;  %v2325_v46 = vmul.f32 0.015625, %v2317_v14  ;;  %v2286_v28 = vmul.f32 0.015625, %v3724_v2  ;;  %v2287_v13 = vmul.f32 0.015625, %v3732_v22 }
 0x122   : > { %v2906_v24 = vpack.c.bf16 %v1308_v34, %v1307_v6  ;;  %2928 = vst [vmem:[%s3867_s30 + $0x8] sm:$0xff] %v2896_v48   ;;  %v2308_v3 = vadd.f32 %v2300_v56, %v2284_v32  ;;  %v2309_v59 = vadd.f32 %v2301_v31, %v2285_v47  ;;  %v2302_v15 = vmul.f32 0.03125, %v3792_v63 }
 0x123   : > { %2929 = vst [vmem:[%s3867_s30 + $0x10] sm:$0xff] %v2901_v41   ;;  %v2303_v19 = vmul.f32 0.03125, %v3798_v16  ;;  %v2326_v50 = vmul.f32 0.015625, %v2318_v54  ;;  %v2327_v36 = vmul.f32 0.015625, %v2319_v58  ;;  %v2288_v9 = vmul.f32 0.015625, %v3740_v30 }
 0x124   : > { %2930 = vst [vmem:[%s3867_s30 + $0x18] sm:$0xff] %v2906_v24   ;;  %v2332_v44 = vadd.f32 %v2324_v18, %v2308_v3  ;;  %v2333_v8 = vadd.f32 %v2325_v46, %v2309_v59  ;;  %v2310_v38 = vadd.f32 %v2302_v15, %v2286_v28  ;;  %v2289_v2 = vmul.f32 0.015625, %v3747_v21 }
 0x125   : > { %v2311_v55 = vadd.f32 %v2303_v19, %v2287_v13  ;;  %v2304_v22 = vmul.f32 0.03125, %v3808_v61  ;;  %v2305_v20 = vmul.f32 0.03125, %v3810_v49  ;;  %v2328_v63 = vmul.f32 0.015625, %v2320_v51 }
 0x126   : > { %v2911_v35 = vpack.c.bf16 %v2333_v8, %v2332_v44  ;;  %v2334_v16 = vadd.f32 %v2326_v50, %v2310_v38  ;;  %v2329_v43 = vmul.f32 0.015625, %v2321_v1  ;;  %v2290_v12 = vmul.f32 0.015625, %v3753_v45 }
 0x127   : > { %v2335_v37 = vadd.f32 %v2327_v36, %v2311_v55  ;;  %v2312_v23 = vadd.f32 %v2304_v22, %v2288_v9  ;;  %v2313_v11 = vadd.f32 %v2305_v20, %v2289_v2  ;;  %v2291_v30 = vmul.f32 0.015625, %v3768_v7 }
 0x128   : > { %v2306_v10 = vmul.f32 0.03125, %v3815_v33  ;;  %2931 = vst [vmem:[%s3867_s30 + $0x20] sm:$0xff] %v2911_v35   ;;  %v2307_v61 = vmul.f32 0.03125, %v3818_v62  ;;  %v2330_v49 = vmul.f32 0.015625, %v2322_v40  ;;  %v2331_v39 = vmul.f32 0.015625, %v2323_v29 }
 0x129   : > { %v2916_v21 = vpack.c.bf16 %v2335_v37, %v2334_v16  ;;  %v2336_v0 = vadd.f32 %v2328_v63, %v2312_v23  ;;  %v2337_v17 = vadd.f32 %v2329_v43, %v2313_v11 }
 0x12a   : > { %v2314_v4 = vadd.f32 %v2306_v10, %v2290_v12  ;;  %v2315_v5 = vadd.f32 %v2307_v61, %v2291_v30 }
 0x12b   : > { %2932 = vst [vmem:[%s3867_s30 + $0x28] sm:$0xff] %v2916_v21   ;;  %v2921_v45 = vpack.c.bf16 %v2337_v17, %v2336_v0 }
 0x12c   : > { %v2338_v57 = vadd.f32 %v2330_v49, %v2314_v4  ;;  %v2339_v26 = vadd.f32 %v2331_v39, %v2315_v5 }
 0x12d   : > { %2933 = vst [vmem:[%s3867_s30 + $0x30] sm:$0xff] %v2921_v45  }
 0x12e   : > { %v2926_v53 = vpack.c.bf16 %v2339_v26, %v2338_v57 }
 0x130   : > { %2934 = vst [vmem:[%s3867_s30 + $0x38] sm:$0xff] %v2926_v53  }
 0x131 PF: > { %s12_s11 = sadd.s32 1, %s2983_s11   ;;  %s3968_s9 = smov %s2979_s10 }
 0x132   : > { %p9_p8 = scmp.ge.s32.totalorder %s12_s11, 4   ;;  %s3969_s10 = smov %s3971_s12 }
 0x134   :  { %11 = sbr.rel (!%p9_p8) target bundleno = 2 (0x2), region = 86 }

</bundles_post_ra>
